<compile_context>
chip_gen: v5e
topology: v5e:2x2
jax: 0.10.0
libtpu: 0.0.40
codegen_flags: <defaults>
</compile_context>

<pallas_src>
import functools
import math

import jax
import jax.numpy as jnp
import numpy as np
from jax import lax
from jax.experimental import pallas as pl
from jax.experimental.pallas import tpu as pltpu

STAGE_NUM = 3
LANE = 128


def _round_up(x, m):
    return (x + m - 1) // m * m


def _emau_kernel(x_ref, w1_ref, b1_ref, mu0_ref, w2_ref, bn_bias_ref,
                 kmask_ref, y_ref, mu_ref, *, c_real, ones_channel):
    # x_ref      : (1, N, Cp) f32   original input (residual branch)
    # w1_ref     : (Cp, Cp)  bf16   conv1 weight, (in, out); padded rows/cols are 0
    # b1_ref     : (1, Cp)   f32    conv1 bias; if ones_channel, b1[c_real] == 1.0
    # mu0_ref    : (1, Cp, Kp) bf16 initial bases (padded rows/cols are 0)
    # w2_ref     : (Cp, Cp)  bf16   conv2 weight with BN scale pre-folded, (in, out)
    # bn_bias_ref: (1, Cp)   f32    folded eval-mode BatchNorm bias
    # kmask_ref  : (1, Kp)   f32    0 for real bases, -1e30 for padded bases
    x = x_ref[0]                                  # (N, Cp) f32
    w1 = w1_ref[...]
    b1 = b1_ref[...]
    w2 = w2_ref[...]
    bn_bias = bn_bias_ref[...]
    k_mask = kmask_ref[...]

    n, cp = x.shape
    kp = k_mask.shape[-1]

    # conv1 (1x1, with bias) as a per-pixel matmul; bf16 on the MXU, f32 accumulate.
    x1 = jnp.dot(x.astype(jnp.bfloat16), w1,
                 preferred_element_type=jnp.float32) + b1          # (N, Cp) f32
    x1_bf = x1.astype(jnp.bfloat16)
    # One transpose, hoisted out of the EM loop (avoids 3x implicit transposes of
    # the big (N, C) activation inside the loop).
    x1t_bf = x1.T.astype(jnp.bfloat16)                             # (Cp, N) bf16

    if ones_channel:
        # mask that zeroes the "ones channel" row (and all other padded rows) of mu
        row_ids = lax.broadcasted_iota(jnp.int32, (cp, kp), 0)
        ch_mask = (row_ids < c_real).astype(jnp.float32)           # (Cp, Kp)

    mu = mu0_ref[0].astype(jnp.float32)                            # (Cp, Kp) f32
    z = None
    # EM iterations (stage_num = 3), unrolled
    for _ in range(STAGE_NUM):
        # z = softmax_K(x1 @ mu); padded-K logits masked to -1e30.
        logits = jnp.dot(x1_bf, mu.astype(jnp.bfloat16),
                         preferred_element_type=jnp.float32)       # (N, Kp)
        logits = logits + k_mask
        logits = logits - jnp.max(logits, axis=-1, keepdims=True)
        ez = jnp.exp(logits)
        z = ez * pl.reciprocal(jnp.sum(ez, axis=-1, keepdims=True), approx=True)

        # mu update.  M = x1^T @ z.  With the ones channel, row c_real of M is the
        # over-N column sum of z (computed on the MXU), so the z_-normalisation is
        # just a per-column scale applied after the matmul:
        #   x1^T @ (z * d) == (x1^T @ z) * d   for a per-column scalar d.
        m = jnp.dot(x1t_bf, z.astype(jnp.bfloat16),
                    preferred_element_type=jnp.float32)            # (Cp, Kp)
        if ones_channel:
            col_sum = m[c_real:c_real + 1, :]                      # (1, Kp)
        else:
            col_sum = jnp.sum(z, axis=0, keepdims=True)
        d = pl.reciprocal(1e-6 + col_sum, approx=True)
        mu = m * d
        if ones_channel:
            mu = mu * ch_mask                                      # zero padded rows
        # l2-normalise each basis over the channel axis; matches the reference
        # _l2norm exactly: mu / (1e-6 + ||mu||_2).  Reciprocal only over (1, Kp).
        ss = jnp.sum(mu * mu, axis=0, keepdims=True)               # (1, Kp)
        inv_norm = 1.0 / (1e-6 + jnp.sqrt(ss))
        mu = mu * inv_norm

    # x_rec = z @ mu^T : transpose the small (Cp, Kp) tile, not the big activation.
    mu_t_bf = mu.T.astype(jnp.bfloat16)                            # (Kp, Cp)
    x_rec = jnp.dot(z.astype(jnp.bfloat16), mu_t_bf,
                    preferred_element_type=jnp.float32)            # (N, Cp)
    x_rec = jnp.maximum(x_rec, 0.0)                                # ReLU

    # conv2 (1x1, no bias) with BN scale pre-folded into w2; add BN bias here.
    y = jnp.dot(x_rec.astype(jnp.bfloat16), w2,
                preferred_element_type=jnp.float32)
    y = y + bn_bias
    # residual add (re-read x_ref so the input tile need not stay live) + ReLU
    y = jnp.maximum(y + x_ref[0], 0.0)

    y_ref[0] = y
    mu_ref[0] = mu


def emau_forward(x_nchw, params):
    """x_nchw: (B, C, H, W) float32. Returns (y_nchw, mu) matching EMAU.forward."""
    b, c, h, w = x_nchw.shape
    n = h * w
    k = params["mu"].shape[-1]
    c_pad = max(_round_up(c, LANE), LANE)
    k_pad = max(_round_up(k, LANE), LANE)
    ones_channel = c_pad > c                       # spare padded channel available?

    f32 = jnp.float32
    bf16 = jnp.bfloat16

    # --- pad activations / parameters to lane width ---------------------------
    x_nc = jnp.transpose(x_nchw, (0, 2, 3, 1)).reshape(b, n, c)
    x_nc = jnp.pad(x_nc, ((0, 0), (0, 0), (0, c_pad - c))).astype(f32)

    w1 = jnp.zeros((c_pad, c_pad), f32).at[:c, :c].set(params["w1_oi"].T)   # (in, out)
    # fold BN scale into conv2 columns (per output channel); padded cols stay 0.
    w2_scaled = params["w2_oi"].T * params["bn_scale"][None, :]
    w2 = jnp.zeros((c_pad, c_pad), f32).at[:c, :c].set(w2_scaled)
    b1 = jnp.zeros((c_pad,), f32).at[:c].set(params["b1"])
    if ones_channel:
        b1 = b1.at[c].set(1.0)        # "ones channel": x1[:, c] == 1 for every pixel
    mu0 = jnp.zeros((c_pad, k_pad), f32).at[:c, :k].set(params["mu"][0])
    bn_bias = jnp.zeros((c_pad,), f32).at[:c].set(params["bn_bias"])
    k_mask = jnp.where(jnp.arange(k_pad) < k, 0.0, -1e30).astype(f32).reshape(1, k_pad)

    w1_bf = w1.astype(bf16)
    w2_bf = w2.astype(bf16)
    mu0_bf = mu0.astype(bf16).reshape(1, c_pad, k_pad)
    b1 = b1.reshape(1, c_pad)
    bn_bias = bn_bias.reshape(1, c_pad)

    # --- VMEM budget: double-buffered x/y/mu blocks + resident weights + temps --
    f32b, bf16b = 4, 2
    blk_io = n * c_pad * f32b
    vmem_est = (4 * blk_io                                   # x + y, double-buffered
                + 4 * c_pad * k_pad * f32b                   # mu0 in + mu out
                + 2 * (2 * c_pad * c_pad * bf16b + c_pad * k_pad * bf16b
                       + 3 * c_pad * f32b + k_pad * f32b)    # weights / vectors
                + 3 * n * c_pad * f32b + 2 * n * c_pad * bf16b   # x1, x_rec, y, x1_bf, x1t
                + 2 * n * k_pad * f32b                       # z, logits
                + 4 * c_pad * k_pad * f32b                   # mu, m, masks
                + (2 << 20))                                 # slack
    vmem_limit = int(min(100 * 1024 * 1024, max(vmem_est, 32 * 1024 * 1024)))

    kernel = functools.partial(_emau_kernel, c_real=c, ones_channel=ones_channel)

    y_flat, mu = pl.pallas_call(
        kernel,
        out_shape=(jax.ShapeDtypeStruct((b, n, c_pad), f32),
                   jax.ShapeDtypeStruct((b, c_pad, k_pad), f32)),
        grid_spec=pltpu.PrefetchScalarGridSpec(
            num_scalar_prefetch=0,
            grid=(b,),
            in_specs=[
                pl.BlockSpec((1, n, c_pad), lambda i: (i, 0, 0)),       # x
                pl.BlockSpec((c_pad, c_pad), lambda i: (0, 0)),         # w1 (bf16)
                pl.BlockSpec((1, c_pad), lambda i: (0, 0)),             # b1
                pl.BlockSpec((1, c_pad, k_pad), lambda i: (0, 0, 0)),   # mu0 (bf16)
                pl.BlockSpec((c_pad, c_pad), lambda i: (0, 0)),         # w2 (bf16, BN-folded)
                pl.BlockSpec((1, c_pad), lambda i: (0, 0)),             # bn bias
                pl.BlockSpec((1, k_pad), lambda i: (0, 0)),             # K mask
            ],
            out_specs=[
                pl.BlockSpec((1, n, c_pad), lambda i: (i, 0, 0)),
                pl.BlockSpec((1, c_pad, k_pad), lambda i: (i, 0, 0)),
            ],
        ),
        compiler_params=pltpu.CompilerParams(
            dimension_semantics=("parallel",),
            vmem_limit_bytes=vmem_limit,
        ),
    )(x_nc, w1_bf, b1, mu0_bf, w2_bf, bn_bias, k_mask)

    y = jnp.transpose(y_flat[:, :, :c].reshape(b, h, w, c), (0, 3, 1, 2))   # NCHW
    mu = mu[:, :c, :k]
    return y, mu


def emau_ref(x, params):
    """Pure-JAX f32 reference mirroring the PyTorch forward (NCHW)."""
    b, c, h, w = x.shape
    idn = x
    x1 = jnp.einsum('oi,bihw->bohw', params["w1_oi"], x) + params["b1"][None, :, None, None]
    n = h * w
    xf = x1.reshape(b, c, n)
    mu = jnp.broadcast_to(params["mu"], (b, c, params["mu"].shape[-1]))
    z = None
    for _ in range(STAGE_NUM):
        z = jnp.einsum('bcn,bck->bnk', xf, mu)
        z = jax.nn.softmax(z, axis=2)
        z_ = z / (1e-6 + jnp.sum(z, axis=1, keepdims=True))
        mu = jnp.einsum('bcn,bnk->bck', xf, z_)
        mu = mu / (1e-6 + jnp.linalg.norm(mu, axis=1, keepdims=True))
    xr = jnp.einsum('bck,bnk->bcn', mu, z).reshape(b, c, h, w)
    xr = jax.nn.relu(xr)
    y = jnp.einsum('oi,bihw->bohw', params["w2_oi"], xr)
    y = y * params["bn_scale"][None, :, None, None] + params["bn_bias"][None, :, None, None]
    y = jax.nn.relu(y + idn)
    return y, mu


def init_params(key, c, k):
    k_mu, k_w1, k_b1, k_w2 = jax.random.split(key, 4)
    mu = jax.random.normal(k_mu, (1, c, k), jnp.float32) * math.sqrt(2.0 / k)
    mu = mu / (1e-6 + jnp.linalg.norm(mu, axis=1, keepdims=True))
    w1_oi = jax.random.normal(k_w1, (c, c), jnp.float32) * math.sqrt(2.0 / c)
    b1 = jax.random.uniform(k_b1, (c,), jnp.float32,
                            minval=-1.0 / math.sqrt(c), maxval=1.0 / math.sqrt(c))
    w2_oi = jax.random.normal(k_w2, (c, c), jnp.float32) * math.sqrt(2.0 / c)
    # BatchNorm (eval mode): gamma=1, beta=0, running_mean=0, running_var=1, eps=1e-5
    eps = 1e-5
    gamma = jnp.ones((c,), jnp.float32)
    beta = jnp.zeros((c,), jnp.float32)
    running_mean = jnp.zeros((c,), jnp.float32)
    running_var = jnp.ones((c,), jnp.float32)
    bn_scale = gamma / jnp.sqrt(running_var + eps)
    bn_bias = beta - running_mean * bn_scale
    return {"mu": mu, "w1_oi": w1_oi, "b1": b1, "w2_oi": w2_oi,
            "bn_scale": bn_scale, "bn_bias": bn_bias}


if __name__ == "__main__":
    B, C, H, W, K = 2, 32, 16, 16, 16
    key = jax.random.PRNGKey(0)
    k_x, k_p = jax.random.split(key)
    x = jax.random.normal(k_x, (B, C, H, W), jnp.float32)
    params = init_params(k_p, C, K)

    y, mu = emau_forward(x, params)
    y = jax.block_until_ready(y)
    mu = jax.block_until_ready(mu)

    y_ref, mu_ref_v = emau_ref(x, params)
    # bf16 MXU operands + approx EUP reciprocal -> slightly looser tolerance than pure f32.
    np.testing.assert_allclose(np.asarray(y), np.asarray(y_ref), rtol=3e-2, atol=3e-2)
    np.testing.assert_allclose(np.asarray(mu), np.asarray(mu_ref_v), rtol=3e-2, atol=3e-2)

    print("KERNEL_OK")
</pallas_src>

<mosaic_0001>
module attributes {stable_mosaic.version = 11 : i64} {
  func.func @_emau_kernel(%arg0: i32, %arg1: memref<1x256x128xf32, #tpu.memory_space<vmem>>, %arg2: memref<128x128xbf16, #tpu.memory_space<vmem>>, %arg3: memref<1x128xf32, #tpu.memory_space<vmem>>, %arg4: memref<1x128x128xbf16, #tpu.memory_space<vmem>>, %arg5: memref<128x128xbf16, #tpu.memory_space<vmem>>, %arg6: memref<1x128xf32, #tpu.memory_space<vmem>>, %arg7: memref<1x128xf32, #tpu.memory_space<vmem>>, %arg8: memref<1x256x128xf32, #tpu.memory_space<vmem>>, %arg9: memref<1x128x128xf32, #tpu.memory_space<vmem>>) attributes {dimension_semantics = [#tpu.dimension_semantics<parallel>], iteration_bounds = array<i64: 2>, scalar_prefetch = 0 : i64, scratch_operands = 0 : i64, tpu.core_type = #tpu.core_type<tc>, window_params = [{transform_indices = @transform_0, window_bounds = array<i64: 1, 256, 128>}, {pipeline_mode = #tpu.pipeline_mode<synchronous>, transform_indices = @transform_1, window_bounds = array<i64: 128, 128>}, {pipeline_mode = #tpu.pipeline_mode<synchronous>, transform_indices = @transform_2, window_bounds = array<i64: 1, 128>}, {pipeline_mode = #tpu.pipeline_mode<synchronous>, transform_indices = @transform_3, window_bounds = array<i64: 1, 128, 128>}, {pipeline_mode = #tpu.pipeline_mode<synchronous>, transform_indices = @transform_4, window_bounds = array<i64: 128, 128>}, {pipeline_mode = #tpu.pipeline_mode<synchronous>, transform_indices = @transform_5, window_bounds = array<i64: 1, 128>}, {pipeline_mode = #tpu.pipeline_mode<synchronous>, transform_indices = @transform_6, window_bounds = array<i64: 1, 128>}, {transform_indices = @transform_7, window_bounds = array<i64: 1, 256, 128>}, {transform_indices = @transform_8, window_bounds = array<i64: 1, 128, 128>}]} {
    %c0 = arith.constant 0 : index
    %c0_0 = arith.constant 0 : index
    %c0_1 = arith.constant 0 : index
    %0 = vector.load %arg1[%c0, %c0_0, %c0_1] : memref<1x256x128xf32, #tpu.memory_space<vmem>>, vector<1x256x128xf32>
    %1 = vector.shape_cast %0 : vector<1x256x128xf32> to vector<256x128xf32>
    %c0_2 = arith.constant 0 : index
    %c0_3 = arith.constant 0 : index
    %2 = vector.load %arg2[%c0_2, %c0_3] : memref<128x128xbf16, #tpu.memory_space<vmem>>, vector<128x128xbf16>
    %c0_4 = arith.constant 0 : index
    %c0_5 = arith.constant 0 : index
    %3 = vector.load %arg3[%c0_4, %c0_5] : memref<1x128xf32, #tpu.memory_space<vmem>>, vector<1x128xf32>
    %c0_6 = arith.constant 0 : index
    %c0_7 = arith.constant 0 : index
    %4 = vector.load %arg5[%c0_6, %c0_7] : memref<128x128xbf16, #tpu.memory_space<vmem>>, vector<128x128xbf16>
    %c0_8 = arith.constant 0 : index
    %c0_9 = arith.constant 0 : index
    %5 = vector.load %arg6[%c0_8, %c0_9] : memref<1x128xf32, #tpu.memory_space<vmem>>, vector<1x128xf32>
    %c0_10 = arith.constant 0 : index
    %c0_11 = arith.constant 0 : index
    %6 = vector.load %arg7[%c0_10, %c0_11] : memref<1x128xf32, #tpu.memory_space<vmem>>, vector<1x128xf32>
    %7 = arith.truncf %1 : vector<256x128xf32> to vector<256x128xbf16>
    %cst = arith.constant dense<0.000000e+00> : vector<256x128xf32>
    %8 = tpu.matmul %7, %2, %cst {dimension_numbers = #tpu.dot_dimension_numbers<[1], [0], [0], [1], [0, 0, 1, 1], [], []>} : vector<256x128xbf16>, vector<128x128xbf16>, vector<256x128xf32> -> vector<256x128xf32>
    %9 = vector.broadcast %3 : vector<1x128xf32> to vector<256x128xf32>
    %10 = arith.addf %8, %9 : vector<256x128xf32>
    %11 = arith.truncf %10 : vector<256x128xf32> to vector<256x128xbf16>
    %12 = tpu.transpose %10, [1, 0] : vector<256x128xf32> -> vector<128x256xf32>
    %13 = arith.truncf %12 : vector<128x256xf32> to vector<128x256xbf16>
    %14 = tpu.iota {dimensions = array<i32: 0>} : vector<128x128xi32>
    %c32_i32 = arith.constant 32 : i32
    %15 = vector.broadcast %c32_i32 : i32 to vector<128x128xi32>
    %16 = arith.cmpi slt, %14, %15 : vector<128x128xi32>
    %17 = arith.extui %16 : vector<128x128xi1> to vector<128x128xi32>
    %18 = arith.sitofp %17 : vector<128x128xi32> to vector<128x128xf32>
    %c0_12 = arith.constant 0 : index
    %c0_13 = arith.constant 0 : index
    %c0_14 = arith.constant 0 : index
    %19 = vector.load %arg4[%c0_12, %c0_13, %c0_14] : memref<1x128x128xbf16, #tpu.memory_space<vmem>>, vector<1x128x128xbf16>
    %20 = vector.shape_cast %19 : vector<1x128x128xbf16> to vector<128x128xbf16>
    %21 = arith.extf %20 : vector<128x128xbf16> to vector<128x128xf32>
    %22 = arith.truncf %21 : vector<128x128xf32> to vector<128x128xbf16>
    %cst_15 = arith.constant dense<0.000000e+00> : vector<256x128xf32>
    %23 = tpu.matmul %11, %22, %cst_15 {dimension_numbers = #tpu.dot_dimension_numbers<[1], [0], [0], [1], [0, 0, 1, 1], [], []>} : vector<256x128xbf16>, vector<128x128xbf16>, vector<256x128xf32> -> vector<256x128xf32>
    %24 = vector.broadcast %6 : vector<1x128xf32> to vector<256x128xf32>
    %25 = arith.addf %23, %24 : vector<256x128xf32>
    %cst_16 = arith.constant dense<0xFF800000> : vector<256xf32>
    %26 = vector.multi_reduction <maximumf>, %25, %cst_16 [1] : vector<256x128xf32> to vector<256xf32>
    %27 = vector.shape_cast %26 : vector<256xf32> to vector<256x1xf32>
    %28 = vector.broadcast %27 : vector<256x1xf32> to vector<256x128xf32>
    %29 = arith.subf %25, %28 : vector<256x128xf32>
    %30 = math.exp %29 : vector<256x128xf32>
    %cst_17 = arith.constant dense<0.000000e+00> : vector<256xf32>
    %31 = vector.multi_reduction <add>, %30, %cst_17 [1] : vector<256x128xf32> to vector<256xf32>
    %32 = vector.shape_cast %31 : vector<256xf32> to vector<256x1xf32>
    %33 = tpu.reciprocal %32 {approx = true} : vector<256x1xf32> -> vector<256x1xf32>
    %34 = vector.broadcast %33 : vector<256x1xf32> to vector<256x128xf32>
    %35 = arith.mulf %30, %34 : vector<256x128xf32>
    %36 = arith.truncf %35 : vector<256x128xf32> to vector<256x128xbf16>
    %cst_18 = arith.constant dense<0.000000e+00> : vector<128x128xf32>
    %37 = tpu.matmul %13, %36, %cst_18 {dimension_numbers = #tpu.dot_dimension_numbers<[1], [0], [0], [1], [0, 0, 1, 1], [], []>} : vector<128x256xbf16>, vector<256x128xbf16>, vector<128x128xf32> -> vector<128x128xf32>
    %38 = vector.extract_strided_slice %37 {offsets = [32, 0], sizes = [1, 128], strides = [1, 1]} : vector<128x128xf32> to vector<1x128xf32>
    %cst_19 = arith.constant 9.99999997E-7 : f32
    %39 = vector.broadcast %cst_19 : f32 to vector<1x128xf32>
    %40 = arith.addf %39, %38 : vector<1x128xf32>
    %41 = tpu.reciprocal %40 {approx = true} : vector<1x128xf32> -> vector<1x128xf32>
    %42 = vector.broadcast %41 : vector<1x128xf32> to vector<128x128xf32>
    %43 = arith.mulf %37, %42 : vector<128x128xf32>
    %44 = arith.mulf %43, %18 : vector<128x128xf32>
    %45 = arith.mulf %44, %44 : vector<128x128xf32>
    %cst_20 = arith.constant dense<0.000000e+00> : vector<128xf32>
    %46 = vector.multi_reduction <add>, %45, %cst_20 [0] : vector<128x128xf32> to vector<128xf32>
    %47 = vector.shape_cast %46 : vector<128xf32> to vector<1x128xf32>
    %48 = math.sqrt %47 : vector<1x128xf32>
    %cst_21 = arith.constant 9.99999997E-7 : f32
    %49 = vector.broadcast %cst_21 : f32 to vector<1x128xf32>
    %50 = arith.addf %49, %48 : vector<1x128xf32>
    %cst_22 = arith.constant 1.000000e+00 : f32
    %51 = vector.broadcast %cst_22 : f32 to vector<1x128xf32>
    %52 = arith.divf %51, %50 : vector<1x128xf32>
    %53 = vector.broadcast %52 : vector<1x128xf32> to vector<128x128xf32>
    %54 = arith.mulf %44, %53 : vector<128x128xf32>
    %55 = arith.truncf %54 : vector<128x128xf32> to vector<128x128xbf16>
    %cst_23 = arith.constant dense<0.000000e+00> : vector<256x128xf32>
    %56 = tpu.matmul %11, %55, %cst_23 {dimension_numbers = #tpu.dot_dimension_numbers<[1], [0], [0], [1], [0, 0, 1, 1], [], []>} : vector<256x128xbf16>, vector<128x128xbf16>, vector<256x128xf32> -> vector<256x128xf32>
    %57 = vector.broadcast %6 : vector<1x128xf32> to vector<256x128xf32>
    %58 = arith.addf %56, %57 : vector<256x128xf32>
    %cst_24 = arith.constant dense<0xFF800000> : vector<256xf32>
    %59 = vector.multi_reduction <maximumf>, %58, %cst_24 [1] : vector<256x128xf32> to vector<256xf32>
    %60 = vector.shape_cast %59 : vector<256xf32> to vector<256x1xf32>
    %61 = vector.broadcast %60 : vector<256x1xf32> to vector<256x128xf32>
    %62 = arith.subf %58, %61 : vector<256x128xf32>
    %63 = math.exp %62 : vector<256x128xf32>
    %cst_25 = arith.constant dense<0.000000e+00> : vector<256xf32>
    %64 = vector.multi_reduction <add>, %63, %cst_25 [1] : vector<256x128xf32> to vector<256xf32>
    %65 = vector.shape_cast %64 : vector<256xf32> to vector<256x1xf32>
    %66 = tpu.reciprocal %65 {approx = true} : vector<256x1xf32> -> vector<256x1xf32>
    %67 = vector.broadcast %66 : vector<256x1xf32> to vector<256x128xf32>
    %68 = arith.mulf %63, %67 : vector<256x128xf32>
    %69 = arith.truncf %68 : vector<256x128xf32> to vector<256x128xbf16>
    %cst_26 = arith.constant dense<0.000000e+00> : vector<128x128xf32>
    %70 = tpu.matmul %13, %69, %cst_26 {dimension_numbers = #tpu.dot_dimension_numbers<[1], [0], [0], [1], [0, 0, 1, 1], [], []>} : vector<128x256xbf16>, vector<256x128xbf16>, vector<128x128xf32> -> vector<128x128xf32>
    %71 = vector.extract_strided_slice %70 {offsets = [32, 0], sizes = [1, 128], strides = [1, 1]} : vector<128x128xf32> to vector<1x128xf32>
    %cst_27 = arith.constant 9.99999997E-7 : f32
    %72 = vector.broadcast %cst_27 : f32 to vector<1x128xf32>
    %73 = arith.addf %72, %71 : vector<1x128xf32>
    %74 = tpu.reciprocal %73 {approx = true} : vector<1x128xf32> -> vector<1x128xf32>
    %75 = vector.broadcast %74 : vector<1x128xf32> to vector<128x128xf32>
    %76 = arith.mulf %70, %75 : vector<128x128xf32>
    %77 = arith.mulf %76, %18 : vector<128x128xf32>
    %78 = arith.mulf %77, %77 : vector<128x128xf32>
    %cst_28 = arith.constant dense<0.000000e+00> : vector<128xf32>
    %79 = vector.multi_reduction <add>, %78, %cst_28 [0] : vector<128x128xf32> to vector<128xf32>
    %80 = vector.shape_cast %79 : vector<128xf32> to vector<1x128xf32>
    %81 = math.sqrt %80 : vector<1x128xf32>
    %cst_29 = arith.constant 9.99999997E-7 : f32
    %82 = vector.broadcast %cst_29 : f32 to vector<1x128xf32>
    %83 = arith.addf %82, %81 : vector<1x128xf32>
    %cst_30 = arith.constant 1.000000e+00 : f32
    %84 = vector.broadcast %cst_30 : f32 to vector<1x128xf32>
    %85 = arith.divf %84, %83 : vector<1x128xf32>
    %86 = vector.broadcast %85 : vector<1x128xf32> to vector<128x128xf32>
    %87 = arith.mulf %77, %86 : vector<128x128xf32>
    %88 = arith.truncf %87 : vector<128x128xf32> to vector<128x128xbf16>
    %cst_31 = arith.constant dense<0.000000e+00> : vector<256x128xf32>
    %89 = tpu.matmul %11, %88, %cst_31 {dimension_numbers = #tpu.dot_dimension_numbers<[1], [0], [0], [1], [0, 0, 1, 1], [], []>} : vector<256x128xbf16>, vector<128x128xbf16>, vector<256x128xf32> -> vector<256x128xf32>
    %90 = vector.broadcast %6 : vector<1x128xf32> to vector<256x128xf32>
    %91 = arith.addf %89, %90 : vector<256x128xf32>
    %cst_32 = arith.constant dense<0xFF800000> : vector<256xf32>
    %92 = vector.multi_reduction <maximumf>, %91, %cst_32 [1] : vector<256x128xf32> to vector<256xf32>
    %93 = vector.shape_cast %92 : vector<256xf32> to vector<256x1xf32>
    %94 = vector.broadcast %93 : vector<256x1xf32> to vector<256x128xf32>
    %95 = arith.subf %91, %94 : vector<256x128xf32>
    %96 = math.exp %95 : vector<256x128xf32>
    %cst_33 = arith.constant dense<0.000000e+00> : vector<256xf32>
    %97 = vector.multi_reduction <add>, %96, %cst_33 [1] : vector<256x128xf32> to vector<256xf32>
    %98 = vector.shape_cast %97 : vector<256xf32> to vector<256x1xf32>
    %99 = tpu.reciprocal %98 {approx = true} : vector<256x1xf32> -> vector<256x1xf32>
    %100 = vector.broadcast %99 : vector<256x1xf32> to vector<256x128xf32>
    %101 = arith.mulf %96, %100 : vector<256x128xf32>
    %102 = arith.truncf %101 : vector<256x128xf32> to vector<256x128xbf16>
    %cst_34 = arith.constant dense<0.000000e+00> : vector<128x128xf32>
    %103 = tpu.matmul %13, %102, %cst_34 {dimension_numbers = #tpu.dot_dimension_numbers<[1], [0], [0], [1], [0, 0, 1, 1], [], []>} : vector<128x256xbf16>, vector<256x128xbf16>, vector<128x128xf32> -> vector<128x128xf32>
    %104 = vector.extract_strided_slice %103 {offsets = [32, 0], sizes = [1, 128], strides = [1, 1]} : vector<128x128xf32> to vector<1x128xf32>
    %cst_35 = arith.constant 9.99999997E-7 : f32
    %105 = vector.broadcast %cst_35 : f32 to vector<1x128xf32>
    %106 = arith.addf %105, %104 : vector<1x128xf32>
    %107 = tpu.reciprocal %106 {approx = true} : vector<1x128xf32> -> vector<1x128xf32>
    %108 = vector.broadcast %107 : vector<1x128xf32> to vector<128x128xf32>
    %109 = arith.mulf %103, %108 : vector<128x128xf32>
    %110 = arith.mulf %109, %18 : vector<128x128xf32>
    %111 = arith.mulf %110, %110 : vector<128x128xf32>
    %cst_36 = arith.constant dense<0.000000e+00> : vector<128xf32>
    %112 = vector.multi_reduction <add>, %111, %cst_36 [0] : vector<128x128xf32> to vector<128xf32>
    %113 = vector.shape_cast %112 : vector<128xf32> to vector<1x128xf32>
    %114 = math.sqrt %113 : vector<1x128xf32>
    %cst_37 = arith.constant 9.99999997E-7 : f32
    %115 = vector.broadcast %cst_37 : f32 to vector<1x128xf32>
    %116 = arith.addf %115, %114 : vector<1x128xf32>
    %cst_38 = arith.constant 1.000000e+00 : f32
    %117 = vector.broadcast %cst_38 : f32 to vector<1x128xf32>
    %118 = arith.divf %117, %116 : vector<1x128xf32>
    %119 = vector.broadcast %118 : vector<1x128xf32> to vector<128x128xf32>
    %120 = arith.mulf %110, %119 : vector<128x128xf32>
    %121 = tpu.transpose %120, [1, 0] : vector<128x128xf32> -> vector<128x128xf32>
    %122 = arith.truncf %121 : vector<128x128xf32> to vector<128x128xbf16>
    %123 = arith.truncf %101 : vector<256x128xf32> to vector<256x128xbf16>
    %cst_39 = arith.constant dense<0.000000e+00> : vector<256x128xf32>
    %124 = tpu.matmul %123, %122, %cst_39 {dimension_numbers = #tpu.dot_dimension_numbers<[1], [0], [0], [1], [0, 0, 1, 1], [], []>} : vector<256x128xbf16>, vector<128x128xbf16>, vector<256x128xf32> -> vector<256x128xf32>
    %cst_40 = arith.constant 0.000000e+00 : f32
    %125 = vector.broadcast %cst_40 : f32 to vector<256x128xf32>
    %126 = arith.maximumf %124, %125 : vector<256x128xf32>
    %127 = arith.truncf %126 : vector<256x128xf32> to vector<256x128xbf16>
    %cst_41 = arith.constant dense<0.000000e+00> : vector<256x128xf32>
    %128 = tpu.matmul %127, %4, %cst_41 {dimension_numbers = #tpu.dot_dimension_numbers<[1], [0], [0], [1], [0, 0, 1, 1], [], []>} : vector<256x128xbf16>, vector<128x128xbf16>, vector<256x128xf32> -> vector<256x128xf32>
    %129 = vector.broadcast %5 : vector<1x128xf32> to vector<256x128xf32>
    %130 = arith.addf %128, %129 : vector<256x128xf32>
    %c0_42 = arith.constant 0 : index
    %c0_43 = arith.constant 0 : index
    %c0_44 = arith.constant 0 : index
    %131 = vector.load %arg1[%c0_42, %c0_43, %c0_44] : memref<1x256x128xf32, #tpu.memory_space<vmem>>, vector<1x256x128xf32>
    %132 = vector.shape_cast %131 : vector<1x256x128xf32> to vector<256x128xf32>
    %133 = arith.addf %130, %132 : vector<256x128xf32>
    %cst_45 = arith.constant 0.000000e+00 : f32
    %134 = vector.broadcast %cst_45 : f32 to vector<256x128xf32>
    %135 = arith.maximumf %133, %134 : vector<256x128xf32>
    %c0_46 = arith.constant 0 : index
    %c0_47 = arith.constant 0 : index
    %c0_48 = arith.constant 0 : index
    %136 = vector.load %arg8[%c0_46, %c0_47, %c0_48] : memref<1x256x128xf32, #tpu.memory_space<vmem>>, vector<1x256x128xf32>
    %137 = vector.shape_cast %136 : vector<1x256x128xf32> to vector<256x128xf32>
    %138 = vector.shape_cast %135 : vector<256x128xf32> to vector<1x256x128xf32>
    tpu.vector_store %arg8[%c0_46, %c0_47, %c0_48], %138 {strides = array<i32>} : memref<1x256x128xf32, #tpu.memory_space<vmem>>, vector<1x256x128xf32>,
    %c0_49 = arith.constant 0 : index
    %c0_50 = arith.constant 0 : index
    %c0_51 = arith.constant 0 : index
    %139 = vector.load %arg9[%c0_49, %c0_50, %c0_51] : memref<1x128x128xf32, #tpu.memory_space<vmem>>, vector<1x128x128xf32>
    %140 = vector.shape_cast %139 : vector<1x128x128xf32> to vector<128x128xf32>
    %141 = vector.shape_cast %120 : vector<128x128xf32> to vector<1x128x128xf32>
    tpu.vector_store %arg9[%c0_49, %c0_50, %c0_51], %141 {strides = array<i32>} : memref<1x128x128xf32, #tpu.memory_space<vmem>>, vector<1x128x128xf32>,
    return
  }
  func.func @transform_0(%arg0: i32) -> (i32, i32, i32) {
    %c0_i32 = arith.constant 0 : i32
    %c0_i32_0 = arith.constant 0 : i32
    %c0_i32_1 = arith.constant 0 : i32
    return %arg0, %c0_i32, %c0_i32_0 : i32, i32, i32
  }
  func.func @transform_1(%arg0: i32) -> (i32, i32) {
    %c0_i32 = arith.constant 0 : i32
    %c0_i32_0 = arith.constant 0 : i32
    %c0_i32_1 = arith.constant 0 : i32
    return %c0_i32, %c0_i32_0 : i32, i32
  }
  func.func @transform_2(%arg0: i32) -> (i32, i32) {
    %c0_i32 = arith.constant 0 : i32
    %c0_i32_0 = arith.constant 0 : i32
    %c0_i32_1 = arith.constant 0 : i32
    return %c0_i32, %c0_i32_0 : i32, i32
  }
  func.func @transform_3(%arg0: i32) -> (i32, i32, i32) {
    %c0_i32 = arith.constant 0 : i32
    %c0_i32_0 = arith.constant 0 : i32
    %c0_i32_1 = arith.constant 0 : i32
    %c0_i32_2 = arith.constant 0 : i32
    return %c0_i32, %c0_i32_0, %c0_i32_1 : i32, i32, i32
  }
  func.func @transform_4(%arg0: i32) -> (i32, i32) {
    %c0_i32 = arith.constant 0 : i32
    %c0_i32_0 = arith.constant 0 : i32
    %c0_i32_1 = arith.constant 0 : i32
    return %c0_i32, %c0_i32_0 : i32, i32
  }
  func.func @transform_5(%arg0: i32) -> (i32, i32) {
    %c0_i32 = arith.constant 0 : i32
    %c0_i32_0 = arith.constant 0 : i32
    %c0_i32_1 = arith.constant 0 : i32
    return %c0_i32, %c0_i32_0 : i32, i32
  }
  func.func @transform_6(%arg0: i32) -> (i32, i32) {
    %c0_i32 = arith.constant 0 : i32
    %c0_i32_0 = arith.constant 0 : i32
    %c0_i32_1 = arith.constant 0 : i32
    return %c0_i32, %c0_i32_0 : i32, i32
  }
  func.func @transform_7(%arg0: i32) -> (i32, i32, i32) {
    %c0_i32 = arith.constant 0 : i32
    %c0_i32_0 = arith.constant 0 : i32
    %c0_i32_1 = arith.constant 0 : i32
    return %arg0, %c0_i32, %c0_i32_0 : i32, i32, i32
  }
  func.func @transform_8(%arg0: i32) -> (i32, i32, i32) {
    %c0_i32 = arith.constant 0 : i32
    %c0_i32_0 = arith.constant 0 : i32
    %c0_i32_1 = arith.constant 0 : i32
    return %arg0, %c0_i32, %c0_i32_0 : i32, i32, i32
  }
}

</mosaic_0001>

<bundles_post_ra>
// kernel: tpu_custom_call.1
= control target key start
LH: loop header
LB: loop body
LE: loop exit
PB: predicated region body
PF: predicated region fallthrough
CT: control target
= control target key end

     0   :  { %s6347_s0 = inlined_call_operand.hbm [shape: f32[2,256,128], index: 0, kind: input, shape index: {}]   ;;  %s6348_s1 = inlined_call_operand.hbm [shape: bf16[128,128], index: 1, kind: input, shape index: {}]   ;;  %s6349_s2 = inlined_call_operand.vmem [shape: f32[1,128], index: 2, kind: input, shape index: {}]   ;;  %s6350_s3 = inlined_call_operand.hbm [shape: bf16[1,128,128], index: 3, kind: input, shape index: {}]   ;;  %s6351_s4 = inlined_call_operand.hbm [shape: bf16[128,128], index: 4, kind: input, shape index: {}]   ;;  %s6352_s5 = inlined_call_operand.vmem [shape: f32[1,128], index: 5, kind: input, shape index: {}]   ;;  %s6353_s6 = inlined_call_operand.vmem [shape: f32[1,128], index: 6, kind: input, shape index: {}]   ;;  %s6354_s7 = inlined_call_operand.hbm [shape: f32[2,256,128], index: 7, kind: output, shape index: {0}]   ;;  %s6355_s8 = inlined_call_operand.hbm [shape: f32[2,128,128], index: 8, kind: output, shape index: {1}]  }
   0x1   :  { %6444 = sst [smem:[#allocation65_spill]] %s6347_s0 }
   0x2   :  { %6445 = sst [smem:[#allocation66_spill]] %s6348_s1 }
   0x3   :  { %6446 = sst [smem:[#allocation67_spill]] %s6350_s3 }
   0x4   :  { %14 = vsyncpa [#allocation3], 0 }
   0x5   :  { %16 = vsyncpa [#allocation3 + $0x1], 0 }
   0x6   :  { %17 = vsyncpa [#allocation6], 0 }
   0x7   :  { %18 = vsyncpa [#allocation9], 0 }
   0x8   :  { %19 = vsyncpa [#allocation4], 0 }
   0x9   :  { %21 = vsyncpa [#allocation4 + $0x1], 0 }
   0xa   :  { %22 = vsyncpa [#allocation12], 0 }
   0xb   :  { %24 = vsyncpa [#allocation12 + $0x1], 0  ;;  %s4361_s27 = smov 0   ;;  %s4363_s28 = smov 0  }
   0xc   :  { %s4365_s29 = smov 0   ;;  %s4367_s30 = smov 0  }
   0xd LB: > { %s4382_s9 = sadd.s32 4294967295, %s4305_s30   ;;  %s3277_s10 = sadd.s32 4294967294, %s4305_s30   ;;  %s4305_s30 = sphi %s4367_s30, %s6602_s30   ;;  %s4301_s29 = sphi %s4365_s29, %s6601_s29   ;;  %s4297_s28 = sphi %s4363_s28, %s6600_s28   ;;  %s4293_s27 = sphi %s4361_s27, %s6599_s27  }
   0xe   : > { %p50_p0 = scmp.ne.s32.totalorder %s4297_s28, %s4293_s27  ;;  %p51_p1 = scmp.eq.s32.totalorder %s4382_s9, 0 }
   0xf   : > { %p200_p2 = scmp.eq.s32.totalorder %s4382_s9, 1  ;;  %p206_p3 = scmp.eq.s32.totalorder %s3277_s10, 1 }
  0x10   : > { %p4391_p4 = por %p51_p1, %p50_p0  ;;  %p3278_p5 = scmp.ge.s32.totalorder %s4305_s30, 1 }
  0x11   : > { %p4396_p6 = por %p206_p3, %p50_p0  ;;  %p239_p7 = scmp.lt.s32.totalorder %s4305_s30, 3 }
  0x12   : > { %s6449_s1 = sld [smem:[#allocation66_spill]]  ;;  %s4307_s17 = smov [#allocation5]  }
  0x13   : > { %p4404_p8 = pnand %p3278_p5, %p239_p7  ;;  %s252_s18 = sshll.u32 %s4307_s17, 4  ;;  %s253_s18 = int_to_ptr.vmem [resolvable:$true] %s252_s18 }
  0x14   : > { %s6452_s3 = sld [smem:[#allocation67_spill]]  ;;  %s4308_s23 = smov 64  }
  0x15   : > { %p3458_p9 = pneg %p4404_p8  ;;  %s4309_s24 = smov 4  }
  0x16   : > { %s4310_s25 = smov [#allocation7]   ;;  %s281_s14 = sshll.u32 %s6351_s4, 4  ;;  %s282_s14 = int_to_ptr.hbm [resolvable:$true] %s281_s14 }
  0x17   : > { %p4412_p10 = pnand %p3458_p9, %p51_p1  ;;  %s269_s26 = sshll.u32 %s4310_s25, 4  ;;  %s270_s26 = int_to_ptr.vmem [resolvable:$true] %s269_s26 }
  0x18   : > { %s250_s15 = sshll.u32 %s6449_s1, 4  ;;  %s4311_s17 = smov [#allocation8]   ;;  %s251_s15 = int_to_ptr.hbm [resolvable:$true] %s250_s15 }
  0x19   : > { %3461 = dma.hbm_to_vmem [thread:$0]  (!%p4412_p10), %s251_s15, 1024, %s253_s18, [#allocation6], %s4308_s23, %s4308_s23, %s4309_s24  }
  0x1a   : > { %s267_s22 = sshll.u32 %s6452_s3, 4  ;;  %s283_s20 = sshll.u32 %s4311_s17, 4  ;;  %s268_s22 = int_to_ptr.hbm [resolvable:$true] %s267_s22  ;;  %s284_s20 = int_to_ptr.vmem [resolvable:$true] %s283_s20 }
  0x1b   : > { %3464 = dma.hbm_to_vmem [thread:$0]  (!%p4412_p10), %s268_s22, 1024, %s270_s26, [#allocation6], %s4308_s23, %s4308_s23, %s4309_s24  }
  0x1c   : > { %s4428_s15 = sadd.s32 1, %s4305_s30   ;;  %s37_s21 = sadd.s32 1, %s4301_s29 }
  0x1d   : > { %3467 = dma.hbm_to_vmem [thread:$0]  (!%p4412_p10), %s282_s14, 1024, %s284_s20, [#allocation9], %s4308_s23, %s4308_s23, %s4309_s24  }
  0x1e   : > { %s34_s18 = ssub.s32 %s4305_s30, %s4428_s15  ;;  %p44_p13 = scmp.ne.s32.totalorder %s4301_s29, %s4297_s28 }
  0x1f   : > { %p35_p12 = scmp.eq.s32.totalorder %s34_s18, 0  ;;  %p45_p0 = scmp.eq.s32.totalorder %s4305_s30, 0 }
  0x20   : > { %p3482_p3 = scmp.lt.s32.totalorder %s4305_s30, 2  ;;  %p4444_p7 = por %p200_p2, %p44_p13 }
  0x21   : > { %s4440_s25 = scalar_select %p35_p12, %s4301_s29, %s37_s21  }
  0x22   : > { %p46_p5 = por %p45_p0, %p44_p13  ;;  %s303_s26 = sand.u32 1, %s4301_s29  }
  0x23   : > { %s3397_s10 = sshll.u32 %s4305_s30, 8  ;;  %s3283_s19 = sshll.u32 %s303_s26, 8 }
  0x24   : > { %s6454_s0 = sld [smem:[#allocation65_spill]]  ;;  %s307_s17 = scalar_lea.vmem [#allocation2], %s3283_s19 }
  0x25   : > { %s315_s20 = sshll.u32 %s307_s17, 4  ;;  %p4455_p9 = pnand %p3482_p3, %p46_p5  ;;  %s316_s20 = int_to_ptr.vmem [resolvable:$true] %s315_s20 }
  0x26   : > { %s304_s21 = scalar_lea.sflag [#allocation3], %s303_s26 }
  0x27   : > { %p4173_p10 = pneg %p4455_p9 }
  0x2a   : > { %s312_s24 = scalar_lea.hbm %s6454_s0, %s3397_s10  ;;  %s4176_s13 = scalar_lea.hbm %s6454_s0, 512 }
  0x2b   : > { %s313_s14 = sshll.u32 %s312_s24, 4  ;;  %s314_s14 = int_to_ptr.hbm [resolvable:$true] %s313_s14 }
  0x2c   : > { %s4169_s1 = sshra.s32 %s314_s14, 4  ;;  %s4170_s1 = int_to_ptr.hbm [resolvable:$true] %s4169_s1 }
  0x2d   : > { %s4171_s3 = scalar_lea.hbm %s4170_s1, 256  ;;  %p4177_p0 = scmp.lt.s32.totalorder %s4170_s1, %s6454_s0 }
  0x2e   : > { %p4172_p2 = scmp.ne.s32.totalorder %s4170_s1, %s4171_s3  ;;  %p4178_p3 = scmp.lt.s32.totalorder %s4176_s13, %s4171_s3 }
  0x30   : > { %p4174_p12 = pnand %p4173_p10, %p4172_p2  ;;  %p4179_p5 = por %p4178_p3, %p4177_p0 }
  0x32   : > { %p4175_p13 = pneg %p4174_p12 }
  0x34   : > { %p4180_p11 = pnand %p4179_p5, %p4175_p13 }
  0x36   : > { %4183 = shalt.err (!%p4180_p11)
}
  0x37   : > { %s4312_s26 = smov 128   ;;  %s4313_s17 = smov 8  }
  0x38   : > { %3471 = dma.hbm_to_vmem [thread:$0]  (!%p4455_p9), %s314_s14, 4096, %s316_s20, %s304_s21, %s4312_s26, %s4312_s26, %s4313_s17  }
  0x39   : > { %327 = sbr.rel (%p4404_p8) target bundleno = 4220 (0x107c), region = 48 }
  0x3e   : > { %s4472_s10 = sand.u32 1, %s4297_s28  }
  0x3f   : > { %s3287_s1 = sshll.u32 %s4472_s10, 8  ;;  %s330_s3 = scalar_lea.sflag [#allocation3], %s4472_s10 }
  0x40   : > { %s4478_s19 = scalar_lea.vmem [#allocation2], %s3287_s1 }
  0x41   : > { %4272 = dma.done.wait (%p4391_p4), %s330_s3, 4096  }
  0x42   : > { %4274 = vsyncadd (%p4391_p4), %s330_s3, 4294963200 }
  0x43   : > { %4276 = dma.done.wait (%p51_p1), [#allocation6], 2048  }
  0x44   : > { %4278 = vsyncadd (%p51_p1), [#allocation6], 4294965248 }
  0x45   : > { %4280 = dma.done.wait (%p51_p1), [#allocation9], 1024  }
  0x46   : > { %4282 = vsyncadd (%p51_p1), [#allocation9], 4294966272  ;;  %v3405_v0 = vld [vmem:[#allocation5 + $0x38] sm:$0xff]  ;;  %v3404_v1 = vld [vmem:[#allocation5 + $0x30] sm:$0xff]  ;;  %s3292_s24 = sshll.u32 %s4472_s10, 7  ;;  %s6195_s11 = scalar_lea.vmem [#allocation10], %s3287_s1 }
  0x47   : > { %521 = vmatpush.bf16.msra.mxu0 %v3405_v0  ;;  %v3403_v2 = vld [vmem:[#allocation5 + $0x28] sm:$0xff]  ;;  %v3402_v3 = vld [vmem:[#allocation5 + $0x20] sm:$0xff]  ;;  %v3401_v4 = vld [vmem:[#allocation5 + $0x18] sm:$0xff]  ;;  %s6140_s26 = scalar_lea.vmem [#allocation11], %s3292_s24  ;;  %s3423_s1 = sshll.u32 %s4382_s9, 7 }
  0x48   : > { %v3400_v5 = vld [vmem:[#allocation5 + $0x10] sm:$0xff]  ;;  %v3399_v6 = vld [vmem:[#allocation5 + $0x8] sm:$0xff]  ;;  %v3398_v7 = vld [vmem:[#allocation5] sm:$0xff]  ;;  %s3139_s16 = sshll.u32 %s6140_s26, 4  ;;  %s3138_s18 = scalar_lea.hbm %s6355_s8, %s3423_s1  ;;  %s3140_s16 = int_to_ptr.vmem [resolvable:$true] %s3139_s16 }
  0x49   : > { %v387_v8 = vld [vmem:[%s4478_s19] sm:$0xff]  ;;  %v388_v9 = vld [vmem:[%s4478_s19 + $0x8] sm:$0xff]  ;;  %v389_v11 = vld [vmem:[%s4478_s19 + $0x10] sm:$0xff]  ;;  %s3141_s21 = sshll.u32 %s3138_s18, 4  ;;  %s3110_s13 = scalar_lea.sflag [#allocation12], %s4472_s10  ;;  %s3142_s21 = int_to_ptr.hbm [resolvable:$true] %s3141_s21 }
  0x4a   : > { %v454_v10 = vpack.c.bf16 %v388_v9, %v387_v8  ;;  %v390_v12 = vld [vmem:[%s4478_s19 + $0x18] sm:$0xff]  ;;  %v391_v14 = vld [vmem:[%s4478_s19 + $0x20] sm:$0xff]  ;;  %v392_v15 = vld [vmem:[%s4478_s19 + $0x28] sm:$0xff]  ;;  %s4213_s23 = sshra.s32 %s3142_s21, 4  ;;  %s4219_s3 = scalar_lea.hbm %s6355_s8, 256  ;;  %s4214_s23 = int_to_ptr.hbm [resolvable:$true] %s4213_s23 }
  0x4b   : > { %522 = vmatpush.bf16.msra.mxu0 %v3404_v1  ;;  %v455_v13 = vpack.c.bf16 %v390_v12, %v389_v11  ;;  %v456_v16 = vpack.c.bf16 %v392_v15, %v391_v14  ;;  %v393_v17 = vld [vmem:[%s4478_s19 + $0x30] sm:$0xff]  ;;  %v394_v18 = vld [vmem:[%s4478_s19 + $0x38] sm:$0xff]  ;;  %v395_v20 = vld [vmem:[%s4478_s19 + $0x40] sm:$0xff]  ;;  %s4215_s24 = scalar_lea.hbm %s4214_s23, 128  ;;  %p4220_p11 = scmp.lt.s32.totalorder %s4214_s23, %s6355_s8 }
  0x4c   : > { %v457_v19 = vpack.c.bf16 %v394_v18, %v393_v17  ;;  %v396_v21 = vld [vmem:[%s4478_s19 + $0x48] sm:$0xff]  ;;  %v3421_v23 = vld [vmem:[#allocation7 + $0x38] sm:$0xff]  ;;  %v3420_v24 = vld [vmem:[#allocation7 + $0x30] sm:$0xff]  ;;  %p4216_p1 = scmp.ne.s32.totalorder %s4214_s23, %s4215_s24  ;;  %p4221_p9 = scmp.lt.s32.totalorder %s4219_s3, %s4215_s24 }
  0x4d   : > { %v458_v22 = vpack.c.bf16 %v396_v21, %v395_v20  ;;  %838 = vmatpush.bf16.msra.mxu1 %v3421_v23  ;;  %v397_v25 = vld [vmem:[%s4478_s19 + $0x50] sm:$0xff]  ;;  %v398_v26 = vld [vmem:[%s4478_s19 + $0x58] sm:$0xff]  ;;  %v3419_v28 = vld [vmem:[#allocation7 + $0x28] sm:$0xff] }
  0x4e   : > { %v459_v27 = vpack.c.bf16 %v398_v26, %v397_v25  ;;  %v3418_v29 = vld [vmem:[#allocation7 + $0x20] sm:$0xff]  ;;  %v3417_v30 = vld [vmem:[#allocation7 + $0x18] sm:$0xff]  ;;  %v400_v32 = vld [vmem:[%s4478_s19 + $0x68] sm:$0xff]  ;;  %p4217_p4 = pnand %p4216_p1, %p4444_p7  ;;  %p4222_p2 = por %p4221_p9, %p4220_p11 }
  0x4f   : > { %523 = vmatpush.bf16.msra.mxu0 %v3403_v2  ;;  %v399_v31 = vld [vmem:[%s4478_s19 + $0x60] sm:$0xff]  ;;  %v3416_v34 = vld [vmem:[#allocation7 + $0x10] sm:$0xff]  ;;  %v3415_v35 = vld [vmem:[#allocation7 + $0x8] sm:$0xff] }
  0x50   : > { %v460_v33 = vpack.c.bf16 %v400_v32, %v399_v31  ;;  %v3414_v36 = vld [vmem:[#allocation7] sm:$0xff]  ;;  %v401_v37 = vld [vmem:[%s4478_s19 + $0x70] sm:$0xff]  ;;  %v402_v38 = vld [vmem:[%s4478_s19 + $0x78] sm:$0xff]  ;;  %p4218_p8 = pneg %p4217_p4 }
  0x51   : > { %839 = vmatpush.bf16.msra.mxu1 %v3420_v24  ;;  %v461_v39 = vpack.c.bf16 %v402_v38, %v401_v37  ;;  %v403_v40 = vld [vmem:[%s4478_s19 + $0x80] sm:$0xff]  ;;  %v404_v41 = vld [vmem:[%s4478_s19 + $0x88] sm:$0xff]  ;;  %v405_v49 = vld [vmem:[%s4478_s19 + $0x90] sm:$0xff] }
  0x52   : > { %v462_v42 = vpack.c.bf16 %v404_v41, %v403_v40  ;;  %v4513_v44 = vld [vmem:[%s6349_s2] ss:$0 sm:$0xff]  ;;  %v406_v50 = vld [vmem:[%s4478_s19 + $0x98] sm:$0xff]  ;;  %v408_v58 = vld [vmem:[%s4478_s19 + $0xa8] sm:$0xff]  ;;  %p4223_p10 = pnand %p4222_p2, %p4218_p8 }
  0x53   : > { %524 = vmatpush.bf16.msra.mxu0 %v3402_v3  ;;  %v463_v51 = vpack.c.bf16 %v406_v50, %v405_v49  ;;  %v407_v57 = vld [vmem:[%s4478_s19 + $0xa0] sm:$0xff]  ;;  %v409_v1 = vld [vmem:[%s4478_s19 + $0xb0] sm:$0xff]  ;;  %v410_v2 = vld [vmem:[%s4478_s19 + $0xb8] sm:$0xff] }
  0x54   : > { %v464_v59 = vpack.c.bf16 %v408_v58, %v407_v57  ;;  %v465_v3 = vpack.c.bf16 %v410_v2, %v409_v1  ;;  %v411_v9 = vld [vmem:[%s4478_s19 + $0xc0] sm:$0xff]  ;;  %v413_v17 = vld [vmem:[%s4478_s19 + $0xd0] sm:$0xff]  ;;  %v414_v18 = vld [vmem:[%s4478_s19 + $0xd8] sm:$0xff] }
  0x55   : > { %840 = vmatpush.bf16.msra.mxu1 %v3419_v28  ;;  %v415_v25 = vld [vmem:[%s4478_s19 + $0xe0] sm:$0xff]  ;;  %v416_v26 = vld [vmem:[%s4478_s19 + $0xe8] sm:$0xff] }
  0x57   : > { %525 = vmatpush.bf16.msra.mxu0 %v3401_v4 }
  0x59   : > { %841 = vmatpush.bf16.msra.mxu1 %v3418_v29 }
  0x5b   : > { %526 = vmatpush.bf16.msra.mxu0 %v3400_v5 }
  0x5d   : > { %842 = vmatpush.bf16.msra.mxu1 %v3417_v30 }
  0x5f   : > { %527 = vmatpush.bf16.msra.mxu0 %v3399_v6 }
  0x61   : > { %843 = vmatpush.bf16.msra.mxu1 %v3416_v34  ;;  %v418_v34 = vld [vmem:[%s4478_s19 + $0xf8] sm:$0xff] }
  0x63   : > { %528 = vmatpush.bf16.msra.mxu0 %v3398_v7 }
  0x65   : > { %844 = vmatpush.bf16.msra.mxu1 %v3415_v35 }
  0x66   : > { %529 = vmatmul.bf16.vlgmr.msra.gmra.mxu0 %v454_v10  ;;  %v412_v10 = vld [vmem:[%s4478_s19 + $0xc8] sm:$0xff] }
  0x67   : > { %v466_v11 = vpack.c.bf16 %v412_v10, %v411_v9 }
  0x69   : > { %845 = vmatpush.bf16.msra.mxu1 %v3414_v36 }
  0x76   : > { %534 = vmatmul.bf16.gmra.mxu0 %v455_v13 }
  0x86   : > { %539 = vmatmul.bf16.gmra.mxu0 %v456_v16 }
  0x96   : > { %544 = vmatmul.bf16.gmra.mxu0 %v457_v19  ;;  %v467_v19 = vpack.c.bf16 %v414_v18, %v413_v17 }
  0xa6   : > { %549 = vmatmul.bf16.gmra.mxu0 %v458_v22 }
  0xb6   : > { %554 = vmatmul.bf16.gmra.mxu0 %v459_v27  ;;  %v468_v27 = vpack.c.bf16 %v416_v26, %v415_v25 }
  0xc6   : > { %559 = vmatmul.bf16.gmra.mxu0 %v460_v33  ;;  %v417_v33 = vld [vmem:[%s4478_s19 + $0xf0] sm:$0xff] }
  0xc7   : > { %v469_v35 = vpack.c.bf16 %v418_v34, %v417_v33 }
  0xd6   : > { %564 = vmatmul.bf16.gmra.mxu0 %v461_v39 }
  0xe3   : > { %v530_v43 = vpop.f32.mrf.mxu0 }
  0xe4   : > { %v4516_v46 = vadd.f32 %v4513_v44, %v530_v43 }
  0xe6   : > { %569 = vmatmul.bf16.gmra.mxu0 %v462_v42  ;;  %v4620_v42 = vld [vmem:[%s6353_s6] ss:$0 sm:$0xff] }
  0xeb   : > { %v532_v45 = vpop.f32.mrf.mxu0 }
  0xec   : > { %v4519_v47 = vadd.f32 %v4513_v44, %v532_v45 }
  0xee   : > { %v4523_v48 = vpack.c.bf16 %v4519_v47, %v4516_v46 }
  0xf0   : > { %6456 = vst [vmem:[#allocation18_spill] sm:$0xff] %v4523_v48  ;;  %846 = vmatmul.bf16.vlgmr.msra.gmra.mxu1 %v4523_v48 }
  0xf3   : > { %v535_v52 = vpop.f32.mrf.mxu0 }
  0xf4   : > { %v4529_v54 = vadd.f32 %v4513_v44, %v535_v52 }
  0xf6   : > { %574 = vmatmul.bf16.gmra.mxu0 %v463_v51 }
  0xfb   : > { %v537_v53 = vpop.f32.mrf.mxu0 }
  0xfc   : > { %v4532_v55 = vadd.f32 %v4513_v44, %v537_v53 }
  0xfe   : > { %v4536_v56 = vpack.c.bf16 %v4532_v55, %v4529_v54 }
 0x100   : > { %6457 = vst [vmem:[#allocation19_spill] sm:$0xff] %v4536_v56  ;;  %851 = vmatmul.bf16.gmra.mxu1 %v4536_v56 }
 0x103   : > { %v540_v60 = vpop.f32.mrf.mxu0 }
 0x104   : > { %v4542_v62 = vadd.f32 %v4513_v44, %v540_v60 }
 0x106   : > { %579 = vmatmul.bf16.gmra.mxu0 %v464_v59 }
 0x10b   : > { %v542_v61 = vpop.f32.mrf.mxu0 }
 0x10c   : > { %v4545_v63 = vadd.f32 %v4513_v44, %v542_v61 }
 0x10e   : > { %6458 = vst [vmem:[#allocation20_spill] sm:$0xff] %v4545_v63  ;;  %v4549_v0 = vpack.c.bf16 %v4545_v63, %v4542_v62 }
 0x110   : > { %6459 = vst [vmem:[#allocation21_spill] sm:$0xff] %v4549_v0  ;;  %856 = vmatmul.bf16.gmra.mxu1 %v4549_v0 }
 0x113   : > { %v545_v4 = vpop.f32.mrf.mxu0 }
 0x114   : > { %v4555_v6 = vadd.f32 %v4513_v44, %v545_v4 }
 0x116   : > { %584 = vmatmul.bf16.gmra.mxu0 %v465_v3  ;;  %6460 = vst [vmem:[#allocation22_spill] sm:$0xff] %v4555_v6 }
 0x11b   : > { %v547_v5 = vpop.f32.mrf.mxu0 }
 0x11c   : > { %v4558_v7 = vadd.f32 %v4513_v44, %v547_v5 }
 0x11e   : > { %6461 = vst [vmem:[#allocation23_spill] sm:$0xff] %v4558_v7  ;;  %v4562_v8 = vpack.c.bf16 %v4558_v7, %v4555_v6 }
 0x120   : > { %6462 = vst [vmem:[#allocation24_spill] sm:$0xff] %v4562_v8  ;;  %861 = vmatmul.bf16.gmra.mxu1 %v4562_v8 }
 0x123   : > { %v550_v12 = vpop.f32.mrf.mxu0 }
 0x124   : > { %v4568_v14 = vadd.f32 %v4513_v44, %v550_v12 }
 0x126   : > { %589 = vmatmul.bf16.gmra.mxu0 %v466_v11  ;;  %6463 = vst [vmem:[#allocation25_spill] sm:$0xff] %v4568_v14 }
 0x12b   : > { %v552_v13 = vpop.f32.mrf.mxu0 }
 0x12c   : > { %v4571_v15 = vadd.f32 %v4513_v44, %v552_v13 }
 0x12e   : > { %6464 = vst [vmem:[#allocation26_spill] sm:$0xff] %v4571_v15  ;;  %v4575_v16 = vpack.c.bf16 %v4571_v15, %v4568_v14 }
 0x130   : > { %6465 = vst [vmem:[#allocation27_spill] sm:$0xff] %v4575_v16  ;;  %866 = vmatmul.bf16.gmra.mxu1 %v4575_v16 }
 0x133   : > { %v555_v20 = vpop.f32.mrf.mxu0 }
 0x134   : > { %v4581_v22 = vadd.f32 %v4513_v44, %v555_v20 }
 0x136   : > { %594 = vmatmul.bf16.gmra.mxu0 %v467_v19  ;;  %6466 = vst [vmem:[#allocation28_spill] sm:$0xff] %v4581_v22 }
 0x13b   : > { %v557_v21 = vpop.f32.mrf.mxu0 }
 0x13c   : > { %v4584_v23 = vadd.f32 %v4513_v44, %v557_v21 }
 0x13e   : > { %6467 = vst [vmem:[#allocation29_spill] sm:$0xff] %v4584_v23  ;;  %v4588_v24 = vpack.c.bf16 %v4584_v23, %v4581_v22 }
 0x140   : > { %6468 = vst [vmem:[#allocation30_spill] sm:$0xff] %v4588_v24  ;;  %871 = vmatmul.bf16.gmra.mxu1 %v4588_v24 }
 0x143   : > { %v560_v28 = vpop.f32.mrf.mxu0 }
 0x144   : > { %v4594_v29 = vadd.f32 %v4513_v44, %v560_v28 }
 0x146   : > { %599 = vmatmul.bf16.gmra.mxu0 %v468_v27  ;;  %6469 = vst [vmem:[#allocation31_spill] sm:$0xff] %v4594_v29 }
 0x14b   : > { %v562_v30 = vpop.f32.mrf.mxu0 }
 0x14c   : > { %v4597_v31 = vadd.f32 %v4513_v44, %v562_v30 }
 0x14e   : > { %6470 = vst [vmem:[#allocation32_spill] sm:$0xff] %v4597_v31  ;;  %v4601_v32 = vpack.c.bf16 %v4597_v31, %v4594_v29 }
 0x150   : > { %6471 = vst [vmem:[#allocation33_spill] sm:$0xff] %v4601_v32  ;;  %876 = vmatmul.bf16.gmra.mxu1 %v4601_v32 }
 0x153   : > { %v565_v36 = vpop.f32.mrf.mxu0 }
 0x154   : > { %v4607_v37 = vadd.f32 %v4513_v44, %v565_v36 }
 0x156   : > { %604 = vmatmul.bf16.gmra.mxu0 %v469_v35  ;;  %6472 = vst [vmem:[#allocation34_spill] sm:$0xff] %v4607_v37 }
 0x15b   : > { %v567_v38 = vpop.f32.mrf.mxu0 }
 0x15c   : > { %v4610_v39 = vadd.f32 %v4513_v44, %v567_v38 }
 0x15e   : > { %6473 = vst [vmem:[#allocation35_spill] sm:$0xff] %v4610_v39  ;;  %v4614_v40 = vpack.c.bf16 %v4610_v39, %v4607_v37 }
 0x160   : > { %6474 = vst [vmem:[#allocation36_spill] sm:$0xff] %v4614_v40  ;;  %881 = vmatmul.bf16.gmra.mxu1 %v4614_v40 }
 0x163   : > { %v570_v41 = vpop.f32.mrf.mxu0 }
 0x164   : > { %v4623_v45 = vadd.f32 %v4513_v44, %v570_v41 }
 0x16b   : > { %v572_v43 = vpop.f32.mrf.mxu0 }
 0x16c   : > { %v4626_v49 = vadd.f32 %v4513_v44, %v572_v43 }
 0x16d   : > { %v847_v50 = vpop.f32.mrf.mxu1 }
 0x16e   : > { %v4630_v51 = vpack.c.bf16 %v4626_v49, %v4623_v45  ;;  %v4633_v52 = vadd.f32 %v4620_v42, %v847_v50 }
 0x170   : > { %6475 = vst [vmem:[#allocation37_spill] sm:$0xff] %v4630_v51  ;;  %886 = vmatmul.bf16.gmra.mxu1 %v4630_v51  ;;  %927 = vmax.xlane.f32.xlu1 %v4633_v52 }
 0x173   : > { %v575_v53 = vpop.f32.mrf.mxu0 }
 0x174   : > { %v4642_v60 = vadd.f32 %v4513_v44, %v575_v53 }
 0x175   : > { %v849_v57 = vpop.f32.mrf.mxu1 }
 0x176   : > { %v4638_v58 = vadd.f32 %v4620_v42, %v849_v57 }
 0x178   : > { %929 = vmax.xlane.f32.xlu2 %v4638_v58 }
 0x17b   : > { %v577_v59 = vpop.f32.mrf.mxu0 }
 0x17c   : > { %v4645_v61 = vadd.f32 %v4513_v44, %v577_v59 }
 0x17d   : > { %v852_v1 = vpop.f32.mrf.mxu1 }
 0x17e   : > { %v4649_v2 = vpack.c.bf16 %v4645_v61, %v4642_v60  ;;  %v4652_v3 = vadd.f32 %v4620_v42, %v852_v1 }
 0x180   : > { %6476 = vst [vmem:[#allocation38_spill] sm:$0xff] %v4649_v2  ;;  %891 = vmatmul.bf16.gmra.mxu1 %v4649_v2  ;;  %931 = vmax.xlane.f32.xlu0 %v4652_v3 }
 0x183   : > { %v580_v4 = vpop.f32.mrf.mxu0 }
 0x184   : > { %v4661_v11 = vadd.f32 %v4513_v44, %v580_v4 }
 0x185   : > { %v854_v5 = vpop.f32.mrf.mxu1 }
 0x186   : > { %v4657_v9 = vadd.f32 %v4620_v42, %v854_v5 }
 0x188   : > { %933 = vmax.xlane.f32.xlu1 %v4657_v9 }
 0x18b   : > { %v582_v10 = vpop.f32.mrf.mxu0 }
 0x18c   : > { %v4664_v12 = vadd.f32 %v4513_v44, %v582_v10 }
 0x18d   : > { %v857_v13 = vpop.f32.mrf.mxu1 }
 0x18e   : > { %6477 = vst [vmem:[#allocation39_spill] sm:$0xff] %v4664_v12  ;;  %v4668_v17 = vpack.c.bf16 %v4664_v12, %v4661_v11  ;;  %v4671_v18 = vadd.f32 %v4620_v42, %v857_v13 }
 0x190   : > { %6478 = vst [vmem:[#allocation40_spill] sm:$0xff] %v4668_v17  ;;  %896 = vmatmul.bf16.gmra.mxu1 %v4668_v17  ;;  %935 = vmax.xlane.f32.xlu2 %v4671_v18 }
 0x193   : > { %v585_v19 = vpop.f32.mrf.mxu0 }
 0x194   : > { %v4680_v26 = vadd.f32 %v4513_v44, %v585_v19 }
 0x195   : > { %v859_v20 = vpop.f32.mrf.mxu1 }
 0x196   : > { %v4676_v21 = vadd.f32 %v4620_v42, %v859_v20  ;;  %6479 = vst [vmem:[#allocation41_spill] sm:$0xff] %v4680_v26 }
 0x198   : > { %937 = vmax.xlane.f32.xlu0 %v4676_v21 }
 0x19b   : > { %v587_v25 = vpop.f32.mrf.mxu0 }
 0x19c   : > { %v4683_v27 = vadd.f32 %v4513_v44, %v587_v25 }
 0x19d   : > { %v862_v28 = vpop.f32.mrf.mxu1 }
 0x19e   : > { %6480 = vst [vmem:[#allocation42_spill] sm:$0xff] %v4683_v27  ;;  %v4687_v30 = vpack.c.bf16 %v4683_v27, %v4680_v26  ;;  %v4690_v33 = vadd.f32 %v4620_v42, %v862_v28 }
 0x1a0   : > { %6481 = vst [vmem:[#allocation43_spill] sm:$0xff] %v4687_v30  ;;  %901 = vmatmul.bf16.gmra.mxu1 %v4687_v30  ;;  %939 = vmax.xlane.f32.xlu1 %v4690_v33 }
 0x1a3   : > { %v590_v34 = vpop.f32.mrf.mxu0 }
 0x1a4   : > { %v4699_v41 = vadd.f32 %v4513_v44, %v590_v34 }
 0x1a5   : > { %v864_v35 = vpop.f32.mrf.mxu1 }
 0x1a6   : > { %v4695_v36 = vadd.f32 %v4620_v42, %v864_v35  ;;  %6482 = vst [vmem:[#allocation44_spill] sm:$0xff] %v4699_v41 }
 0x1a8   : > { %941 = vmax.xlane.f32.xlu2 %v4695_v36 }
 0x1ab   : > { %v592_v38 = vpop.f32.mrf.mxu0 }
 0x1ac   : > { %v4702_v43 = vadd.f32 %v4513_v44, %v592_v38 }
 0x1ad   : > { %v867_v50 = vpop.f32.mrf.mxu1 }
 0x1ae   : > { %6483 = vst [vmem:[#allocation45_spill] sm:$0xff] %v4702_v43  ;;  %v4706_v53 = vpack.c.bf16 %v4702_v43, %v4699_v41  ;;  %v4709_v57 = vadd.f32 %v4620_v42, %v867_v50 }
 0x1b0   : > { %6484 = vst [vmem:[#allocation46_spill] sm:$0xff] %v4706_v53  ;;  %906 = vmatmul.bf16.gmra.mxu1 %v4706_v53  ;;  %943 = vmax.xlane.f32.xlu0 %v4709_v57 }
 0x1b3   : > { %v595_v59 = vpop.f32.mrf.mxu0 }
 0x1b4   : > { %v4718_v10 = vadd.f32 %v4513_v44, %v595_v59 }
 0x1b5   : > { %v869_v1 = vpop.f32.mrf.mxu1 }
 0x1b6   : > { %v4714_v4 = vadd.f32 %v4620_v42, %v869_v1  ;;  %6485 = vst [vmem:[#allocation47_spill] sm:$0xff] %v4718_v10 }
 0x1b8   : > { %945 = vmax.xlane.f32.xlu1 %v4714_v4 }
 0x1bb   : > { %v597_v5 = vpop.f32.mrf.mxu0 }
 0x1bc   : > { %v4721_v13 = vadd.f32 %v4513_v44, %v597_v5 }
 0x1bd   : > { %v872_v19 = vpop.f32.mrf.mxu1 }
 0x1be   : > { %6486 = vst [vmem:[#allocation48_spill] sm:$0xff] %v4721_v13  ;;  %v4725_v20 = vpack.c.bf16 %v4721_v13, %v4718_v10  ;;  %v4728_v25 = vadd.f32 %v4620_v42, %v872_v19 }
 0x1c0   : > { %6487 = vst [vmem:[#allocation49_spill] sm:$0xff] %v4725_v20  ;;  %911 = vmatmul.bf16.gmra.mxu1 %v4725_v20  ;;  %947 = vmax.xlane.f32.xlu2 %v4728_v25 }
 0x1c3   : > { %v600_v28 = vpop.f32.mrf.mxu0 }
 0x1c4   : > { %v4737_v50 = vadd.f32 %v4513_v44, %v600_v28 }
 0x1c5   : > { %v874_v34 = vpop.f32.mrf.mxu1 }
 0x1c6   : > { %v4733_v35 = vadd.f32 %v4620_v42, %v874_v34  ;;  %6488 = vst [vmem:[#allocation50_spill] sm:$0xff] %v4737_v50 }
 0x1c8   : > { %949 = vmax.xlane.f32.xlu0 %v4733_v35 }
 0x1cb   : > { %v602_v38 = vpop.f32.mrf.mxu0 }
 0x1cc   : > { %v4740_v59 = vadd.f32 %v4513_v44, %v602_v38 }
 0x1cd   : > { %v877_v1 = vpop.f32.mrf.mxu1 }
 0x1ce   : > { %6489 = vst [vmem:[#allocation51_spill] sm:$0xff] %v4740_v59  ;;  %v4744_v5 = vpack.c.bf16 %v4740_v59, %v4737_v50  ;;  %v4747_v19 = vadd.f32 %v4620_v42, %v877_v1 }
 0x1d0   : > { %6490 = vst [vmem:[#allocation52_spill] sm:$0xff] %v4744_v5  ;;  %916 = vmatmul.bf16.gmra.mxu1 %v4744_v5  ;;  %951 = vmax.xlane.f32.xlu2 %v4747_v19 }
 0x1d3   : > { %v605_v34 = vpop.f32.mrf.mxu0 }
 0x1d4   : > { %v4756_v53 = vadd.f32 %v4513_v44, %v605_v34 }
 0x1d5   : > { %v879_v20 = vpop.f32.mrf.mxu1 }
 0x1d6   : > { %v4752_v28 = vadd.f32 %v4620_v42, %v879_v20  ;;  %6491 = vst [vmem:[#allocation53_spill] sm:$0xff] %v4756_v53 }
 0x1d8   : > { %953 = vmax.xlane.f32.xlu2 %v4752_v28 }
 0x1db   : > { %v607_v38 = vpop.f32.mrf.mxu0 }
 0x1dc   : > { %v4759_v30 = vadd.f32 %v4513_v44, %v607_v38 }
 0x1dd   : > { %v882_v1 = vpop.f32.mrf.mxu1 }
 0x1de   : > { %6492 = vst [vmem:[#allocation54_spill] sm:$0xff] %v4759_v30  ;;  %v4763_v5 = vpack.c.bf16 %v4759_v30, %v4756_v53  ;;  %v4766_v17 = vadd.f32 %v4620_v42, %v882_v1 }
 0x1e0   : > { %6493 = vst [vmem:[#allocation55_spill] sm:$0xff] %v4763_v5  ;;  %921 = vmatmul.bf16.gmra.mxu1 %v4763_v5  ;;  %955 = vmax.xlane.f32.xlu0 %v4766_v17 }
 0x1e3   : > { %v4816_v31 = vpop.xlane.xlu1 %927 }
 0x1e5   : > { %v884_v20 = vpop.f32.mrf.mxu1 }
 0x1e6   : > { %v4771_v2 = vadd.f32 %v4620_v42, %v884_v20 }
 0x1e8   : > { %957 = vmax.xlane.f32.xlu0 %v4771_v2 }
 0x1eb   : > { %v4800_v16 = vpop.xlane.xlu2 %929 }
 0x1ed   : > { %v887_v44 = vpop.f32.mrf.mxu1 }
 0x1ee   : > { %v4775_v34 = vadd.f32 %v4620_v42, %v887_v44 }
 0x1f0   : > { %959 = vmax.xlane.f32.xlu0 %v4775_v34 }
 0x1f5   : > { %v889_v38 = vpop.f32.mrf.mxu1 }
 0x1f6   : > { %v4779_v1 = vadd.f32 %v4620_v42, %v889_v38  ;;  %v4794_v38 = vpop.xlane.xlu0 %931 }
 0x1f8   : > { %961 = vmax.xlane.f32.xlu1 %v4779_v1 }
 0x1fb   : > { %v4827_v29 = vpop.xlane.xlu1 %933 }
 0x1fd   : > { %v892_v5 = vpop.f32.mrf.mxu1 }
 0x1fe   : > { %v4783_v51 = vadd.f32 %v4620_v42, %v892_v5 }
 0x200   : > { %963 = vmax.xlane.f32.xlu2 %v4783_v51 }
 0x205   : > { %v894_v20 = vpop.f32.mrf.mxu1 }
 0x206   : > { %v4787_v40 = vadd.f32 %v4620_v42, %v894_v20 }
 0x208   : > { %965 = vmax.xlane.f32.xlu0 %v4787_v40 }
 0x20b   : > { %v4802_v20 = vpop.xlane.xlu0 %937 }
 0x20d   : > { %v897_v44 = vpop.f32.mrf.mxu1 }
 0x20e   : > { %v4791_v32 = vadd.f32 %v4620_v42, %v897_v44  ;;  %v936_v44 = vpop.xlane.xlu2 %935 }
 0x210   : > { %967 = vmax.xlane.f32.xlu1 %v4791_v32 }
 0x215   : > { %v899_v24 = vpop.f32.mrf.mxu1 }
 0x216   : > { %v4797_v5 = vadd.f32 %v4620_v42, %v899_v24 }
 0x218   : > { %969 = vmax.xlane.f32.xlu2 %v4797_v5 }
 0x21b   : > { %v942_v53 = vpop.xlane.xlu2 %941 }
 0x21d   : > { %v902_v8 = vpop.f32.mrf.mxu1 }
 0x21e   : > { %v4805_v0 = vadd.f32 %v4620_v42, %v902_v8 }
 0x220   : > { %971 = vmax.xlane.f32.xlu0 %v4805_v0 }
 0x223   : > { %v944_v56 = vpop.xlane.xlu0 %943 }
 0x224   : > { %v999_v48 = vsub.f32 %v4709_v57, %v944_v56 }
 0x225   : > { %v904_v30 = vpop.f32.mrf.mxu1 }
 0x226   : > { %v1039_v39 = vmul.f32 1.442695, %v999_v48  ;;  %v4810_v24 = vadd.f32 %v4620_v42, %v904_v30 }
 0x228   : > { %3643 = vpow2.f32 %v1039_v39  ;;  %973 = vmax.xlane.f32.xlu1 %v4810_v24 }
 0x22d   : > { %v907_v37 = vpop.f32.mrf.mxu1 }
 0x22e   : > { %v4813_v59 = vpop.eup %3643  ;;  %v4820_v56 = vadd.f32 %v4620_v42, %v907_v37 }
 0x22f   : > { %1103 = vadd.xlane.f32.xlu2 %v4813_v59 }
 0x233   : > { %v948_v8 = vpop.xlane.xlu2 %947 }
 0x234   : > { %v1001_v50 = vsub.f32 %v4728_v25, %v948_v8 }
 0x235   : > { %v909_v48 = vpop.f32.mrf.mxu1 }
 0x236   : > { %v1043_v30 = vmul.f32 1.442695, %v1001_v50  ;;  %v4823_v39 = vadd.f32 %v4620_v42, %v909_v48  ;;  %v998_v50 = vsub.f32 %v4695_v36, %v942_v53  ;;  %v940_v48 = vpop.xlane.xlu1 %939 }
 0x237   : > { %975 = vmax.xlane.f32.xlu2 %v4820_v56 }
 0x238   : > { %3645 = vpow2.f32 %v1043_v30  ;;  %977 = vmax.xlane.f32.xlu0 %v4823_v39  ;;  %v1037_v10 = vmul.f32 1.442695, %v998_v50 }
 0x23b   : > { %v950_v57 = vpop.xlane.xlu0 %949 }
 0x23c   : > { %v1002_v13 = vsub.f32 %v4733_v35, %v950_v57  ;;  %v995_v57 = vsub.f32 %v4671_v18, %v936_v44 }
 0x23d   : > { %v912_v37 = vpop.f32.mrf.mxu1 }
 0x23e   : > { %v4830_v23 = vpop.eup %3645  ;;  %v1045_v25 = vmul.f32 1.442695, %v1002_v13  ;;  %v4836_v22 = vadd.f32 %v4620_v42, %v912_v37  ;;  %v946_v36 = vpop.xlane.xlu1 %945  ;;  %v1031_v53 = vmul.f32 1.442695, %v995_v57 }
 0x23f   : > { %1107 = vadd.xlane.f32.xlu1 %v4830_v23 }
 0x240   : > { %3647 = vpow2.f32 %v1045_v25 }
 0x243   : > { %v952_v8 = vpop.xlane.xlu2 %951 }
 0x244   : > { %v1003_v30 = vsub.f32 %v4747_v19, %v952_v8  ;;  %v1000_v8 = vsub.f32 %v4714_v4, %v946_v36  ;;  %v997_v36 = vsub.f32 %v4690_v33, %v940_v48 }
 0x245   : > { %v914_v13 = vpop.f32.mrf.mxu1 }
 0x246   : > { %v4838_v43 = vpop.eup %3647  ;;  %v1047_v35 = vmul.f32 1.442695, %v1003_v30  ;;  %v4844_v19 = vadd.f32 %v4620_v42, %v914_v13  ;;  %v1041_v44 = vmul.f32 1.442695, %v1000_v8 }
 0x247   : > { %1109 = vadd.xlane.f32.xlu2 %v4838_v43  ;;  %979 = vmax.xlane.f32.xlu1 %v4836_v22 }
 0x248   : > { %3649 = vpow2.f32 %v1047_v35 }
 0x249   : > { %3651 = vpow2.f32 %v1037_v10 }
 0x24a   : > { %3653 = vpow2.f32 %v1031_v53 }
 0x24b   : > { %v954_v37 = vpop.xlane.xlu2 %953  ;;  %3655 = vpow2.f32 %v1041_v44 }
 0x24c   : > { %v1004_v18 = vsub.f32 %v4752_v28, %v954_v37  ;;  %v1035_v28 = vmul.f32 1.442695, %v997_v36 }
 0x24d   : > { %v917_v10 = vpop.f32.mrf.mxu1 }
 0x24e   : > { %v4846_v25 = vpop.eup %3649  ;;  %v4856_v30 = vadd.f32 %v4620_v42, %v917_v10  ;;  %v1049_v57 = vmul.f32 1.442695, %v1004_v18 }
 0x24f   : > { %v4848_v50 = vpop.eup %3651  ;;  %981 = vmax.xlane.f32.xlu2 %v4844_v19  ;;  %1111 = vadd.xlane.f32.xlu0 %v4846_v25 }
 0x250   : > { %1101 = vadd.xlane.f32.xlu1 %v4848_v50  ;;  %v4859_v4 = vpop.eup %3653 }
 0x251   : > { %6494 = vst [vmem:[#allocation56_spill] sm:$0xff] %v4859_v4  ;;  %v4864_v53 = vpop.eup %3655 }
 0x253   : > { %v956_v35 = vpop.xlane.xlu0 %955 }
 0x254   : > { %v1005_v13 = vsub.f32 %v4766_v17, %v956_v35 }
 0x255   : > { %v919_v18 = vpop.f32.mrf.mxu1 }
 0x256   : > { %v1051_v15 = vmul.f32 1.442695, %v1005_v13  ;;  %v4877_v10 = vadd.f32 %v4620_v42, %v919_v18 }
 0x257   : > { %983 = vmax.xlane.f32.xlu0 %v4856_v30 }
 0x258   : > { %3657 = vpow2.f32 %v1051_v15  ;;  %1095 = vadd.xlane.f32.xlu1 %v4859_v4 }
 0x259   : > { %3659 = vpow2.f32 %v1049_v57 }
 0x25a   : > { %3661 = vpow2.f32 %v1035_v28 }
 0x25b   : > { %v958_v37 = vpop.xlane.xlu0 %957 }
 0x25c   : > { %v1006_v33 = vsub.f32 %v4771_v2, %v958_v37 }
 0x25d   : > { %v922_v44 = vpop.f32.mrf.mxu1 }
 0x25e   : > { %v4866_v8 = vpop.eup %3657  ;;  %v1053_v15 = vmul.f32 1.442695, %v1006_v33  ;;  %v4884_v13 = vadd.f32 %v4620_v42, %v922_v44 }
 0x25f   : > { %v4868_v17 = vpop.eup %3659  ;;  %1115 = vadd.xlane.f32.xlu2 %v4866_v8  ;;  %1105 = vadd.xlane.f32.xlu0 %v4864_v53 }
 0x260   : > { %1113 = vadd.xlane.f32.xlu1 %v4868_v17  ;;  %v4874_v48 = vpop.eup %3661  ;;  %3663 = vpow2.f32 %v1053_v15 }
 0x263   : > { %v4892_v36 = vpop.xlane.xlu0 %959 }
 0x265   : > { %v924_v2 = vpop.f32.mrf.mxu1 }
 0x266   : > { %v4881_v35 = vpop.eup %3663  ;;  %v4889_v57 = vadd.f32 %v4620_v42, %v924_v2 }
 0x267   : > { %1099 = vadd.xlane.f32.xlu0 %v4874_v48 }
 0x268   : > { %985 = vmax.xlane.f32.xlu1 %v4877_v10 }
 0x26b   : > { %v4894_v28 = vpop.xlane.xlu1 %961 }
 0x26f   : > { %1117 = vadd.xlane.f32.xlu0 %v4881_v35 }
 0x270   : > { %987 = vmax.xlane.f32.xlu1 %v4884_v13 }
 0x273   : > { %v4898_v18 = vpop.xlane.xlu2 %963 }
 0x278   : > { %989 = vmax.xlane.f32.xlu1 %v4889_v57 }
 0x27b   : > { %v4896_v37 = vpop.xlane.xlu0 %965 }
 0x283   : > { %v968_v33 = vpop.xlane.xlu1 %967 }
 0x28b   : > { %v4901_v14 = vpop.xlane.xlu2 %969 }
 0x293   : > { %v972_v15 = vpop.xlane.xlu0 %971 }
 0x294   : > { %v1013_v44 = vsub.f32 %v4805_v0, %v972_v15 }
 0x296   : > { %v1067_v41 = vmul.f32 1.442695, %v1013_v44 }
 0x298   : > { %3665 = vpow2.f32 %v1067_v41 }
 0x29b   : > { %v974_v42 = vpop.xlane.xlu1 %973 }
 0x29c   : > { %v1014_v2 = vsub.f32 %v4810_v24, %v974_v42 }
 0x29e   : > { %v4904_v4 = vpop.eup %3665  ;;  %v1069_v27 = vmul.f32 1.442695, %v1014_v2 }
 0x29f   : > { %6495 = vst [vmem:[#allocation57_spill] sm:$0xff] %v4904_v4  ;;  %1131 = vadd.xlane.f32.xlu2 %v4904_v4 }
 0x2a0   : > { %3667 = vpow2.f32 %v1069_v27 }
 0x2a2   : > { %v4907_v7 = vpop.xlane.xlu2 %1103 }
 0x2a6   : > { %v4909_v26 = vpop.eup %3667 }
 0x2a7   : > { %6496 = vst [vmem:[#allocation58_spill] sm:$0xff] %v4909_v26  ;;  %1133 = vadd.xlane.f32.xlu0 %v4909_v26 }
 0x2aa   : > { %v976_v0 = vpop.xlane.xlu2 %975 }
 0x2ab   : > { %v1015_v41 = vsub.f32 %v4820_v56, %v976_v0  ;;  %v978_v15 = vpop.xlane.xlu0 %977 }
 0x2ac   : > { %v1016_v44 = vsub.f32 %v4823_v39, %v978_v15 }
 0x2ad   : > { %v1071_v6 = vmul.f32 1.442695, %v1015_v41 }
 0x2ae   : > { %v1073_v24 = vmul.f32 1.442695, %v1016_v44 }
 0x2af   : > { %3669 = vpow2.f32 %v1071_v6 }
 0x2b0   : > { %3671 = vpow2.f32 %v1073_v24 }
 0x2b2   : > { %v1108_v42 = vpop.xlane.xlu1 %1107 }
 0x2b5   : > { %v4914_v2 = vpop.eup %3669 }
 0x2b6   : > { %6497 = vst [vmem:[#allocation59_spill] sm:$0xff] %v4914_v2  ;;  %v4916_v27 = vpop.eup %3671  ;;  %1135 = vadd.xlane.f32.xlu1 %v4914_v2 }
 0x2b7   : > { %6498 = vst [vmem:[#allocation60_spill] sm:$0xff] %v4916_v27  ;;  %1137 = vadd.xlane.f32.xlu2 %v4916_v27 }
 0x2ba   : > { %v1110_v4 = vpop.xlane.xlu2 %1109  ;;  %v980_v26 = vpop.xlane.xlu1 %979 }
 0x2bb   : > { %v1017_v56 = vsub.f32 %v4836_v22, %v980_v26 }
 0x2bd   : > { %v1075_v0 = vmul.f32 1.442695, %v1017_v56 }
 0x2bf   : > { %3673 = vpow2.f32 %v1075_v0 }
 0x2c2   : > { %v1112_v39 = vpop.xlane.xlu0 %1111  ;;  %v982_v41 = vpop.xlane.xlu2 %981 }
 0x2c3   : > { %v1018_v6 = vsub.f32 %v4844_v19, %v982_v41  ;;  %v4922_v15 = vpop.xlane.xlu1 %1101 }
 0x2c5   : > { %v4924_v44 = vpop.eup %3673  ;;  %v1077_v24 = vmul.f32 1.442695, %v1018_v6 }
 0x2c6   : > { %6499 = vst [vmem:[#allocation61_spill] sm:$0xff] %v4924_v44  ;;  %1139 = vadd.xlane.f32.xlu0 %v4924_v44 }
 0x2c7   : > { %3675 = vpow2.f32 %v1077_v24 }
 0x2ca   : > { %v984_v2 = vpop.xlane.xlu0 %983 }
 0x2cb   : > { %v1019_v27 = vsub.f32 %v4856_v30, %v984_v2  ;;  %v4928_v12 = vpop.xlane.xlu1 %1095  ;;  %v1011_v30 = vsub.f32 %v4791_v32, %v968_v33  ;;  %v1012_v32 = vsub.f32 %v4797_v5, %v4901_v14 }
 0x2cc   : > { %6500 = vst [vmem:[#allocation62_spill] sm:$0xff] %v4928_v12  ;;  %v994_v12 = vsub.f32 %v4657_v9, %v4827_v29 }
 0x2cd   : > { %v4930_v22 = vpop.eup %3675  ;;  %v1079_v26 = vmul.f32 1.442695, %v1019_v27  ;;  %v1063_v27 = vmul.f32 1.442695, %v1011_v30  ;;  %v1065_v29 = vmul.f32 1.442695, %v1012_v32 }
 0x2ce   : > { %6501 = vst [vmem:[#allocation63_spill] sm:$0xff] %v4930_v22  ;;  %1141 = vadd.xlane.f32.xlu1 %v4930_v22 }
 0x2cf   : > { %3677 = vpow2.f32 %v1079_v26 }
 0x2d2   : > { %v1106_v19 = vpop.xlane.xlu0 %1105  ;;  %v1116_v2 = vpop.xlane.xlu2 %1115 }
 0x2d3   : > { %v1114_v56 = vpop.xlane.xlu1 %1113 }
 0x2d5   : > { %v4933_v0 = vpop.eup %3677 }
 0x2d6   : > { %6502 = vst [vmem:[#allocation64_spill] sm:$0xff] %v4933_v0  ;;  %1143 = vadd.xlane.f32.xlu2 %v4933_v0 }
 0x2da   : > { %v1100_v41 = vpop.xlane.xlu0 %1099 }
 0x2db   : > { %v986_v6 = vpop.xlane.xlu1 %985 }
 0x2dc   : > { %v1020_v24 = vsub.f32 %v4877_v10, %v986_v6 }
 0x2de   : > { %v1081_v44 = vmul.f32 1.442695, %v1020_v24 }
 0x2e0   : > { %3679 = vpow2.f32 %v1081_v44 }
 0x2e1   : > { %3681 = vrcp.f32 %v1116_v2 }
 0x2e2   : > { %3683 = vrcp.f32 %v1114_v56  ;;  %v1118_v22 = vpop.xlane.xlu0 %1117 }
 0x2e3   : > { %3685 = vrcp.f32 %v1118_v22  ;;  %v988_v26 = vpop.xlane.xlu1 %987  ;;  %v1029_v22 = vmul.f32 1.442695, %v994_v12 }
 0x2e4   : > { %v1021_v0 = vsub.f32 %v4884_v13, %v988_v26  ;;  %3687 = vrcp.f32 %v1112_v39 }
 0x2e5   : > { %3689 = vpow2.f32 %v1063_v27 }
 0x2e6   : > { %v4941_v63 = vpop.eup %3679  ;;  %v1083_v10 = vmul.f32 1.442695, %v1021_v0  ;;  %3691 = vrcp.f32 %v1110_v4  ;;  %v991_v0 = vsub.f32 %v4633_v52, %v4816_v31 }
 0x2e7   : > { %v3682_v33 = vpop.eup %3681  ;;  %1145 = vadd.xlane.f32.xlu0 %v4941_v63 }
 0x2e8   : > { %v3684_v44 = vpop.eup %3683  ;;  %3693 = vpow2.f32 %v1083_v10  ;;  %v1197_v9 = vmul.f32 %v3682_v33, %v4866_v8 }
 0x2e9   : > { %v3686_v56 = vpop.eup %3685  ;;  %3695 = vrcp.f32 %v1108_v42  ;;  %v1196_v4 = vmul.f32 %v3684_v44, %v4868_v17 }
 0x2ea   : > { %v1198_v13 = vmul.f32 %v3686_v56, %v4881_v35  ;;  %v3688_v39 = vpop.eup %3687  ;;  %3697 = vrcp.f32 %v1106_v19 }
 0x2eb   : > { %v990_v6 = vpop.xlane.xlu1 %989  ;;  %v4948_v24 = vpop.eup %3689  ;;  %3699 = vpow2.f32 %v1029_v22  ;;  %v1195_v35 = vmul.f32 %v3688_v39, %v4846_v25  ;;  %v996_v25 = vsub.f32 %v4676_v21, %v4802_v20 }
 0x2ec   : > { %v1022_v14 = vsub.f32 %v4889_v57, %v990_v6  ;;  %v1222_v5 = vpack.c.bf16 %v1198_v13, %v1197_v9  ;;  %v3692_v12 = vpop.eup %3691  ;;  %3701 = vrcp.f32 %v4907_v7  ;;  %v1009_v7 = vsub.f32 %v4783_v51, %v4898_v18 }
 0x2ed   : > { %3703 = vpow2.f32 %v1065_v29  ;;  %v1221_v17 = vpack.c.bf16 %v1196_v4, %v1195_v35  ;;  %v1194_v57 = vmul.f32 %v3692_v12, %v4838_v43  ;;  %v1033_v32 = vmul.f32 1.442695, %v996_v25 }
 0x2ee   : > { %v4953_v42 = vpop.eup %3693  ;;  %v1085_v8 = vmul.f32 1.442695, %v1022_v14  ;;  %1231 = vmatpush.bf16.msrb.mxu0 %v1222_v5  ;;  %3424 = vmatpush.bf16.msra.mxu2 %v1222_v5  ;;  %3705 = vrcp.f32 %v1100_v41  ;;  %v1023_v41 = vmul.f32 1.442695, %v991_v0  ;;  %v1059_v51 = vmul.f32 1.442695, %v1009_v7 }
 0x2ef   : > { %v3696_v19 = vpop.eup %3695  ;;  %1127 = vadd.xlane.f32.xlu0 %v4948_v24  ;;  %1147 = vadd.xlane.f32.xlu1 %v4953_v42  ;;  %v1007_v13 = vsub.f32 %v4775_v34, %v4892_v36  ;;  %v3530_v14 = vpack.i.bf16 %v4626_v49, %v4519_v47  ;;  %v3532_v36 = vpack.i.bf16 %v4642_v60, %v4529_v54  ;;  %v6503_v0 = vld [vmem:[#allocation20_spill] sm:$0xff]  ;;  %v6504_v7 = vld [vmem:[#allocation39_spill] sm:$0xff] }
 0x2f0   : > { %3707 = vpow2.f32 %v1085_v8  ;;  %v3698_v30 = vpop.eup %3697  ;;  %v1193_v31 = vmul.f32 %v3696_v19, %v4830_v23  ;;  %v992_v23 = vsub.f32 %v4638_v58, %v4800_v16  ;;  %v3534_v8 = vpack.i.bf16 %v4645_v61, %v4532_v55  ;;  %v6505_v55 = vld [vmem:[#allocation22_spill] sm:$0xff]  ;;  %v6506_v61 = vld [vmem:[#allocation41_spill] sm:$0xff] }
 0x2f1   : > { %3709 = vrcp.f32 %v4922_v15  ;;  %v4966_v2 = vpop.eup %3699  ;;  %v1192_v43 = vmul.f32 %v3698_v30, %v4864_v53  ;;  %v1008_v53 = vsub.f32 %v4779_v1, %v4894_v28  ;;  %v1055_v39 = vmul.f32 1.442695, %v1007_v13 }
 0x2f2   : > { %1232 = vmatpush.bf16.msrb.mxu0 %v1221_v17  ;;  %3425 = vmatpush.bf16.msra.mxu2 %v1221_v17  ;;  %v3702_v52 = vpop.eup %3701  ;;  %v1220_v18 = vpack.c.bf16 %v1194_v57, %v1193_v31  ;;  %3711 = vpow2.f32 %v1023_v41  ;;  %v1025_v58 = vmul.f32 1.442695, %v992_v23  ;;  %v3538_v54 = vpack.i.bf16 %v6504_v7, %v6503_v0  ;;  %v6507_v31 = vld [vmem:[#allocation62_spill] sm:$0xff] }
 0x2f3   : > { %v4969_v27 = vpop.eup %3703  ;;  %v1191_v21 = vmul.f32 %v3702_v52, %v4813_v59  ;;  %3713 = vpow2.f32 %v1059_v51  ;;  %v993_v59 = vsub.f32 %v4652_v3, %v4794_v38  ;;  %v1057_v44 = vmul.f32 1.442695, %v1008_v53  ;;  %v6508_v53 = vld [vmem:[#allocation23_spill] sm:$0xff] }
 0x2f4   : > { %v3706_v26 = vpop.eup %3705  ;;  %3715 = vpow2.f32 %v1033_v32  ;;  %v1010_v3 = vsub.f32 %v4787_v40, %v4896_v37  ;;  %v3528_v37 = vpack.i.bf16 %v4623_v45, %v4516_v46  ;;  %v3536_v45 = vpack.i.bf16 %v4661_v11, %v4542_v62 }
 0x2f5   : > { %v1219_v15 = vpack.c.bf16 %v1192_v43, %v1191_v21  ;;  %v1189_v33 = vmul.f32 %v3706_v26, %v4874_v48  ;;  %v1027_v1 = vmul.f32 1.442695, %v993_v59  ;;  %3717 = vpow2.f32 %v1025_v58  ;;  %v6510_v59 = vld [vmem:[#allocation64_spill] sm:$0xff] }
 0x2f6   : > { %v4972_v10 = vpop.eup %3707  ;;  %1233 = vmatpush.bf16.msrb.mxu0 %v1220_v18  ;;  %3426 = vmatpush.bf16.msra.mxu2 %v1220_v18  ;;  %3719 = vpow2.f32 %v1057_v44  ;;  %v3540_v30 = vpack.i.bf16 %v6506_v61, %v6505_v55 }
 0x2f7   : > { %v3710_v20 = vpop.eup %3709  ;;  %1093 = vadd.xlane.f32.xlu0 %v4966_v2  ;;  %1129 = vadd.xlane.f32.xlu1 %v4969_v27  ;;  %3721 = vpow2.f32 %v1027_v1  ;;  %v6511_v1 = vld [vmem:[#allocation63_spill] sm:$0xff] }
 0x2f8   : > { %1149 = vadd.xlane.f32.xlu2 %v4972_v10  ;;  %v1190_v16 = vmul.f32 %v3710_v20, %v4848_v50  ;;  %v4986_v56 = vpop.eup %3711  ;;  %v1061_v50 = vmul.f32 1.442695, %v1010_v3 }
 0x2f9   : > { %v4988_v28 = vpop.eup %3713 }
 0x2fa   : > { %1234 = vmatpush.bf16.msrb.mxu0 %v1219_v15  ;;  %3427 = vmatpush.bf16.msra.mxu2 %v1219_v15  ;;  %v1218_v22 = vpack.c.bf16 %v1190_v16, %v1189_v33  ;;  %v4990_v29 = vpop.eup %3715  ;;  %3723 = vpow2.f32 %v1061_v50  ;;  %v6509_v15 = vld [vmem:[#allocation42_spill] sm:$0xff] }
 0x2fb   : > { %v4997_v38 = vpop.eup %3717  ;;  %3725 = vpow2.f32 %v1055_v39  ;;  %v3542_v33 = vpack.i.bf16 %v6509_v15, %v6508_v53  ;;  %v6512_v39 = vld [vmem:[#allocation56_spill] sm:$0xff] }
 0x2fc   : > { %v4999_v48 = vpop.eup %3719 }
 0x2fd   : > { %v5001_v9 = vpop.eup %3721 }
 0x2fe   : > { %1235 = vmatpush.bf16.msrb.mxu0 %v1218_v22  ;;  %3428 = vmatpush.bf16.msra.mxu2 %v1218_v22 }
 0x2ff   : > { %1087 = vadd.xlane.f32.xlu0 %v4986_v56  ;;  %1123 = vadd.xlane.f32.xlu1 %v4988_v28 }
 0x300   : > { %1097 = vadd.xlane.f32.xlu2 %v4990_v29  ;;  %v5008_v6 = vpop.eup %3723 }
 0x301   : > { %v5011_v40 = vpop.eup %3725 }
 0x307   : > { %1121 = vadd.xlane.f32.xlu0 %v4999_v48  ;;  %1089 = vadd.xlane.f32.xlu1 %v4997_v38 }
 0x308   : > { %1091 = vadd.xlane.f32.xlu2 %v5001_v9 }
 0x310   : > { %1125 = vadd.xlane.f32.xlu2 %v5008_v6 }
 0x312   : > { %v1132_v4 = vpop.xlane.xlu2 %1131 }
 0x318   : > { %1119 = vadd.xlane.f32.xlu2 %v5011_v40 }
 0x31a   : > { %v1134_v34 = vpop.xlane.xlu0 %1133 }
 0x329   : > { %v1136_v5 = vpop.xlane.xlu1 %1135 }
 0x32a   : > { %v1138_v19 = vpop.xlane.xlu2 %1137 }
 0x339   : > { %v1140_v12 = vpop.xlane.xlu0 %1139 }
 0x341   : > { %3529 = vxpose.xlu1.b32.start [1/16] %v3528_v37, 128  ;;  %v1142_v35 = vpop.xlane.xlu1 %1141 }
 0x349   : > { %3531 = vxpose.xlu1.b32.cont [2/16] %v3530_v14, 128  ;;  %v1144_v49 = vpop.xlane.xlu2 %1143 }
 0x351   : > { %3533 = vxpose.xlu1.b32.cont [3/16] %v3532_v36, 128  ;;  %v6513_v36 = vld [vmem:[#allocation61_spill] sm:$0xff] }
 0x359   : > { %3535 = vxpose.xlu1.b32.cont [4/16] %v3534_v8, 128  ;;  %v6514_v8 = vld [vmem:[#allocation59_spill] sm:$0xff] }
 0x35a   : > { %v1146_v46 = vpop.xlane.xlu0 %1145 }
 0x361   : > { %3537 = vxpose.xlu1.b32.cont [5/16] %v3536_v45, 128 }
 0x362   : > { %v1148_v47 = vpop.xlane.xlu1 %1147  ;;  %v1128_v60 = vpop.xlane.xlu0 %1127 }
 0x363   : > { %3727 = vrcp.f32 %v1148_v47  ;;  %v6516_v47 = vld [vmem:[#allocation25_spill] sm:$0xff] }
 0x364   : > { %3729 = vrcp.f32 %v1146_v46 }
 0x369   : > { %3539 = vxpose.xlu1.b32.cont [6/16] %v3538_v54, 128  ;;  %v3728_v25 = vpop.eup %3727 }
 0x36a   : > { %v1130_v17 = vpop.xlane.xlu1 %1129  ;;  %v3730_v62 = vpop.eup %3729  ;;  %v1213_v18 = vmul.f32 %v3728_v25, %v4953_v42 }
 0x36b   : > { %v1150_v57 = vpop.xlane.xlu2 %1149  ;;  %v1094_v11 = vpop.xlane.xlu0 %1093  ;;  %v1212_v21 = vmul.f32 %v3730_v62, %v4941_v63 }
 0x36c   : > { %3731 = vrcp.f32 %v1150_v57  ;;  %v6518_v57 = vld [vmem:[#allocation58_spill] sm:$0xff] }
 0x36d   : > { %3733 = vrcp.f32 %v1144_v49  ;;  %v6517_v49 = vld [vmem:[#allocation44_spill] sm:$0xff] }
 0x36e   : > { %3735 = vrcp.f32 %v6507_v31  ;;  %v3544_v0 = vpack.i.bf16 %v6517_v49, %v6516_v47 }
 0x36f   : > { %3737 = vrcp.f32 %v1142_v35 }
 0x370   : > { %3739 = vrcp.f32 %v1136_v5 }
 0x371   : > { %3541 = vxpose.xlu1.b32.cont [7/16] %v3540_v30, 128  ;;  %3741 = vrcp.f32 %v1140_v12 }
 0x372   : > { %v3732_v52 = vpop.eup %3731  ;;  %v1124_v41 = vpop.xlane.xlu1 %1123 }
 0x373   : > { %v1098_v51 = vpop.xlane.xlu2 %1097  ;;  %v1214_v43 = vmul.f32 %v3732_v52, %v4972_v10  ;;  %v3734_v26 = vpop.eup %3733 }
 0x374   : > { %3743 = vrcp.f32 %v1098_v51  ;;  %v3736_v20 = vpop.eup %3735  ;;  %v1211_v16 = vmul.f32 %v3734_v26, %v6510_v59  ;;  %v1088_v50 = vpop.xlane.xlu0 %1087  ;;  %v6520_v26 = vld [vmem:[#allocation26_spill] sm:$0xff] }
 0x375   : > { %3745 = vrcp.f32 %v1138_v19  ;;  %v1230_v32 = vpack.c.bf16 %v1214_v43, %v1213_v18  ;;  %v3738_v23 = vpop.eup %3737  ;;  %v1187_v37 = vmul.f32 %v3736_v20, %v6512_v39  ;;  %v6515_v19 = vld [vmem:[#allocation60_spill] sm:$0xff] }
 0x376   : > { %v3740_v58 = vpop.eup %3739  ;;  %3747 = vrcp.f32 %v1132_v4  ;;  %v1229_v10 = vpack.c.bf16 %v1212_v21, %v1211_v16  ;;  %v1210_v63 = vmul.f32 %v3738_v23, %v6511_v1  ;;  %v6522_v16 = vld [vmem:[#allocation28_spill] sm:$0xff] }
 0x377   : > { %1280 = vmatpush.bf16.msrb.mxu1 %v1230_v32  ;;  %3432 = vmatpush.bf16.msra.mxu3 %v1230_v32  ;;  %v3742_v42 = vpop.eup %3741  ;;  %3749 = vrcp.f32 %v1134_v34  ;;  %v1207_v35 = vmul.f32 %v3740_v58, %v6514_v8  ;;  %v6521_v32 = vld [vmem:[#allocation45_spill] sm:$0xff]  ;;  %v6523_v58 = vld [vmem:[#allocation47_spill] sm:$0xff]  ;;  %v6528_v39 = vld [vmem:[#allocation32_spill] sm:$0xff] }
 0x378   : > { %3751 = vrcp.f32 %v1094_v11  ;;  %v1209_v34 = vmul.f32 %v3742_v42, %v6513_v36  ;;  %v3546_v21 = vpack.i.bf16 %v6521_v32, %v6520_v26  ;;  %v3548_v42 = vpack.i.bf16 %v6523_v58, %v6522_v16  ;;  %v6530_v36 = vld [vmem:[#allocation34_spill] sm:$0xff] }
 0x379   : > { %3543 = vxpose.xlu1.b32.cont [8/16] %v3542_v33, 128  ;;  %3753 = vrcp.f32 %v1130_v17 }
 0x37a   : > { %v3744_v44 = vpop.eup %3743  ;;  %v1090_v22 = vpop.xlane.xlu1 %1089  ;;  %v1228_v12 = vpack.c.bf16 %v1210_v63, %v1209_v34  ;;  %v6525_v63 = vld [vmem:[#allocation48_spill] sm:$0xff]  ;;  %v6531_v34 = vld [vmem:[#allocation53_spill] sm:$0xff] }
 0x37b   : > { %v3746_v3 = vpop.eup %3745  ;;  %v1092_v13 = vpop.xlane.xlu2 %1091  ;;  %1281 = vmatpush.bf16.msrb.mxu1 %v1229_v10  ;;  %3433 = vmatpush.bf16.msra.mxu3 %v1229_v10  ;;  %v1188_v14 = vmul.f32 %v3744_v44, %v4990_v29 }
 0x37c   : > { %3755 = vrcp.f32 %v1092_v13  ;;  %v3748_v4 = vpop.eup %3747  ;;  %v1208_v46 = vmul.f32 %v3746_v3, %v6515_v19  ;;  %v1122_v20 = vpop.xlane.xlu0 %1121  ;;  %v6526_v3 = vld [vmem:[#allocation31_spill] sm:$0xff] }
 0x37d   : > { %3757 = vrcp.f32 %v1090_v22  ;;  %v1217_v5 = vpack.c.bf16 %v1188_v14, %v1187_v37  ;;  %v3750_v45 = vpop.eup %3749  ;;  %v6529_v37 = vld [vmem:[#allocation51_spill] sm:$0xff] }
 0x37e   : > { %3759 = vrcp.f32 %v1088_v50  ;;  %v3752_v29 = vpop.eup %3751  ;;  %v1227_v17 = vpack.c.bf16 %v1208_v46, %v1207_v35  ;;  %v1206_v55 = vmul.f32 %v3750_v45, %v6518_v57  ;;  %v6527_v50 = vld [vmem:[#allocation50_spill] sm:$0xff]  ;;  %v3554_v14 = vpack.i.bf16 %v6529_v37, %v6528_v39 }
 0x37f   : > { %3761 = vrcp.f32 %v1128_v60  ;;  %1236 = vmatpush.bf16.msrb.mxu0 %v1217_v5  ;;  %3429 = vmatpush.bf16.msra.mxu2 %v1217_v5  ;;  %v3754_v7 = vpop.eup %3753  ;;  %v1186_v31 = vmul.f32 %v3752_v29, %v4966_v2  ;;  %v6519_v60 = vld [vmem:[#allocation57_spill] sm:$0xff]  ;;  %v3552_v13 = vpack.i.bf16 %v6527_v50, %v6526_v3  ;;  %v6533_v5 = vld [vmem:[#allocation54_spill] sm:$0xff] }
 0x380   : > { %1282 = vmatpush.bf16.msrb.mxu1 %v1228_v12  ;;  %3434 = vmatpush.bf16.msra.mxu3 %v1228_v12  ;;  %3763 = vrcp.f32 %v1124_v41  ;;  %v1205_v11 = vmul.f32 %v3748_v4, %v6519_v60  ;;  %v1204_v43 = vmul.f32 %v3754_v7, %v4969_v27 }
 0x381   : > { %3545 = vxpose.xlu1.b32.cont [9/16] %v3544_v0, 128 }
 0x382   : > { %v3756_v54 = vpop.eup %3755  ;;  %v1226_v41 = vpack.c.bf16 %v1206_v55, %v1205_v11 }
 0x383   : > { %v3758_v61 = vpop.eup %3757  ;;  %v1126_v30 = vpop.xlane.xlu2 %1125  ;;  %v1185_v25 = vmul.f32 %v3756_v54, %v5001_v9 }
 0x384   : > { %v3760_v62 = vpop.eup %3759  ;;  %3765 = vrcp.f32 %v1126_v30  ;;  %1283 = vmatpush.bf16.msrb.mxu1 %v1227_v17  ;;  %3435 = vmatpush.bf16.msra.mxu3 %v1227_v17  ;;  %v1184_v18 = vmul.f32 %v3758_v61, %v4997_v38 }
 0x385   : > { %v3762_v52 = vpop.eup %3761  ;;  %v1216_v51 = vpack.c.bf16 %v1186_v31, %v1185_v25  ;;  %v1183_v2 = vmul.f32 %v3760_v62, %v4986_v56  ;;  %3767 = vrcp.f32 %v1122_v20 }
 0x386   : > { %v3764_v9 = vpop.eup %3763  ;;  %v1203_v23 = vmul.f32 %v3762_v52, %v4948_v24 }
 0x387   : > { %1237 = vmatpush.bf16.msrb.mxu0 %v1216_v51  ;;  %3430 = vmatpush.bf16.msra.mxu2 %v1216_v51  ;;  %v1215_v53 = vpack.c.bf16 %v1184_v18, %v1183_v2  ;;  %v1201_v27 = vmul.f32 %v3764_v9, %v4988_v28  ;;  %v6524_v28 = vld [vmem:[#allocation29_spill] sm:$0xff] }
 0x388   : > { %1284 = vmatpush.bf16.msrb.mxu1 %v1226_v41  ;;  %3436 = vmatpush.bf16.msra.mxu3 %v1226_v41  ;;  %v1225_v38 = vpack.c.bf16 %v1204_v43, %v1203_v23 }
 0x389   : > { %3547 = vxpose.xlu1.b32.cont [10/16] %v3546_v21, 128 }
 0x38a   : > { %v3766_v15 = vpop.eup %3765 }
 0x38b   : > { %v1120_v33 = vpop.xlane.xlu2 %1119  ;;  %1238 = vmatpush.bf16.msrb.mxu0 %v1215_v53  ;;  %3431 = vmatpush.bf16.msra.mxu2 %v1215_v53  ;;  %v1202_v59 = vmul.f32 %v3766_v15, %v5008_v6  ;;  %v3768_v24 = vpop.eup %3767  ;;  %v3550_v6 = vpack.i.bf16 %v6525_v63, %v6524_v28 }
 0x38c   : > { %3769 = vrcp.f32 %v1120_v33  ;;  %1285 = vmatpush.bf16.msrb.mxu1 %v1225_v38  ;;  %3437 = vmatpush.bf16.msra.mxu3 %v1225_v38  ;;  %v1200_v22 = vmul.f32 %v3768_v24, %v4999_v48  ;;  %v6532_v48 = vld [vmem:[#allocation35_spill] sm:$0xff] }
 0x38d   : > { %v1224_v56 = vpack.c.bf16 %v1202_v59, %v1201_v27  ;;  %v3558_v4 = vpack.i.bf16 %v6533_v5, %v6532_v48 }
 0x390   : > { %1286 = vmatpush.bf16.msrb.mxu1 %v1224_v56  ;;  %3438 = vmatpush.bf16.msra.mxu3 %v1224_v56 }
 0x391   : > { %3549 = vxpose.xlu1.b32.cont [11/16] %v3548_v42, 128 }
 0x392   : > { %v3770_v10 = vpop.eup %3769 }
 0x393   : > { %v1199_v44 = vmul.f32 %v3770_v10, %v5011_v40  ;;  %v3556_v40 = vpack.i.bf16 %v6531_v34, %v6530_v36 }
 0x395   : > { %v1223_v1 = vpack.c.bf16 %v1200_v22, %v1199_v44 }
 0x397   : > { %1287 = vmatpush.bf16.msrb.mxu1 %v1223_v1  ;;  %3439 = vmatpush.bf16.msra.mxu3 %v1223_v1 }
 0x399   : > { %3551 = vxpose.xlu1.b32.cont [12/16] %v3550_v6, 128 }
 0x3a1   : > { %3553 = vxpose.xlu1.b32.cont [13/16] %v3552_v13, 128 }
 0x3a9   : > { %3555 = vxpose.xlu1.b32.cont [14/16] %v3554_v14, 128 }
 0x3b1   : > { %3557 = vxpose.xlu1.b32.cont [15/16] %v3556_v40, 128 }
 0x3b9   : > { %3559 = vxpose.xlu1.b32.end [16/16] %v3558_v4, 128 }
 0x3e5   : > { %v3560_v12 = vpop.trf.xlu1 }
 0x3e6   : > { %v3564_v8 = vunpack.i.h.bf16 %v3560_v12  ;;  %v3561_v35 = vunpack.i.l.bf16 %v3560_v12 }
 0x3ed   : > { %v3565_v19 = vpop.trf.xlu1 }
 0x3ee   : > { %v3569_v46 = vunpack.i.h.bf16 %v3565_v19  ;;  %v3566_v45 = vunpack.i.l.bf16 %v3565_v19 }
 0x3f0   : > { %v5069_v47 = vpack.c.bf16 %v3566_v45, %v3561_v35  ;;  %v5071_v49 = vpack.c.bf16 %v3569_v46, %v3564_v8 }
 0x3f2   : > { %1239 = vmatmul.bf16.vlgmr.msrb.gmra.mxu0 %v5069_v47  ;;  %1288 = vmatmul.bf16.vlgmr.msrb.gmra.mxu1 %v5071_v49 }
 0x3f5   : > { %v3570_v0 = vpop.trf.xlu1 }
 0x3f6   : > { %v3574_v29 = vunpack.i.h.bf16 %v3570_v0  ;;  %v3571_v7 = vunpack.i.l.bf16 %v3570_v0 }
 0x3fd   : > { %v3575_v54 = vpop.trf.xlu1 }
 0x3fe   : > { %v3579_v17 = vunpack.i.h.bf16 %v3575_v54  ;;  %v3576_v57 = vunpack.i.l.bf16 %v3575_v54 }
 0x400   : > { %v5075_v55 = vpack.c.bf16 %v3576_v57, %v3571_v7  ;;  %v5077_v61 = vpack.c.bf16 %v3579_v17, %v3574_v29 }
 0x402   : > { %6534 = vst [vmem:[#allocation20_spill] sm:$0xff] %v5077_v61  ;;  %1244 = vmatmul.bf16.gmra.mxu0 %v5075_v55  ;;  %1293 = vmatmul.bf16.gmra.mxu1 %v5077_v61 }
 0x405   : > { %v3580_v30 = vpop.trf.xlu1 }
 0x406   : > { %v3584_v25 = vunpack.i.h.bf16 %v3580_v30  ;;  %v3581_v31 = vunpack.i.l.bf16 %v3580_v30 }
 0x40d   : > { %v3585_v62 = vpop.trf.xlu1 }
 0x40e   : > { %v3589_v60 = vunpack.i.h.bf16 %v3585_v62  ;;  %v3586_v11 = vunpack.i.l.bf16 %v3585_v62 }
 0x410   : > { %v5081_v52 = vpack.c.bf16 %v3586_v11, %v3581_v31  ;;  %v5083_v51 = vpack.c.bf16 %v3589_v60, %v3584_v25 }
 0x412   : > { %6535 = vst [vmem:[#allocation39_spill] sm:$0xff] %v5081_v52  ;;  %1249 = vmatmul.bf16.gmra.mxu0 %v5081_v52  ;;  %1298 = vmatmul.bf16.gmra.mxu1 %v5083_v51 }
 0x413   : > { %6536 = vst [vmem:[#allocation22_spill] sm:$0xff] %v5083_v51 }
 0x415   : > { %v3590_v18 = vpop.trf.xlu1 }
 0x416   : > { %v3594_v41 = vunpack.i.h.bf16 %v3590_v18  ;;  %v3591_v43 = vunpack.i.l.bf16 %v3590_v18 }
 0x41d   : > { %v3595_v26 = vpop.trf.xlu1 }
 0x41e   : > { %v3599_v32 = vunpack.i.h.bf16 %v3595_v26  ;;  %v3596_v21 = vunpack.i.l.bf16 %v3595_v26 }
 0x420   : > { %v5087_v20 = vpack.c.bf16 %v3596_v21, %v3591_v43  ;;  %v5089_v2 = vpack.c.bf16 %v3599_v32, %v3594_v41 }
 0x422   : > { %6537 = vst [vmem:[#allocation41_spill] sm:$0xff] %v5087_v20  ;;  %1254 = vmatmul.bf16.gmra.mxu0 %v5087_v20  ;;  %1303 = vmatmul.bf16.gmra.mxu1 %v5089_v2 }
 0x423   : > { %6538 = vst [vmem:[#allocation62_spill] sm:$0xff] %v5089_v2 }
 0x425   : > { %v3600_v9 = vpop.trf.xlu1 }
 0x426   : > { %v3604_v23 = vunpack.i.h.bf16 %v3600_v9  ;;  %v3601_v53 = vunpack.i.l.bf16 %v3600_v9 }
 0x42d   : > { %v3605_v15 = vpop.trf.xlu1 }
 0x42e   : > { %v3609_v38 = vunpack.i.h.bf16 %v3605_v15  ;;  %v3606_v33 = vunpack.i.l.bf16 %v3605_v15 }
 0x430   : > { %v5093_v27 = vpack.c.bf16 %v3606_v33, %v3601_v53  ;;  %v5095_v59 = vpack.c.bf16 %v3609_v38, %v3604_v23 }
 0x432   : > { %6539 = vst [vmem:[#allocation23_spill] sm:$0xff] %v5093_v27  ;;  %1259 = vmatmul.bf16.vlgmr.msra.gmra.mxu2 %v5093_v27  ;;  %1308 = vmatmul.bf16.vlgmr.msra.gmra.mxu3 %v5095_v59 }
 0x433   : > { %6540 = vst [vmem:[#allocation42_spill] sm:$0xff] %v5095_v59 }
 0x435   : > { %v3610_v56 = vpop.trf.xlu1 }
 0x436   : > { %v3614_v16 = vunpack.i.h.bf16 %v3610_v56  ;;  %v3611_v58 = vunpack.i.l.bf16 %v3610_v56 }
 0x43d   : > { %v3615_v42 = vpop.trf.xlu1 }
 0x43e   : > { %v3619_v24 = vunpack.i.h.bf16 %v3615_v42  ;;  %v3616_v10 = vunpack.i.l.bf16 %v3615_v42 }
 0x440   : > { %v5099_v44 = vpack.c.bf16 %v3616_v10, %v3611_v58  ;;  %v5101_v22 = vpack.c.bf16 %v3619_v24, %v3614_v16 }
 0x442   : > { %6541 = vst [vmem:[#allocation64_spill] sm:$0xff] %v5099_v44  ;;  %1264 = vmatmul.bf16.gmra.mxu2 %v5099_v44  ;;  %1313 = vmatmul.bf16.gmra.mxu3 %v5101_v22 }
 0x443   : > { %6542 = vst [vmem:[#allocation63_spill] sm:$0xff] %v5101_v22 }
 0x445   : > { %v3620_v1 = vpop.trf.xlu1 }
 0x446   : > { %v3624_v28 = vunpack.i.h.bf16 %v3620_v1  ;;  %v3621_v63 = vunpack.i.l.bf16 %v3620_v1 }
 0x44d   : > { %v3625_v6 = vpop.trf.xlu1 }
 0x44e   : > { %v3629_v3 = vunpack.i.h.bf16 %v3625_v6  ;;  %v3626_v50 = vunpack.i.l.bf16 %v3625_v6 }
 0x450   : > { %v5105_v13 = vpack.c.bf16 %v3626_v50, %v3621_v63  ;;  %v5107_v39 = vpack.c.bf16 %v3629_v3, %v3624_v28 }
 0x452   : > { %6543 = vst [vmem:[#allocation56_spill] sm:$0xff] %v5105_v13  ;;  %1269 = vmatmul.bf16.gmra.mxu2 %v5105_v13  ;;  %1318 = vmatmul.bf16.gmra.mxu3 %v5107_v39 }
 0x453   : > { %6544 = vst [vmem:[#allocation61_spill] sm:$0xff] %v5107_v39 }
 0x455   : > { %v3630_v37 = vpop.trf.xlu1 }
 0x456   : > { %v3634_v14 = vunpack.i.h.bf16 %v3630_v37  ;;  %v3631_v36 = vunpack.i.l.bf16 %v3630_v37 }
 0x45d   : > { %v3635_v34 = vpop.trf.xlu1 }
 0x45e   : > { %v3639_v40 = vunpack.i.h.bf16 %v3635_v34  ;;  %v3636_v48 = vunpack.i.l.bf16 %v3635_v34 }
 0x460   : > { %v5111_v5 = vpack.c.bf16 %v3636_v48, %v3631_v36  ;;  %v5113_v4 = vpack.c.bf16 %v3639_v40, %v3634_v14 }
 0x462   : > { %6545 = vst [vmem:[#allocation59_spill] sm:$0xff] %v5111_v5  ;;  %1274 = vmatmul.bf16.gmra.mxu2 %v5111_v5  ;;  %1323 = vmatmul.bf16.gmra.mxu3 %v5113_v4 }
 0x463   : > { %6546 = vst [vmem:[#allocation60_spill] sm:$0xff] %v5113_v4 }
 0x46f   : > { %v1240_v12 = vpop.f32.mrf.mxu0  ;;  %v1289_v8 = vpop.f32.mrf.mxu1 }
 0x470   : > { %v1290_v43 = vadd.f32 %v1289_v8, %v1240_v12 }
 0x477   : > { %v1242_v35 = vpop.f32.mrf.mxu0  ;;  %v1291_v19 = vpop.f32.mrf.mxu1 }
 0x478   : > { %v1292_v26 = vadd.f32 %v1291_v19, %v1242_v35 }
 0x47f   : > { %v1245_v46 = vpop.f32.mrf.mxu0  ;;  %v1294_v45 = vpop.f32.mrf.mxu1 }
 0x480   : > { %v1295_v38 = vadd.f32 %v1294_v45, %v1245_v46 }
 0x487   : > { %v1247_v0 = vpop.f32.mrf.mxu0  ;;  %v1296_v29 = vpop.f32.mrf.mxu1 }
 0x488   : > { %v1297_v24 = vadd.f32 %v1296_v29, %v1247_v0 }
 0x48f   : > { %v1250_v7 = vpop.f32.mrf.mxu0  ;;  %v1299_v54 = vpop.f32.mrf.mxu1 }
 0x490   : > { %v1300_v17 = vadd.f32 %v1299_v54, %v1250_v7 }
 0x492   : > { %v1329_v25 = vadd.f32 1e-06, %v1300_v17 }
 0x494   : > { %3771 = vrcp.f32 %v1329_v25 }
 0x497   : > { %v1252_v60 = vpop.f32.mrf.mxu0  ;;  %v1301_v11 = vpop.f32.mrf.mxu1 }
 0x498   : > { %v1302_v6 = vadd.f32 %v1301_v11, %v1252_v60 }
 0x49a   : > { %v3772_v18 = vpop.eup %3771 }
 0x49b   : > { %v5117_v41 = vperm.slane %v3772_v18, 0 }
 0x49d   : > { %v5120_v9 = vmul.f32 %v5117_v41, %v1290_v43  ;;  %v5123_v23 = vmul.f32 %v5117_v41, %v1292_v26  ;;  %v5130_v16 = vmul.f32 %v5117_v41, %v1295_v38  ;;  %v5133_v1 = vmul.f32 %v5117_v41, %v1297_v24 }
 0x49e   : > { %v1336_v28 = vmul.f32 %v5117_v41, %v1300_v17  ;;  %v1337_v14 = vmul.f32 %v5117_v41, %v1302_v6 }
 0x49f   : > { %v1255_v53 = vpop.f32.mrf.mxu0  ;;  %v1304_v15 = vpop.f32.mrf.mxu1  ;;  %v1364_v33 = vmul.f32 %v5120_v9, %v5120_v9  ;;  %v1365_v56 = vmul.f32 %v5123_v23, %v5123_v23  ;;  %v1366_v63 = vmul.f32 %v5130_v16, %v5130_v16  ;;  %v1367_v34 = vmul.f32 %v5133_v1, %v5133_v1 }
 0x4a0   : > { %v5139_v36 = vmul.f32 0.0, %v1336_v28  ;;  %v1305_v40 = vadd.f32 %v1304_v15, %v1255_v53  ;;  %v5145_v45 = vmul.f32 0.0, %v1337_v14 }
 0x4a1   : > { %v1380_v10 = vadd.f32 %v1365_v56, %v1364_v33 }
 0x4a2   : > { %v1368_v46 = vmul.f32 %v5139_v36, %v5139_v36  ;;  %v1338_v0 = vmul.f32 %v5117_v41, %v1305_v40  ;;  %v1369_v60 = vmul.f32 %v5145_v45, %v5145_v45 }
 0x4a3   : > { %v1381_v37 = vadd.f32 %v1380_v10, %v1366_v63 }
 0x4a4   : > { %v5152_v11 = vmul.f32 0.0, %v1338_v0 }
 0x4a5   : > { %v1382_v35 = vadd.f32 %v1381_v37, %v1367_v34 }
 0x4a7   : > { %v1257_v3 = vpop.f32.mrf.mxu0  ;;  %v1306_v50 = vpop.f32.mrf.mxu1  ;;  %v1383_v54 = vadd.f32 %v1382_v35, %v1368_v46 }
 0x4a8   : > { %v1307_v48 = vadd.f32 %v1306_v50, %v1257_v3 }
 0x4a9   : > { %v1384_v53 = vadd.f32 %v1383_v54, %v1369_v60 }
 0x4aa   : > { %v1339_v29 = vmul.f32 %v5117_v41, %v1307_v48 }
 0x4b5   : > { %v1260_v57 = vpop.f32.mrf.mxu2  ;;  %v1309_v30 = vpop.f32.mrf.mxu3 }
 0x4b6   : > { %v1310_v19 = vadd.f32 %v1309_v30, %v1260_v57  ;;  %v5154_v57 = vmul.f32 0.0, %v1339_v29 }
 0x4b8   : > { %v1340_v17 = vmul.f32 %v5117_v41, %v1310_v19 }
 0x4ba   : > { %v5157_v15 = vmul.f32 0.0, %v1340_v17 }
 0x4bd   : > { %v1262_v31 = vpop.f32.mrf.mxu2  ;;  %v1311_v62 = vpop.f32.mrf.mxu3 }
 0x4be   : > { %v1312_v7 = vadd.f32 %v1311_v62, %v1262_v31 }
 0x4c0   : > { %v1341_v43 = vmul.f32 %v5117_v41, %v1312_v7 }
 0x4c2   : > { %v5164_v38 = vmul.f32 0.0, %v1341_v43 }
 0x4c4   : > { %v1373_v3 = vmul.f32 %v5164_v38, %v5164_v38 }
 0x4c5   : > { %v1265_v32 = vpop.f32.mrf.mxu2  ;;  %v1314_v21 = vpop.f32.mrf.mxu3 }
 0x4c6   : > { %v1315_v25 = vadd.f32 %v1314_v21, %v1265_v32  ;;  %v1370_v32 = vmul.f32 %v5152_v11, %v5152_v11  ;;  %v1371_v21 = vmul.f32 %v5154_v57, %v5154_v57 }
 0x4c8   : > { %v1342_v31 = vmul.f32 %v5117_v41, %v1315_v25  ;;  %v1385_v24 = vadd.f32 %v1384_v53, %v1370_v32 }
 0x4ca   : > { %v1386_v28 = vadd.f32 %v1385_v24, %v1371_v21 }
 0x4cd   : > { %v1267_v58 = vpop.f32.mrf.mxu2  ;;  %v1316_v42 = vpop.f32.mrf.mxu3 }
 0x4ce   : > { %v1317_v26 = vadd.f32 %v1316_v42, %v1267_v58  ;;  %v1372_v58 = vmul.f32 %v5157_v15, %v5157_v15  ;;  %v5169_v42 = vmul.f32 0.0, %v1342_v31 }
 0x4d0   : > { %v1343_v33 = vmul.f32 %v5117_v41, %v1317_v26  ;;  %v1387_v34 = vadd.f32 %v1386_v28, %v1372_v58  ;;  %v1374_v40 = vmul.f32 %v5169_v42, %v5169_v42 }
 0x4d2   : > { %v5174_v50 = vmul.f32 0.0, %v1343_v33 }
 0x4d4   : > { %v1375_v35 = vmul.f32 %v5174_v50, %v5174_v50 }
 0x4d5   : > { %v1270_v12 = vpop.f32.mrf.mxu2  ;;  %v1319_v8 = vpop.f32.mrf.mxu3 }
 0x4d6   : > { %v1320_v62 = vadd.f32 %v1319_v8, %v1270_v12  ;;  %v1388_v8 = vadd.f32 %v1387_v34, %v1373_v3 }
 0x4d8   : > { %v1344_v10 = vmul.f32 %v5117_v41, %v1320_v62  ;;  %v1389_v46 = vadd.f32 %v1388_v8, %v1374_v40 }
 0x4da   : > { %v1360_v48 = vmul.f32 0.0, %v1344_v10  ;;  %v1390_v17 = vadd.f32 %v1389_v46, %v1375_v35 }
 0x4dc   : > { %v1376_v0 = vmul.f32 %v1360_v48, %v1360_v48 }
 0x4dd   : > { %v1272_v30 = vpop.f32.mrf.mxu2  ;;  %v1321_v18 = vpop.f32.mrf.mxu3 }
 0x4de   : > { %v1322_v56 = vadd.f32 %v1321_v18, %v1272_v30  ;;  %v1391_v30 = vadd.f32 %v1390_v17, %v1376_v0 }
 0x4e0   : > { %v1345_v37 = vmul.f32 %v5117_v41, %v1322_v56 }
 0x4e2   : > { %v1361_v19 = vmul.f32 0.0, %v1345_v37 }
 0x4e4   : > { %v1377_v25 = vmul.f32 %v1361_v19, %v1361_v19 }
 0x4e5   : > { %v1275_v63 = vpop.f32.mrf.mxu2  ;;  %v1324_v6 = vpop.f32.mrf.mxu3 }
 0x4e6   : > { %v1325_v14 = vadd.f32 %v1324_v6, %v1275_v63  ;;  %v1392_v26 = vadd.f32 %v1391_v30, %v1377_v25 }
 0x4e8   : > { %v1346_v12 = vmul.f32 %v5117_v41, %v1325_v14 }
 0x4ea   : > { %v1362_v29 = vmul.f32 0.0, %v1346_v12 }
 0x4ec   : > { %v1378_v18 = vmul.f32 %v1362_v29, %v1362_v29 }
 0x4ed   : > { %v1277_v7 = vpop.f32.mrf.mxu2  ;;  %v1326_v54 = vpop.f32.mrf.mxu3 }
 0x4ee   : > { %v1327_v60 = vadd.f32 %v1326_v54, %v1277_v7  ;;  %v1393_v31 = vadd.f32 %v1392_v26, %v1378_v18 }
 0x4f0   : > { %v1347_v43 = vmul.f32 %v5117_v41, %v1327_v60 }
 0x4f2   : > { %v1363_v53 = vmul.f32 0.0, %v1347_v43 }
 0x4f4   : > { %v1379_v62 = vmul.f32 %v1363_v53, %v1363_v53 }
 0x4f6   : > { %v1394_v32 = vadd.f32 %v1393_v31, %v1379_v62 }
 0x4f8   : > { %v1395_v21 = vrot.slane %v1394_v32, 4 }
 0x4fa   : > { %v1396_v33 = vadd.f32 %v1395_v21, %v1394_v32 }
 0x4fc   : > { %v1397_v56 = vrot.slane %v1396_v33, 2 }
 0x4fe   : > { %v1398_v24 = vadd.f32 %v1397_v56, %v1396_v33 }
 0x500   : > { %v1399_v58 = vrot.slane %v1398_v24, 1 }
 0x502   : > { %v1400_v10 = vadd.f32 %v1399_v58, %v1398_v24 }
 0x504   : > { %3773 = vrsqrt.f32 %v1400_v10  ;;  %vm1408_vm0 = vcmp.eq.f32.partialorder %v1400_v10, inf  ;;  %v1411_v41 = vand.u32 2147483648, %v1400_v10  ;;  %vm1410_vm1 = vcmp.eq.f32.partialorder %v1400_v10, 0.0 }
 0x50a   : > { %v3774_v28 = vpop.eup %3773 }
 0x50b   : > { %v1402_v63 = vmul.f32 %v3774_v28, %v1400_v10 }
 0x50d   : > { %v1403_v6 = vmul.f32 %v3774_v28, %v1402_v63 }
 0x50f   : > { %v1404_v3 = vmul.f32 0.5, %v1403_v6 }
 0x511   : > { %v1405_v37 = vsub.f32 1.5, %v1404_v3  ;;  %v6547_v3 = vld [vmem:[#allocation18_spill] sm:$0xff] }
 0x513   : > { %v1406_v14 = vmul.f32 %v3774_v28, %v1405_v37  ;;  %v6550_v37 = vld [vmem:[#allocation24_spill] sm:$0xff] }
 0x515   : > { %v1407_v34 = vmul.f32 %v1406_v14, %v1400_v10  ;;  %v6553_v14 = vld [vmem:[#allocation33_spill] sm:$0xff] }
 0x517   : > { %v1409_v40 = vsel %vm1408_vm0, %v1400_v10, %v1407_v34 }
 0x518   : > { %v1412_v12 = vsel %vm1410_vm1, %v1411_v41, %v1409_v40  ;;  %v5207_v41 = vld [vmem:[%s6353_s6] ss:$0 sm:$0xff] }
 0x519   : > { %v1413_v8 = vadd.f32 1e-06, %v1412_v12 }
 0x51b   : > { %3775 = vrcp.f32 %v1413_v8  ;;  %v1425_v7 = vand.u32 2147483648, %v1413_v8  ;;  %v1423_v17 = vand.u32 2147483647, %v1413_v8  ;;  %vm1419_vm3 = vweird.f32 %v1413_v8 }
 0x51d   : > { %v1426_v60 = vor.u32 1.1754944e-38, %v1425_v7  ;;  %vm1424_vm5 = vcmp.eq.f32.partialorder %v1423_v17, 8.507059e+37  ;;  %v6557_v17 = vld [vmem:[#allocation40_spill] sm:$0xff] }
 0x521   : > { %v3776_v35 = vpop.eup %3775 }
 0x522   : > { %v1415_v46 = vmul.f32 %v3776_v35, %v1413_v8  ;;  %vm1420_vm2 = vweird.f32 %v3776_v35 }
 0x523   : > { %vm1421_vm4 = vmor %vm1419_vm3, %vm1420_vm2 }
 0x524   : > { %v1416_v0 = vsub.f32 1.0, %v1415_v46 }
 0x526   : > { %v1417_v54 = vmul.f32 %v3776_v35, %v1416_v0 }
 0x528   : > { %v1418_v25 = vadd.f32 %v3776_v35, %v1417_v54 }
 0x52a   : > { %v1422_v30 = vsel %vm1421_vm4, %v3776_v35, %v1418_v25  ;;  %v6556_v35 = vld [vmem:[#allocation38_spill] sm:$0xff] }
 0x52b   : > { %v1427_v18 = vsel %vm1424_vm5, %v1426_v60, %v1422_v30 }
 0x52c   : > { %v1443_v43 = vmul.f32 %v1427_v18, %v1362_v29  ;;  %v1444_v26 = vmul.f32 %v1427_v18, %v1363_v53  ;;  %v1441_v62 = vmul.f32 %v1427_v18, %v1360_v48  ;;  %v1442_v32 = vmul.f32 %v1427_v18, %v1361_v19 }
 0x52d   : > { %v1439_v33 = vmul.f32 %v1427_v18, %v5169_v42  ;;  %v1440_v56 = vmul.f32 %v1427_v18, %v5174_v50  ;;  %v1437_v58 = vmul.f32 %v1427_v18, %v5157_v15  ;;  %v1438_v10 = vmul.f32 %v1427_v18, %v5164_v38 }
 0x52e   : > { %v1452_v31 = vpack.c.bf16 %v1444_v26, %v1443_v43  ;;  %v1451_v21 = vpack.c.bf16 %v1442_v32, %v1441_v62  ;;  %v1435_v29 = vmul.f32 %v1427_v18, %v5152_v11  ;;  %v1436_v53 = vmul.f32 %v1427_v18, %v5154_v57  ;;  %v6558_v43 = vld [vmem:[#allocation43_spill] sm:$0xff] }
 0x52f   : > { %v1450_v24 = vpack.c.bf16 %v1440_v56, %v1439_v33  ;;  %v1449_v28 = vpack.c.bf16 %v1438_v10, %v1437_v58  ;;  %v1433_v19 = vmul.f32 %v1427_v18, %v5139_v36  ;;  %v1434_v42 = vmul.f32 %v1427_v18, %v5145_v45  ;;  %v6548_v36 = vld [vmem:[#allocation19_spill] sm:$0xff]  ;;  %v6549_v45 = vld [vmem:[#allocation21_spill] sm:$0xff] }
 0x530   : > { %1453 = vmatpush.bf16.msrb.mxu2 %v1452_v31  ;;  %v1448_v48 = vpack.c.bf16 %v1436_v53, %v1435_v29  ;;  %v1431_v63 = vmul.f32 %v1427_v18, %v5130_v16  ;;  %v1432_v15 = vmul.f32 %v1427_v18, %v5133_v1  ;;  %v1429_v6 = vmul.f32 %v1427_v18, %v5120_v9  ;;  %v6551_v16 = vld [vmem:[#allocation27_spill] sm:$0xff]  ;;  %v6552_v1 = vld [vmem:[#allocation30_spill] sm:$0xff]  ;;  %v6554_v9 = vld [vmem:[#allocation36_spill] sm:$0xff] }
 0x531   : > { %v1447_v50 = vpack.c.bf16 %v1434_v42, %v1433_v19  ;;  %v1430_v11 = vmul.f32 %v1427_v18, %v5123_v23  ;;  %v6555_v23 = vld [vmem:[#allocation37_spill] sm:$0xff]  ;;  %v6561_v19 = vld [vmem:[#allocation52_spill] sm:$0xff] }
 0x532   : > { %v1446_v38 = vpack.c.bf16 %v1432_v15, %v1431_v63  ;;  %v6560_v10 = vld [vmem:[#allocation49_spill] sm:$0xff] }
 0x533   : > { %v1445_v57 = vpack.c.bf16 %v1430_v11, %v1429_v6 }
 0x534   : > { %1454 = vmatpush.bf16.msrb.mxu2 %v1451_v21  ;;  %v6559_v21 = vld [vmem:[#allocation46_spill] sm:$0xff] }
 0x538   : > { %1455 = vmatpush.bf16.msrb.mxu2 %v1450_v24 }
 0x53c   : > { %1456 = vmatpush.bf16.msrb.mxu2 %v1449_v28 }
 0x540   : > { %1457 = vmatpush.bf16.msrb.mxu2 %v1448_v48 }
 0x544   : > { %1458 = vmatpush.bf16.msrb.mxu2 %v1447_v50 }
 0x548   : > { %1459 = vmatpush.bf16.msrb.mxu2 %v1446_v38  ;;  %v6562_v38 = vld [vmem:[#allocation55_spill] sm:$0xff] }
 0x54c   : > { %1460 = vmatpush.bf16.msrb.mxu2 %v1445_v57 }
 0x54f   : > { %1461 = vmatmul.bf16.vlgmr.msrb.gmra.mxu2 %v6547_v3 }
 0x55f   : > { %1466 = vmatmul.bf16.gmra.mxu2 %v6548_v36 }
 0x56f   : > { %1471 = vmatmul.bf16.gmra.mxu2 %v6549_v45 }
 0x57f   : > { %1476 = vmatmul.bf16.gmra.mxu2 %v6550_v37 }
 0x58f   : > { %1481 = vmatmul.bf16.gmra.mxu2 %v6551_v16 }
 0x59f   : > { %1486 = vmatmul.bf16.gmra.mxu2 %v6552_v1 }
 0x5af   : > { %1491 = vmatmul.bf16.gmra.mxu2 %v6553_v14 }
 0x5bf   : > { %1496 = vmatmul.bf16.gmra.mxu2 %v6554_v9 }
 0x5cf   : > { %1501 = vmatmul.bf16.gmra.mxu2 %v6555_v23 }
 0x5d2   : > { %v1462_v34 = vpop.f32.mrf.mxu2 }
 0x5d3   : > { %v5210_v40 = vadd.f32 %v5207_v41, %v1462_v34 }
 0x5d5   : > { %1542 = vmax.xlane.f32.xlu2 %v5210_v40 }
 0x5da   : > { %v1464_v12 = vpop.f32.mrf.mxu2 }
 0x5db   : > { %v5214_v8 = vadd.f32 %v5207_v41, %v1464_v12 }
 0x5dd   : > { %1544 = vmax.xlane.f32.xlu0 %v5214_v8 }
 0x5df   : > { %1506 = vmatmul.bf16.gmra.mxu2 %v6556_v35 }
 0x5e2   : > { %v1467_v46 = vpop.f32.mrf.mxu2 }
 0x5e3   : > { %v5219_v0 = vadd.f32 %v5207_v41, %v1467_v46 }
 0x5e5   : > { %1546 = vmax.xlane.f32.xlu2 %v5219_v0 }
 0x5ea   : > { %v1469_v7 = vpop.f32.mrf.mxu2 }
 0x5eb   : > { %v5223_v54 = vadd.f32 %v5207_v41, %v1469_v7 }
 0x5ed   : > { %1548 = vmax.xlane.f32.xlu0 %v5223_v54 }
 0x5ef   : > { %1511 = vmatmul.bf16.gmra.mxu2 %v6557_v17 }
 0x5f2   : > { %v1472_v25 = vpop.f32.mrf.mxu2 }
 0x5f3   : > { %v5228_v60 = vadd.f32 %v5207_v41, %v1472_v25 }
 0x5f5   : > { %1550 = vmax.xlane.f32.xlu2 %v5228_v60 }
 0x5fa   : > { %v1474_v30 = vpop.f32.mrf.mxu2 }
 0x5fb   : > { %v5232_v18 = vadd.f32 %v5207_v41, %v1474_v30 }
 0x5fd   : > { %1552 = vmax.xlane.f32.xlu0 %v5232_v18 }
 0x5ff   : > { %1516 = vmatmul.bf16.gmra.mxu2 %v6558_v43 }
 0x602   : > { %v1477_v26 = vpop.f32.mrf.mxu2 }
 0x603   : > { %v5237_v31 = vadd.f32 %v5207_v41, %v1477_v26 }
 0x605   : > { %1554 = vmax.xlane.f32.xlu2 %v5237_v31 }
 0x60a   : > { %v1479_v62 = vpop.f32.mrf.mxu2 }
 0x60b   : > { %v5241_v32 = vadd.f32 %v5207_v41, %v1479_v62 }
 0x60d   : > { %1556 = vmax.xlane.f32.xlu0 %v5241_v32 }
 0x60f   : > { %1521 = vmatmul.bf16.gmra.mxu2 %v6559_v21 }
 0x612   : > { %v1482_v33 = vpop.f32.mrf.mxu2 }
 0x613   : > { %v1483_v56 = vadd.f32 %v5207_v41, %v1482_v33 }
 0x615   : > { %1558 = vmax.xlane.f32.xlu2 %v1483_v56 }
 0x61a   : > { %v1484_v24 = vpop.f32.mrf.mxu2 }
 0x61b   : > { %v5247_v58 = vadd.f32 %v5207_v41, %v1484_v24 }
 0x61d   : > { %1560 = vmax.xlane.f32.xlu0 %v5247_v58 }
 0x61f   : > { %1526 = vmatmul.bf16.gmra.mxu2 %v6560_v10 }
 0x622   : > { %v1487_v28 = vpop.f32.mrf.mxu2 }
 0x623   : > { %v5252_v29 = vadd.f32 %v5207_v41, %v1487_v28 }
 0x625   : > { %1562 = vmax.xlane.f32.xlu2 %v5252_v29 }
 0x62a   : > { %v1489_v53 = vpop.f32.mrf.mxu2 }
 0x62b   : > { %v5256_v48 = vadd.f32 %v5207_v41, %v1489_v53 }
 0x62d   : > { %1564 = vmax.xlane.f32.xlu0 %v5256_v48 }
 0x62f   : > { %1531 = vmatmul.bf16.gmra.mxu2 %v6561_v19 }
 0x632   : > { %v1492_v42 = vpop.f32.mrf.mxu2 }
 0x633   : > { %v5261_v50 = vadd.f32 %v5207_v41, %v1492_v42 }
 0x635   : > { %1566 = vmax.xlane.f32.xlu2 %v5261_v50 }
 0x63a   : > { %v1494_v63 = vpop.f32.mrf.mxu2 }
 0x63b   : > { %v5265_v15 = vadd.f32 %v5207_v41, %v1494_v63 }
 0x63d   : > { %1568 = vmax.xlane.f32.xlu0 %v5265_v15 }
 0x63f   : > { %1536 = vmatmul.bf16.gmra.mxu2 %v6562_v38 }
 0x642   : > { %v1497_v6 = vpop.f32.mrf.mxu2 }
 0x643   : > { %v5270_v11 = vadd.f32 %v5207_v41, %v1497_v6 }
 0x645   : > { %1570 = vmax.xlane.f32.xlu2 %v5270_v11 }
 0x648   : > { %v5289_v62 = vpop.xlane.xlu2 %1542 }
 0x64a   : > { %v1499_v57 = vpop.f32.mrf.mxu2 }
 0x64b   : > { %v5274_v34 = vadd.f32 %v5207_v41, %v1499_v57 }
 0x64d   : > { %1572 = vmax.xlane.f32.xlu0 %v5274_v34 }
 0x650   : > { %v5295_v28 = vpop.xlane.xlu0 %1544 }
 0x652   : > { %v1502_v12 = vpop.f32.mrf.mxu2 }
 0x653   : > { %v5278_v46 = vadd.f32 %v5207_v41, %v1502_v12 }
 0x655   : > { %1574 = vmax.xlane.f32.xlu2 %v5278_v46 }
 0x658   : > { %v5297_v53 = vpop.xlane.xlu2 %1546 }
 0x65a   : > { %v1504_v7 = vpop.f32.mrf.mxu2 }
 0x65b   : > { %v5282_v25 = vadd.f32 %v5207_v41, %v1504_v7 }
 0x65d   : > { %1576 = vmax.xlane.f32.xlu0 %v5282_v25 }
 0x660   : > { %v5303_v6 = vpop.xlane.xlu0 %1548 }
 0x662   : > { %v1507_v30 = vpop.f32.mrf.mxu2 }
 0x663   : > { %v5286_v26 = vadd.f32 %v5207_v41, %v1507_v30 }
 0x665   : > { %1578 = vmax.xlane.f32.xlu2 %v5286_v26 }
 0x668   : > { %v5305_v57 = vpop.xlane.xlu2 %1550 }
 0x669   : > { %v1610_v13 = vsub.f32 %v5228_v60, %v5305_v57 }
 0x66a   : > { %v1509_v33 = vpop.f32.mrf.mxu2 }
 0x66b   : > { %v5292_v24 = vadd.f32 %v5207_v41, %v1509_v33  ;;  %v1646_v2 = vmul.f32 1.442695, %v1610_v13 }
 0x66d   : > { %1580 = vmax.xlane.f32.xlu0 %v5292_v24 }
 0x670   : > { %v5311_v30 = vpop.xlane.xlu0 %1552 }
 0x672   : > { %v1512_v42 = vpop.f32.mrf.mxu2 }
 0x673   : > { %v5300_v63 = vadd.f32 %v5207_v41, %v1512_v42 }
 0x675   : > { %1582 = vmax.xlane.f32.xlu2 %v5300_v63 }
 0x678   : > { %v5313_v33 = vpop.xlane.xlu2 %1554 }
 0x67a   : > { %v1514_v12 = vpop.f32.mrf.mxu2 }
 0x67b   : > { %v5308_v7 = vadd.f32 %v5207_v41, %v1514_v12 }
 0x67d   : > { %1584 = vmax.xlane.f32.xlu0 %v5308_v7 }
 0x680   : > { %v5319_v19 = vpop.xlane.xlu0 %1556 }
 0x681   : > { %v1613_v13 = vsub.f32 %v5241_v32, %v5319_v19 }
 0x682   : > { %v1517_v38 = vpop.f32.mrf.mxu2 }
 0x683   : > { %v5316_v42 = vadd.f32 %v5207_v41, %v1517_v38 }
 0x685   : > { %1586 = vmax.xlane.f32.xlu2 %v5316_v42 }
 0x688   : > { %v1559_v10 = vpop.xlane.xlu2 %1558 }
 0x689   : > { %v1614_v21 = vsub.f32 %v1483_v56, %v1559_v10 }
 0x68a   : > { %v1519_v43 = vpop.f32.mrf.mxu2 }
 0x68b   : > { %v1654_v17 = vmul.f32 1.442695, %v1614_v21  ;;  %v5322_v12 = vadd.f32 %v5207_v41, %v1519_v43 }
 0x68d   : > { %3777 = vpow2.f32 %v1654_v17  ;;  %1588 = vmax.xlane.f32.xlu0 %v5322_v12 }
 0x690   : > { %v1561_v35 = vpop.xlane.xlu0 %1560 }
 0x691   : > { %v1615_v23 = vsub.f32 %v5247_v58, %v1561_v35 }
 0x692   : > { %v1522_v9 = vpop.f32.mrf.mxu2 }
 0x693   : > { %v5326_v38 = vpop.eup %3777  ;;  %v1656_v14 = vmul.f32 1.442695, %v1615_v23  ;;  %v5331_v21 = vadd.f32 %v5207_v41, %v1522_v9 }
 0x694   : > { %1718 = vadd.xlane.f32.xlu2 %v5326_v38 }
 0x695   : > { %3779 = vpow2.f32 %v1656_v14 }
 0x698   : > { %v1563_v1 = vpop.xlane.xlu2 %1562 }
 0x699   : > { %v1616_v56 = vsub.f32 %v5252_v29, %v1563_v1 }
 0x69a   : > { %v1524_v43 = vpop.f32.mrf.mxu2 }
 0x69b   : > { %v5333_v17 = vpop.eup %3779  ;;  %v1658_v10 = vmul.f32 1.442695, %v1616_v56  ;;  %v5339_v14 = vadd.f32 %v5207_v41, %v1524_v43 }
 0x69c   : > { %1720 = vadd.xlane.f32.xlu0 %v5333_v17  ;;  %1590 = vmax.xlane.f32.xlu2 %v5331_v21 }
 0x69d   : > { %3781 = vpow2.f32 %v1658_v10 }
 0x6a0   : > { %v1565_v35 = vpop.xlane.xlu0 %1564 }
 0x6a1   : > { %v1617_v23 = vsub.f32 %v5256_v48, %v1565_v35 }
 0x6a2   : > { %v1527_v58 = vpop.f32.mrf.mxu2 }
 0x6a3   : > { %v5341_v1 = vpop.eup %3781  ;;  %v1660_v9 = vmul.f32 1.442695, %v1617_v23  ;;  %v5347_v10 = vadd.f32 %v5207_v41, %v1527_v58 }
 0x6a4   : > { %1592 = vmax.xlane.f32.xlu0 %v5339_v14  ;;  %1722 = vadd.xlane.f32.xlu2 %v5341_v1 }
 0x6a5   : > { %3783 = vpow2.f32 %v1660_v9 }
 0x6a8   : > { %v1567_v29 = vpop.xlane.xlu2 %1566 }
 0x6a9   : > { %v1618_v56 = vsub.f32 %v5261_v50, %v1567_v29 }
 0x6aa   : > { %v1529_v16 = vpop.f32.mrf.mxu2 }
 0x6ab   : > { %v5349_v48 = vpop.eup %3783  ;;  %v1662_v35 = vmul.f32 1.442695, %v1618_v56  ;;  %v5355_v9 = vadd.f32 %v5207_v41, %v1529_v16 }
 0x6ac   : > { %1724 = vadd.xlane.f32.xlu0 %v5349_v48  ;;  %1594 = vmax.xlane.f32.xlu2 %v5347_v10 }
 0x6ad   : > { %3785 = vpow2.f32 %v1662_v35 }
 0x6b0   : > { %v1569_v43 = vpop.xlane.xlu0 %1568 }
 0x6b1   : > { %v1619_v23 = vsub.f32 %v5265_v15, %v1569_v43 }
 0x6b2   : > { %v1532_v37 = vpop.f32.mrf.mxu2 }
 0x6b3   : > { %v5357_v50 = vpop.eup %3785  ;;  %v1664_v58 = vmul.f32 1.442695, %v1619_v23  ;;  %v5363_v35 = vadd.f32 %v5207_v41, %v1532_v37 }
 0x6b4   : > { %1596 = vmax.xlane.f32.xlu0 %v5355_v9  ;;  %1726 = vadd.xlane.f32.xlu2 %v5357_v50 }
 0x6b5   : > { %3787 = vpow2.f32 %v1664_v58 }
 0x6b8   : > { %v1571_v29 = vpop.xlane.xlu2 %1570 }
 0x6b9   : > { %v1620_v56 = vsub.f32 %v5270_v11, %v1571_v29 }
 0x6ba   : > { %v1534_v43 = vpop.f32.mrf.mxu2 }
 0x6bb   : > { %v5365_v45 = vpop.eup %3787  ;;  %v1666_v15 = vmul.f32 1.442695, %v1620_v56  ;;  %v5371_v58 = vadd.f32 %v5207_v41, %v1534_v43 }
 0x6bc   : > { %1728 = vadd.xlane.f32.xlu0 %v5365_v45  ;;  %1598 = vmax.xlane.f32.xlu2 %v5363_v35 }
 0x6bd   : > { %3789 = vpow2.f32 %v1666_v15 }
 0x6c0   : > { %v1573_v16 = vpop.xlane.xlu0 %1572 }
 0x6c1   : > { %v1621_v23 = vsub.f32 %v5274_v34, %v1573_v16  ;;  %v1612_v34 = vsub.f32 %v5237_v31, %v5313_v33 }
 0x6c2   : > { %v1537_v37 = vpop.f32.mrf.mxu2 }
 0x6c3   : > { %v5373_v36 = vpop.eup %3789  ;;  %v1668_v11 = vmul.f32 1.442695, %v1621_v23  ;;  %v5378_v29 = vadd.f32 %v5207_v41, %v1537_v37  ;;  %v1650_v43 = vmul.f32 1.442695, %v1612_v34 }
 0x6c4   : > { %1600 = vmax.xlane.f32.xlu0 %v5371_v58  ;;  %1730 = vadd.xlane.f32.xlu2 %v5373_v36 }
 0x6c5   : > { %3791 = vpow2.f32 %v1668_v11 }
 0x6c6   : > { %3793 = vpow2.f32 %v1650_v43 }
 0x6c8   : > { %v5393_v11 = vpop.xlane.xlu2 %1574 }
 0x6ca   : > { %v1539_v15 = vpop.f32.mrf.mxu2 }
 0x6cb   : > { %v5380_v56 = vpop.eup %3791  ;;  %v5387_v16 = vadd.f32 %v5207_v41, %v1539_v15 }
 0x6cc   : > { %1732 = vadd.xlane.f32.xlu0 %v5380_v56  ;;  %1602 = vmax.xlane.f32.xlu2 %v5378_v29  ;;  %v5390_v23 = vpop.eup %3793 }
 0x6d0   : > { %v5395_v37 = vpop.xlane.xlu0 %1576 }
 0x6d4   : > { %1604 = vmax.xlane.f32.xlu0 %v5387_v16 }
 0x6d8   : > { %v5397_v3 = vpop.xlane.xlu2 %1578 }
 0x6dc   : > { %1714 = vadd.xlane.f32.xlu0 %v5390_v23 }
 0x6e0   : > { %v5399_v4 = vpop.xlane.xlu0 %1580 }
 0x6e8   : > { %v5401_v31 = vpop.xlane.xlu2 %1582 }
 0x6f0   : > { %v5403_v33 = vpop.xlane.xlu0 %1584 }
 0x6f8   : > { %v1587_v41 = vpop.xlane.xlu2 %1586 }
 0x6f9   : > { %v1628_v51 = vsub.f32 %v5316_v42, %v1587_v41 }
 0x6fb   : > { %v1682_v20 = vmul.f32 1.442695, %v1628_v51 }
 0x700   : > { %v5405_v34 = vpop.xlane.xlu0 %1588 }
 0x707   : > { %v5407_v15 = vpop.xlane.xlu2 %1718 }
 0x70f   : > { %v5409_v43 = vpop.xlane.xlu0 %1720  ;;  %v1591_v39 = vpop.xlane.xlu2 %1590 }
 0x710   : > { %v1630_v5 = vsub.f32 %v5331_v21, %v1591_v39 }
 0x712   : > { %v1686_v22 = vmul.f32 1.442695, %v1630_v5 }
 0x714   : > { %3795 = vpow2.f32 %v1686_v22  ;;  %v1608_v22 = vsub.f32 %v5219_v0, %v5297_v53 }
 0x715   : > { %3797 = vpow2.f32 %v1646_v2 }
 0x716   : > { %3799 = vpow2.f32 %v1682_v20  ;;  %v1642_v57 = vmul.f32 1.442695, %v1608_v22 }
 0x717   : > { %v1593_v59 = vpop.xlane.xlu0 %1592  ;;  %v5414_v44 = vpop.xlane.xlu2 %1722 }
 0x718   : > { %v1631_v20 = vsub.f32 %v5339_v14, %v1593_v59 }
 0x71a   : > { %v5416_v27 = vpop.eup %3795  ;;  %v1688_v19 = vmul.f32 1.442695, %v1631_v20 }
 0x71b   : > { %1750 = vadd.xlane.f32.xlu0 %v5416_v27  ;;  %v5421_v5 = vpop.eup %3797 }
 0x71c   : > { %v5429_v21 = vpop.eup %3799 }
 0x71f   : > { %v1725_v61 = vpop.xlane.xlu0 %1724  ;;  %v1595_v52 = vpop.xlane.xlu2 %1594 }
 0x720   : > { %v1632_v39 = vsub.f32 %v5347_v10, %v1595_v52  ;;  %v1652_v52 = vmul.f32 1.442695, %v1613_v13 }
 0x722   : > { %v1690_v60 = vmul.f32 1.442695, %v1632_v39 }
 0x723   : > { %1710 = vadd.xlane.f32.xlu0 %v5421_v5 }
 0x724   : > { %3801 = vpow2.f32 %v1690_v60  ;;  %v1611_v60 = vsub.f32 %v5232_v18, %v5311_v30 }
 0x725   : > { %3803 = vpow2.f32 %v1642_v57 }
 0x726   : > { %v1648_v22 = vmul.f32 1.442695, %v1611_v60 }
 0x727   : > { %v1597_v2 = vpop.xlane.xlu0 %1596  ;;  %v1727_v51 = vpop.xlane.xlu2 %1726 }
 0x728   : > { %v1633_v42 = vsub.f32 %v5355_v9, %v1597_v2 }
 0x72a   : > { %v5431_v10 = vpop.eup %3801  ;;  %v1692_v41 = vmul.f32 1.442695, %v1633_v42  ;;  %v1629_v42 = vsub.f32 %v5322_v12, %v5405_v34  ;;  %v1609_v12 = vsub.f32 %v5223_v54, %v5303_v6 }
 0x72b   : > { %1746 = vadd.xlane.f32.xlu0 %v5429_v21  ;;  %1754 = vadd.xlane.f32.xlu2 %v5431_v10  ;;  %v5436_v32 = vpop.eup %3803 }
 0x72c   : > { %3805 = vpow2.f32 %v1692_v41  ;;  %v1684_v18 = vmul.f32 1.442695, %v1629_v42 }
 0x72d   : > { %3807 = vpow2.f32 %v1652_v52 }
 0x72e   : > { %3809 = vpow2.f32 %v1688_v19 }
 0x72f   : > { %v1729_v0 = vpop.xlane.xlu0 %1728  ;;  %v5438_v53 = vpop.xlane.xlu2 %1598 }
 0x732   : > { %v5440_v9 = vpop.eup %3805 }
 0x733   : > { %v5442_v39 = vpop.eup %3807  ;;  %1756 = vadd.xlane.f32.xlu1 %v5440_v9  ;;  %1706 = vadd.xlane.f32.xlu0 %v5436_v32 }
 0x734   : > { %1716 = vadd.xlane.f32.xlu2 %v5442_v39  ;;  %v5450_v57 = vpop.eup %3809 }
 0x737   : > { %v1601_v59 = vpop.xlane.xlu0 %1600  ;;  %v1731_v2 = vpop.xlane.xlu2 %1730 }
 0x738   : > { %v1635_v14 = vsub.f32 %v5371_v58, %v1601_v59  ;;  %v1644_v59 = vmul.f32 1.442695, %v1609_v12 }
 0x73a   : > { %v1696_v13 = vmul.f32 1.442695, %v1635_v14 }
 0x73c   : > { %3811 = vpow2.f32 %v1696_v13  ;;  %1752 = vadd.xlane.f32.xlu2 %v5450_v57 }
 0x73d   : > { %3813 = vpow2.f32 %v1648_v22 }
 0x73e   : > { %3815 = vrcp.f32 %v1731_v2 }
 0x73f   : > { %3817 = vrcp.f32 %v1729_v0  ;;  %v1733_v52 = vpop.xlane.xlu0 %1732 }
 0x740   : > { %3819 = vrcp.f32 %v1733_v52 }
 0x741   : > { %3821 = vrcp.f32 %v1727_v51 }
 0x742   : > { %v5455_v30 = vpop.eup %3811  ;;  %3823 = vrcp.f32 %v1725_v61 }
 0x743   : > { %v5457_v58 = vpop.eup %3813  ;;  %1760 = vadd.xlane.f32.xlu0 %v5455_v30  ;;  %3825 = vpow2.f32 %v1684_v18 }
 0x744   : > { %v3816_v41 = vpop.eup %3815  ;;  %1712 = vadd.xlane.f32.xlu2 %v5457_v58  ;;  %3827 = vrcp.f32 %v5414_v44 }
 0x745   : > { %v3818_v20 = vpop.eup %3817  ;;  %v1812_v19 = vmul.f32 %v3816_v41, %v5373_v36  ;;  %3829 = vrcp.f32 %v5409_v43  ;;  %v1603_v41 = vpop.xlane.xlu2 %1602 }
 0x746   : > { %v3820_v34 = vpop.eup %3819  ;;  %v1811_v22 = vmul.f32 %v3818_v20, %v5365_v45  ;;  %3831 = vrcp.f32 %v5407_v15  ;;  %v1634_v45 = vsub.f32 %v5363_v35, %v5438_v53  ;;  %v1606_v35 = vsub.f32 %v5210_v40, %v5289_v62 }
 0x747   : > { %v1605_v0 = vpop.xlane.xlu0 %1604  ;;  %v1813_v51 = vmul.f32 %v3820_v34, %v5380_v56  ;;  %v3822_v60 = vpop.eup %3821  ;;  %v1626_v56 = vsub.f32 %v5300_v63, %v5401_v31  ;;  %v1624_v40 = vsub.f32 %v5286_v26, %v5397_v3  ;;  %v1627_v62 = vsub.f32 %v5308_v7, %v5403_v33 }
 0x748   : > { %v1637_v61 = vsub.f32 %v5387_v16, %v1605_v0  ;;  %v3824_v13 = vpop.eup %3823  ;;  %v1810_v44 = vmul.f32 %v3822_v60, %v5357_v50  ;;  %v1694_v52 = vmul.f32 1.442695, %v1634_v45  ;;  %v1638_v53 = vmul.f32 1.442695, %v1606_v35 }
 0x749   : > { %v1837_v14 = vpack.c.bf16 %v1813_v51, %v1812_v19  ;;  %v5470_v6 = vpop.eup %3825  ;;  %v1809_v15 = vmul.f32 %v3824_v13, %v5349_v48  ;;  %v1678_v50 = vmul.f32 1.442695, %v1626_v56  ;;  %v1622_v60 = vsub.f32 %v5278_v46, %v5393_v11 }
 0x74a   : > { %v1700_v54 = vmul.f32 1.442695, %v1637_v61  ;;  %v3828_v36 = vpop.eup %3827  ;;  %v1836_v16 = vpack.c.bf16 %v1811_v22, %v1810_v44  ;;  %v1607_v3 = vsub.f32 %v5214_v8, %v5295_v28  ;;  %v1625_v46 = vsub.f32 %v5292_v24, %v5399_v4 }
 0x74b   : > { %1846 = vmatpush.bf16.msrb.mxu3 %v1837_v14  ;;  %v3830_v43 = vpop.eup %3829  ;;  %v1808_v2 = vmul.f32 %v3828_v36, %v5341_v1  ;;  %v1636_v1 = vsub.f32 %v5378_v29, %v1603_v41  ;;  %v1680_v29 = vmul.f32 1.442695, %v1627_v62  ;;  %v1670_v26 = vmul.f32 1.442695, %v1622_v60 }
 0x74c   : > { %3833 = vpow2.f32 %v1700_v54  ;;  %1748 = vadd.xlane.f32.xlu2 %v5470_v6  ;;  %v3832_v42 = vpop.eup %3831  ;;  %v1807_v63 = vmul.f32 %v3830_v43, %v5333_v17  ;;  %v1640_v7 = vmul.f32 1.442695, %v1607_v3  ;;  %v1676_v11 = vmul.f32 1.442695, %v1625_v46 }
 0x74d   : > { %3835 = vpow2.f32 %v1644_v59  ;;  %v1835_v18 = vpack.c.bf16 %v1809_v15, %v1808_v2  ;;  %v1806_v48 = vmul.f32 %v3832_v42, %v5326_v38  ;;  %v1698_v12 = vmul.f32 1.442695, %v1636_v1 }
 0x74e   : > { %3837 = vpow2.f32 %v1678_v50  ;;  %v1674_v38 = vmul.f32 1.442695, %v1624_v40  ;;  %v1623_v28 = vsub.f32 %v5282_v25, %v5395_v37 }
 0x74f   : > { %1847 = vmatpush.bf16.msrb.mxu3 %v1836_v16  ;;  %3839 = vpow2.f32 %v1694_v52  ;;  %v1834_v17 = vpack.c.bf16 %v1807_v63, %v1806_v48  ;;  %v1715_v24 = vpop.xlane.xlu0 %1714 }
 0x750   : > { %3841 = vpow2.f32 %v1638_v53  ;;  %v1672_v14 = vmul.f32 1.442695, %v1623_v28 }
 0x751   : > { %3843 = vpow2.f32 %v1698_v12 }
 0x752   : > { %v5481_v31 = vpop.eup %3833  ;;  %3845 = vpow2.f32 %v1674_v38 }
 0x753   : > { %v5483_v20 = vpop.eup %3835  ;;  %1764 = vadd.xlane.f32.xlu0 %v5481_v31  ;;  %1848 = vmatpush.bf16.msrb.mxu3 %v1835_v18  ;;  %3847 = vpow2.f32 %v1680_v29 }
 0x754   : > { %1708 = vadd.xlane.f32.xlu2 %v5483_v20  ;;  %v5491_v34 = vpop.eup %3837  ;;  %3849 = vpow2.f32 %v1670_v26 }
 0x755   : > { %v5493_v0 = vpop.eup %3839  ;;  %3851 = vpow2.f32 %v1640_v7 }
 0x756   : > { %v5501_v19 = vpop.eup %3841  ;;  %3853 = vpow2.f32 %v1676_v11 }
 0x757   : > { %1849 = vmatpush.bf16.msrb.mxu3 %v1834_v17  ;;  %v5503_v51 = vpop.eup %3843  ;;  %3855 = vpow2.f32 %v1672_v14 }
 0x758   : > { %v5511_v33 = vpop.eup %3845  ;;  %3857 = vrcp.f32 %v1715_v24 }
 0x759   : > { %v5513_v61 = vpop.eup %3847 }
 0x75a   : > { %v5519_v59 = vpop.eup %3849 }
 0x75b   : > { %1742 = vadd.xlane.f32.xlu0 %v5491_v34  ;;  %v5521_v8 = vpop.eup %3851 }
 0x75c   : > { %1758 = vadd.xlane.f32.xlu2 %v5493_v0  ;;  %v5527_v22 = vpop.eup %3853 }
 0x75d   : > { %v5530_v4 = vpop.eup %3855 }
 0x75e   : > { %v3858_v56 = vpop.eup %3857 }
 0x75f   : > { %v1804_v45 = vmul.f32 %v3858_v56, %v5390_v23 }
 0x763   : > { %1702 = vadd.xlane.f32.xlu0 %v5501_v19 }
 0x764   : > { %1762 = vadd.xlane.f32.xlu2 %v5503_v51 }
 0x76b   : > { %1738 = vadd.xlane.f32.xlu0 %v5511_v33 }
 0x76c   : > { %1744 = vadd.xlane.f32.xlu2 %v5513_v61 }
 0x773   : > { %1734 = vadd.xlane.f32.xlu0 %v5519_v59 }
 0x774   : > { %1704 = vadd.xlane.f32.xlu2 %v5521_v8 }
 0x77c   : > { %1740 = vadd.xlane.f32.xlu2 %v5527_v22 }
 0x784   : > { %1736 = vadd.xlane.f32.xlu2 %v5530_v4 }
 0x78e   : > { %v1751_v13 = vpop.xlane.xlu0 %1750 }
 0x796   : > { %v1711_v44 = vpop.xlane.xlu0 %1710 }
 0x79e   : > { %v1755_v54 = vpop.xlane.xlu2 %1754  ;;  %v1747_v15 = vpop.xlane.xlu0 %1746 }
 0x7a6   : > { %v1707_v42 = vpop.xlane.xlu0 %1706 }
 0x7a7   : > { %v1717_v36 = vpop.xlane.xlu2 %1716 }
 0x7a8   : > { %3859 = vrcp.f32 %v1717_v36 }
 0x7a9   : > { %3861 = vrcp.f32 %v1711_v44 }
 0x7ae   : > { %v3860_v25 = vpop.eup %3859 }
 0x7af   : > { %v1753_v37 = vpop.xlane.xlu2 %1752  ;;  %v1805_v16 = vmul.f32 %v3860_v25, %v5442_v39  ;;  %v3862_v50 = vpop.eup %3861 }
 0x7b0   : > { %v1802_v63 = vmul.f32 %v3862_v50, %v5421_v5 }
 0x7b1   : > { %v1833_v43 = vpack.c.bf16 %v1805_v16, %v1804_v45 }
 0x7b3   : > { %1850 = vmatpush.bf16.msrb.mxu3 %v1833_v43 }
 0x7b6   : > { %v1761_v35 = vpop.xlane.xlu0 %1760 }
 0x7b7   : > { %v1713_v2 = vpop.xlane.xlu2 %1712 }
 0x7b8   : > { %3863 = vrcp.f32 %v1713_v2 }
 0x7b9   : > { %3865 = vrcp.f32 %v1707_v42 }
 0x7be   : > { %v3864_v52 = vpop.eup %3863 }
 0x7bf   : > { %v1749_v18 = vpop.xlane.xlu2 %1748  ;;  %v1803_v41 = vmul.f32 %v3864_v52, %v5457_v58  ;;  %v3866_v1 = vpop.eup %3865 }
 0x7c0   : > { %v1800_v12 = vmul.f32 %v3866_v1, %v5436_v32  ;;  %v1757_v58 = vpop.xlane.xlu1 %1756 }
 0x7c1   : > { %v1832_v48 = vpack.c.bf16 %v1803_v41, %v1802_v63 }
 0x7c3   : > { %1851 = vmatpush.bf16.msrb.mxu3 %v1832_v48 }
 0x7c6   : > { %v1765_v39 = vpop.xlane.xlu0 %1764 }
 0x7c7   : > { %v1709_v23 = vpop.xlane.xlu2 %1708 }
 0x7c8   : > { %3867 = vrcp.f32 %v1709_v23 }
 0x7c9   : > { %3869 = vrcp.f32 %v1765_v39 }
 0x7ce   : > { %v3868_v17 = vpop.eup %3867  ;;  %v1743_v38 = vpop.xlane.xlu0 %1742 }
 0x7cf   : > { %v1759_v53 = vpop.xlane.xlu2 %1758  ;;  %v1801_v40 = vmul.f32 %v3868_v17, %v5483_v20  ;;  %v3870_v29 = vpop.eup %3869 }
 0x7d0   : > { %3871 = vrcp.f32 %v1759_v53  ;;  %v1829_v26 = vmul.f32 %v3870_v29, %v5481_v31  ;;  %v6572_v29 = vld [vmem:[#allocation63_spill] sm:$0xff] }
 0x7d1   : > { %v1831_v62 = vpack.c.bf16 %v1801_v40, %v1800_v12  ;;  %v6563_v40 = vld [vmem:[#allocation39_spill] sm:$0xff] }
 0x7d3   : > { %1852 = vmatpush.bf16.msrb.mxu3 %v1831_v62  ;;  %v6566_v62 = vld [vmem:[#allocation22_spill] sm:$0xff] }
 0x7d6   : > { %v3872_v60 = vpop.eup %3871  ;;  %v1703_v7 = vpop.xlane.xlu0 %1702 }
 0x7d7   : > { %v1763_v5 = vpop.xlane.xlu2 %1762  ;;  %v1826_v28 = vmul.f32 %v3872_v60, %v5493_v0  ;;  %v6573_v60 = vld [vmem:[#allocation59_spill] sm:$0xff] }
 0x7d8   : > { %3873 = vrcp.f32 %v1763_v5  ;;  %v6568_v5 = vld [vmem:[#allocation62_spill] sm:$0xff] }
 0x7d9   : > { %3875 = vrcp.f32 %v1761_v35 }
 0x7da   : > { %3877 = vrcp.f32 %v1757_v58  ;;  %v6571_v58 = vld [vmem:[#allocation56_spill] sm:$0xff] }
 0x7db   : > { %3879 = vrcp.f32 %v1755_v54 }
 0x7dc   : > { %3881 = vrcp.f32 %v1753_v37 }
 0x7dd   : > { %3883 = vrcp.f32 %v1751_v13 }
 0x7de   : > { %v3874_v3 = vpop.eup %3873  ;;  %3885 = vrcp.f32 %v1749_v18  ;;  %v1739_v0 = vpop.xlane.xlu0 %1738 }
 0x7df   : > { %v1828_v32 = vmul.f32 %v3874_v3, %v5503_v51  ;;  %v1745_v20 = vpop.xlane.xlu2 %1744  ;;  %v3876_v46 = vpop.eup %3875  ;;  %3887 = vrcp.f32 %v1747_v15  ;;  %v6574_v3 = vld [vmem:[#allocation61_spill] sm:$0xff] }
 0x7e0   : > { %v3878_v14 = vpop.eup %3877  ;;  %v1827_v24 = vmul.f32 %v3876_v46, %v5455_v30  ;;  %3889 = vrcp.f32 %v1703_v7 }
 0x7e1   : > { %v1845_v11 = vpack.c.bf16 %v1829_v26, %v1828_v32  ;;  %v3880_v44 = vpop.eup %3879  ;;  %v1825_v31 = vmul.f32 %v3878_v14, %v5440_v9  ;;  %3891 = vrcp.f32 %v1745_v20  ;;  %v6575_v26 = vld [vmem:[#allocation60_spill] sm:$0xff] }
 0x7e2   : > { %v1844_v54 = vpack.c.bf16 %v1827_v24, %v1826_v28  ;;  %v3882_v36 = vpop.eup %3881  ;;  %v1824_v56 = vmul.f32 %v3880_v44, %v5431_v10 }
 0x7e3   : > { %1895 = vmatpush.bf16.msra.mxu0 %v1845_v11  ;;  %v3884_v25 = vpop.eup %3883  ;;  %v1823_v37 = vmul.f32 %v3882_v36, %v5450_v57 }
 0x7e4   : > { %v1843_v13 = vpack.c.bf16 %v1825_v31, %v1824_v56  ;;  %v3886_v30 = vpop.eup %3885  ;;  %v1822_v16 = vmul.f32 %v3884_v25, %v5416_v27 }
 0x7e5   : > { %v3888_v45 = vpop.eup %3887  ;;  %v1821_v2 = vmul.f32 %v3886_v30, %v5470_v6 }
 0x7e6   : > { %v3890_v9 = vpop.eup %3889  ;;  %v1842_v43 = vpack.c.bf16 %v1823_v37, %v1822_v16  ;;  %v1820_v57 = vmul.f32 %v3888_v45, %v5429_v21  ;;  %v1735_v48 = vpop.xlane.xlu0 %1734 }
 0x7e7   : > { %1896 = vmatpush.bf16.msra.mxu0 %v1844_v54  ;;  %v1705_v51 = vpop.xlane.xlu2 %1704  ;;  %v3892_v15 = vpop.eup %3891  ;;  %v1798_v50 = vmul.f32 %v3890_v9, %v5501_v19 }
 0x7e8   : > { %3893 = vrcp.f32 %v1705_v51  ;;  %v1841_v41 = vpack.c.bf16 %v1821_v2, %v1820_v57  ;;  %v1819_v27 = vmul.f32 %v3892_v15, %v5513_v61 }
 0x7e9   : > { %3895 = vrcp.f32 %v1743_v38  ;;  %v6567_v38 = vld [vmem:[#allocation23_spill] sm:$0xff] }
 0x7ea   : > { %3897 = vrcp.f32 %v1739_v0 }
 0x7eb   : > { %1897 = vmatpush.bf16.msra.mxu0 %v1843_v13 }
 0x7ee   : > { %v3894_v42 = vpop.eup %3893 }
 0x7ef   : > { %1898 = vmatpush.bf16.msra.mxu0 %v1842_v43  ;;  %v1741_v10 = vpop.xlane.xlu2 %1740  ;;  %v1799_v52 = vmul.f32 %v3894_v42, %v5521_v8  ;;  %v3896_v18 = vpop.eup %3895 }
 0x7f0   : > { %3899 = vrcp.f32 %v1741_v10  ;;  %v1818_v6 = vmul.f32 %v3896_v18, %v5491_v34  ;;  %v3898_v35 = vpop.eup %3897 }
 0x7f1   : > { %v1830_v63 = vpack.c.bf16 %v1799_v52, %v1798_v50  ;;  %3901 = vrcp.f32 %v1735_v48  ;;  %v1816_v21 = vmul.f32 %v3898_v35, %v5511_v33  ;;  %v6564_v33 = vld [vmem:[#allocation20_spill] sm:$0xff] }
 0x7f2   : > { %v1840_v23 = vpack.c.bf16 %v1819_v27, %v1818_v6 }
 0x7f3   : > { %1853 = vmatpush.bf16.msrb.mxu3 %v1830_v63  ;;  %1899 = vmatpush.bf16.msra.mxu0 %v1841_v41 }
 0x7f6   : > { %v3900_v39 = vpop.eup %3899  ;;  %1854 = vmatmul.bf16.vlgmr.msrb.gmra.mxu3 %v5069_v47 }
 0x7f7   : > { %1900 = vmatpush.bf16.msra.mxu0 %v1840_v23  ;;  %v1737_v19 = vpop.xlane.xlu2 %1736  ;;  %v1817_v8 = vmul.f32 %v3900_v39, %v5527_v22  ;;  %v3902_v61 = vpop.eup %3901  ;;  %v6565_v22 = vld [vmem:[#allocation41_spill] sm:$0xff] }
 0x7f8   : > { %3903 = vrcp.f32 %v1737_v19  ;;  %v1814_v53 = vmul.f32 %v3902_v61, %v5519_v59  ;;  %v6569_v59 = vld [vmem:[#allocation64_spill] sm:$0xff] }
 0x7f9   : > { %v1839_v1 = vpack.c.bf16 %v1817_v8, %v1816_v21 }
 0x7fb   : > { %1901 = vmatpush.bf16.msra.mxu0 %v1839_v1 }
 0x7fe   : > { %v3904_v17 = vpop.eup %3903 }
 0x7ff   : > { %v1815_v34 = vmul.f32 %v3904_v17, %v5530_v4  ;;  %v6570_v4 = vld [vmem:[#allocation42_spill] sm:$0xff] }
 0x801   : > { %v1838_v12 = vpack.c.bf16 %v1815_v34, %v1814_v53 }
 0x803   : > { %1902 = vmatpush.bf16.msra.mxu0 %v1838_v12 }
 0x806   : > { %1859 = vmatmul.bf16.gmra.mxu3 %v5075_v55  ;;  %1903 = vmatmul.bf16.vlgmr.msra.gmra.mxu0 %v5071_v49 }
 0x816   : > { %1864 = vmatmul.bf16.gmra.mxu3 %v6563_v40  ;;  %1908 = vmatmul.bf16.gmra.mxu0 %v6564_v33 }
 0x826   : > { %1869 = vmatmul.bf16.gmra.mxu3 %v6565_v22  ;;  %1913 = vmatmul.bf16.gmra.mxu0 %v6566_v62 }
 0x836   : > { %1874 = vmatmul.bf16.gmra.mxu3 %v6567_v38  ;;  %1918 = vmatmul.bf16.gmra.mxu0 %v6568_v5 }
 0x846   : > { %1879 = vmatmul.bf16.gmra.mxu3 %v6569_v59  ;;  %1923 = vmatmul.bf16.gmra.mxu0 %v6570_v4 }
 0x856   : > { %1884 = vmatmul.bf16.gmra.mxu3 %v6571_v58  ;;  %1928 = vmatmul.bf16.gmra.mxu0 %v6572_v29 }
 0x866   : > { %1889 = vmatmul.bf16.gmra.mxu3 %v6573_v60  ;;  %1933 = vmatmul.bf16.gmra.mxu0 %v6574_v3 }
 0x876   : > { %1938 = vmatmul.bf16.gmra.mxu0 %v6575_v26 }
 0x879   : > { %v1855_v7 = vpop.f32.mrf.mxu3 }
 0x881   : > { %v1857_v32 = vpop.f32.mrf.mxu3 }
 0x883   : > { %v1904_v20 = vpop.f32.mrf.mxu0 }
 0x884   : > { %v1905_v46 = vadd.f32 %v1904_v20, %v1855_v7 }
 0x889   : > { %v1860_v11 = vpop.f32.mrf.mxu3 }
 0x88b   : > { %v1906_v28 = vpop.f32.mrf.mxu0 }
 0x88c   : > { %v1907_v50 = vadd.f32 %v1906_v28, %v1857_v32 }
 0x891   : > { %v1862_v14 = vpop.f32.mrf.mxu3 }
 0x893   : > { %v1909_v24 = vpop.f32.mrf.mxu0 }
 0x894   : > { %v1910_v44 = vadd.f32 %v1909_v24, %v1860_v11 }
 0x899   : > { %v1865_v54 = vpop.f32.mrf.mxu3 }
 0x89b   : > { %v1911_v31 = vpop.f32.mrf.mxu0 }
 0x89c   : > { %v1912_v35 = vadd.f32 %v1911_v31, %v1862_v14 }
 0x8a1   : > { %v1867_v36 = vpop.f32.mrf.mxu3 }
 0x8a3   : > { %v1914_v51 = vpop.f32.mrf.mxu0 }
 0x8a4   : > { %v1915_v45 = vadd.f32 %v1914_v51, %v1865_v54 }
 0x8a6   : > { %v1944_v15 = vadd.f32 1e-06, %v1915_v45 }
 0x8a8   : > { %3905 = vrcp.f32 %v1944_v15 }
 0x8a9   : > { %v1870_v56 = vpop.f32.mrf.mxu3 }
 0x8ab   : > { %v1916_v25 = vpop.f32.mrf.mxu0 }
 0x8ac   : > { %v1917_v1 = vadd.f32 %v1916_v25, %v1867_v36 }
 0x8ae   : > { %v3906_v42 = vpop.eup %3905 }
 0x8af   : > { %v5573_v10 = vperm.slane %v3906_v42, 0 }
 0x8b1   : > { %v1872_v0 = vpop.f32.mrf.mxu3  ;;  %v5576_v18 = vmul.f32 %v5573_v10, %v1905_v46  ;;  %v5579_v63 = vmul.f32 %v5573_v10, %v1907_v50  ;;  %v5586_v48 = vmul.f32 %v5573_v10, %v1910_v44  ;;  %v5589_v19 = vmul.f32 %v5573_v10, %v1912_v35 }
 0x8b2   : > { %v1951_v21 = vmul.f32 %v5573_v10, %v1915_v45  ;;  %v1952_v17 = vmul.f32 %v5573_v10, %v1917_v1 }
 0x8b3   : > { %v1919_v13 = vpop.f32.mrf.mxu0  ;;  %v1979_v41 = vmul.f32 %v5576_v18, %v5576_v18  ;;  %v1980_v27 = vmul.f32 %v5579_v63, %v5579_v63  ;;  %v1981_v8 = vmul.f32 %v5586_v48, %v5586_v48  ;;  %v1982_v34 = vmul.f32 %v5589_v19, %v5589_v19 }
 0x8b4   : > { %v5595_v53 = vmul.f32 0.0, %v1951_v21  ;;  %v1920_v12 = vadd.f32 %v1919_v13, %v1870_v56  ;;  %v5601_v28 = vmul.f32 0.0, %v1952_v17 }
 0x8b5   : > { %v1995_v23 = vadd.f32 %v1980_v27, %v1979_v41 }
 0x8b6   : > { %v1983_v11 = vmul.f32 %v5595_v53, %v5595_v53  ;;  %v1953_v14 = vmul.f32 %v5573_v10, %v1920_v12  ;;  %v1984_v56 = vmul.f32 %v5601_v28, %v5601_v28 }
 0x8b7   : > { %v1996_v61 = vadd.f32 %v1995_v23, %v1981_v8 }
 0x8b8   : > { %v5608_v25 = vmul.f32 0.0, %v1953_v14 }
 0x8b9   : > { %v1875_v37 = vpop.f32.mrf.mxu3  ;;  %v1997_v20 = vadd.f32 %v1996_v61, %v1982_v34 }
 0x8bb   : > { %v1921_v30 = vpop.f32.mrf.mxu0  ;;  %v1998_v31 = vadd.f32 %v1997_v20, %v1983_v11 }
 0x8bc   : > { %v1922_v7 = vadd.f32 %v1921_v30, %v1872_v0 }
 0x8bd   : > { %v1999_v45 = vadd.f32 %v1998_v31, %v1984_v56 }
 0x8be   : > { %v1954_v24 = vmul.f32 %v5573_v10, %v1922_v7 }
 0x8c0   : > { %v5610_v0 = vmul.f32 0.0, %v1954_v24 }
 0x8c1   : > { %v1877_v16 = vpop.f32.mrf.mxu3 }
 0x8c3   : > { %v1924_v9 = vpop.f32.mrf.mxu0 }
 0x8c4   : > { %v1925_v46 = vadd.f32 %v1924_v9, %v1875_v37 }
 0x8c6   : > { %v1955_v36 = vmul.f32 %v5573_v10, %v1925_v46 }
 0x8c8   : > { %v5613_v9 = vmul.f32 0.0, %v1955_v36 }
 0x8c9   : > { %v1880_v43 = vpop.f32.mrf.mxu3 }
 0x8cb   : > { %v1926_v2 = vpop.f32.mrf.mxu0 }
 0x8cc   : > { %v1927_v54 = vadd.f32 %v1926_v2, %v1877_v16  ;;  %v1986_v2 = vmul.f32 %v5610_v0, %v5610_v0 }
 0x8ce   : > { %v1956_v37 = vmul.f32 %v5573_v10, %v1927_v54 }
 0x8d0   : > { %v5620_v42 = vmul.f32 0.0, %v1956_v37 }
 0x8d1   : > { %v1882_v52 = vpop.f32.mrf.mxu3 }
 0x8d2   : > { %v1988_v21 = vmul.f32 %v5620_v42, %v5620_v42 }
 0x8d3   : > { %v1929_v57 = vpop.f32.mrf.mxu0 }
 0x8d4   : > { %v1930_v51 = vadd.f32 %v1929_v57, %v1880_v43  ;;  %v1985_v43 = vmul.f32 %v5608_v25, %v5608_v25 }
 0x8d6   : > { %v1957_v16 = vmul.f32 %v5573_v10, %v1930_v51  ;;  %v2000_v41 = vadd.f32 %v1999_v45, %v1985_v43 }
 0x8d8   : > { %v2001_v23 = vadd.f32 %v2000_v41, %v1986_v2 }
 0x8d9   : > { %v1885_v39 = vpop.f32.mrf.mxu3 }
 0x8db   : > { %v1931_v6 = vpop.f32.mrf.mxu0 }
 0x8dc   : > { %v1932_v30 = vadd.f32 %v1931_v6, %v1882_v52  ;;  %v1987_v52 = vmul.f32 %v5613_v9, %v5613_v9  ;;  %v5625_v6 = vmul.f32 0.0, %v1957_v16 }
 0x8de   : > { %v1958_v50 = vmul.f32 %v5573_v10, %v1932_v30  ;;  %v2002_v17 = vadd.f32 %v2001_v23, %v1987_v52  ;;  %v1989_v34 = vmul.f32 %v5625_v6, %v5625_v6 }
 0x8e0   : > { %v5630_v8 = vmul.f32 0.0, %v1958_v50 }
 0x8e1   : > { %v1887_v44 = vpop.f32.mrf.mxu3 }
 0x8e2   : > { %v1990_v20 = vmul.f32 %v5630_v8, %v5630_v8 }
 0x8e3   : > { %v1934_v32 = vpop.f32.mrf.mxu0 }
 0x8e4   : > { %v1935_v15 = vadd.f32 %v1934_v32, %v1885_v39  ;;  %v2003_v32 = vadd.f32 %v2002_v17, %v1988_v21 }
 0x8e6   : > { %v1959_v35 = vmul.f32 %v5573_v10, %v1935_v15  ;;  %v2004_v11 = vadd.f32 %v2003_v32, %v1989_v34 }
 0x8e8   : > { %v1975_v12 = vmul.f32 0.0, %v1959_v35  ;;  %v2005_v31 = vadd.f32 %v2004_v11, %v1990_v20 }
 0x8e9   : > { %v1890_v27 = vpop.f32.mrf.mxu3 }
 0x8ea   : > { %v1991_v14 = vmul.f32 %v1975_v12, %v1975_v12 }
 0x8eb   : > { %v1936_v13 = vpop.f32.mrf.mxu0 }
 0x8ec   : > { %v1937_v57 = vadd.f32 %v1936_v13, %v1887_v44  ;;  %v2006_v56 = vadd.f32 %v2005_v31, %v1991_v14 }
 0x8ee   : > { %v1960_v1 = vmul.f32 %v5573_v10, %v1937_v57 }
 0x8f0   : > { %v1976_v46 = vmul.f32 0.0, %v1960_v1 }
 0x8f1   : > { %v1892_v44 = vpop.f32.mrf.mxu3 }
 0x8f2   : > { %v1992_v36 = vmul.f32 %v1976_v46, %v1976_v46 }
 0x8f3   : > { %v1939_v39 = vpop.f32.mrf.mxu0 }
 0x8f4   : > { %v1940_v61 = vadd.f32 %v1939_v39, %v1890_v27  ;;  %v2007_v30 = vadd.f32 %v2006_v56, %v1992_v36 }
 0x8f6   : > { %v1961_v7 = vmul.f32 %v5573_v10, %v1940_v61 }
 0x8f8   : > { %v1977_v24 = vmul.f32 0.0, %v1961_v7 }
 0x8fa   : > { %v1993_v13 = vmul.f32 %v1977_v24, %v1977_v24 }
 0x8fb   : > { %v1941_v54 = vpop.f32.mrf.mxu0 }
 0x8fc   : > { %v1942_v51 = vadd.f32 %v1941_v54, %v1892_v44  ;;  %v2008_v16 = vadd.f32 %v2007_v30, %v1993_v13 }
 0x8fe   : > { %v1962_v37 = vmul.f32 %v5573_v10, %v1942_v51 }
 0x900   : > { %v1978_v45 = vmul.f32 0.0, %v1962_v37 }
 0x902   : > { %v1994_v15 = vmul.f32 %v1978_v45, %v1978_v45 }
 0x904   : > { %v2009_v43 = vadd.f32 %v2008_v16, %v1994_v15 }
 0x906   : > { %v2010_v2 = vrot.slane %v2009_v43, 4 }
 0x908   : > { %v2011_v50 = vadd.f32 %v2010_v2, %v2009_v43 }
 0x90a   : > { %v2012_v57 = vrot.slane %v2011_v50, 2 }
 0x90c   : > { %v2013_v41 = vadd.f32 %v2012_v57, %v2011_v50 }
 0x90e   : > { %v2014_v27 = vrot.slane %v2013_v41, 1 }
 0x910   : > { %v2015_v52 = vadd.f32 %v2014_v27, %v2013_v41 }
 0x912   : > { %3907 = vrsqrt.f32 %v2015_v52  ;;  %vm2023_vm6 = vcmp.eq.f32.partialorder %v2015_v52, inf  ;;  %v2026_v10 = vand.u32 2147483648, %v2015_v52  ;;  %vm2025_vm7 = vcmp.eq.f32.partialorder %v2015_v52, 0.0 }
 0x918   : > { %v3908_v35 = vpop.eup %3907 }
 0x919   : > { %v2017_v23 = vmul.f32 %v3908_v35, %v2015_v52 }
 0x91b   : > { %v2018_v39 = vmul.f32 %v3908_v35, %v2017_v23 }
 0x91d   : > { %v2019_v21 = vmul.f32 0.5, %v2018_v39 }
 0x91f   : > { %v2020_v1 = vsub.f32 1.5, %v2019_v21  ;;  %v6576_v21 = vld [vmem:[#allocation18_spill] sm:$0xff] }
 0x921   : > { %v2021_v61 = vmul.f32 %v3908_v35, %v2020_v1  ;;  %v6579_v1 = vld [vmem:[#allocation24_spill] sm:$0xff] }
 0x923   : > { %v2022_v17 = vmul.f32 %v2021_v61, %v2015_v52  ;;  %v6582_v61 = vld [vmem:[#allocation33_spill] sm:$0xff] }
 0x925   : > { %v2024_v34 = vsel %vm2023_vm6, %v2015_v52, %v2022_v17  ;;  %v5662_v17 = vld [vmem:[%s6353_s6] ss:$0 sm:$0xff] }
 0x926   : > { %v2027_v7 = vsel %vm2025_vm7, %v2026_v10, %v2024_v34  ;;  %v6584_v34 = vld [vmem:[#allocation37_spill] sm:$0xff] }
 0x927   : > { %v2028_v32 = vadd.f32 1e-06, %v2027_v7 }
 0x929   : > { %3909 = vrcp.f32 %v2028_v32  ;;  %v2040_v44 = vand.u32 2147483648, %v2028_v32  ;;  %v2038_v31 = vand.u32 2147483647, %v2028_v32  ;;  %vm2034_vm9 = vweird.f32 %v2028_v32 }
 0x92b   : > { %v2041_v51 = vor.u32 1.1754944e-38, %v2040_v44  ;;  %vm2039_vm11 = vcmp.eq.f32.partialorder %v2038_v31, 8.507059e+37 }
 0x92f   : > { %v3910_v20 = vpop.eup %3909 }
 0x930   : > { %v2030_v11 = vmul.f32 %v3910_v20, %v2028_v32  ;;  %vm2035_vm8 = vweird.f32 %v3910_v20 }
 0x931   : > { %vm2036_vm10 = vmor %vm2034_vm9, %vm2035_vm8 }
 0x932   : > { %v2031_v14 = vsub.f32 1.0, %v2030_v11 }
 0x934   : > { %v2032_v54 = vmul.f32 %v3910_v20, %v2031_v14  ;;  %v6585_v14 = vld [vmem:[#allocation38_spill] sm:$0xff] }
 0x936   : > { %v2033_v36 = vadd.f32 %v3910_v20, %v2032_v54 }
 0x938   : > { %v2037_v56 = vsel %vm2036_vm10, %v3910_v20, %v2033_v36 }
 0x939   : > { %v2042_v13 = vsel %vm2039_vm11, %v2041_v51, %v2037_v56  ;;  %v6586_v51 = vld [vmem:[#allocation40_spill] sm:$0xff] }
 0x93a   : > { %v2058_v37 = vmul.f32 %v2042_v13, %v1977_v24  ;;  %v2059_v30 = vmul.f32 %v2042_v13, %v1978_v45  ;;  %v2056_v15 = vmul.f32 %v2042_v13, %v1975_v12  ;;  %v2057_v43 = vmul.f32 %v2042_v13, %v1976_v46 }
 0x93b   : > { %v2054_v50 = vmul.f32 %v2042_v13, %v5625_v6  ;;  %v2055_v57 = vmul.f32 %v2042_v13, %v5630_v8  ;;  %v2052_v27 = vmul.f32 %v2042_v13, %v5613_v9  ;;  %v2053_v52 = vmul.f32 %v2042_v13, %v5620_v42 }
 0x93c   : > { %v2067_v16 = vpack.c.bf16 %v2059_v30, %v2058_v37  ;;  %v2066_v2 = vpack.c.bf16 %v2057_v43, %v2056_v15  ;;  %v2050_v24 = vmul.f32 %v2042_v13, %v5608_v25  ;;  %v2051_v45 = vmul.f32 %v2042_v13, %v5610_v0 }
 0x93d   : > { %v2065_v41 = vpack.c.bf16 %v2055_v57, %v2054_v50  ;;  %v2064_v35 = vpack.c.bf16 %v2053_v52, %v2052_v27  ;;  %v2048_v46 = vmul.f32 %v2042_v13, %v5595_v53  ;;  %v2049_v6 = vmul.f32 %v2042_v13, %v5601_v28  ;;  %v6577_v53 = vld [vmem:[#allocation19_spill] sm:$0xff]  ;;  %v6578_v28 = vld [vmem:[#allocation21_spill] sm:$0xff]  ;;  %v6588_v57 = vld [vmem:[#allocation46_spill] sm:$0xff] }
 0x93e   : > { %2068 = vmatpush.bf16.msra.mxu1 %v2067_v16  ;;  %v2063_v12 = vpack.c.bf16 %v2051_v45, %v2050_v24  ;;  %v2046_v23 = vmul.f32 %v2042_v13, %v5586_v48  ;;  %v2047_v9 = vmul.f32 %v2042_v13, %v5589_v19  ;;  %v2044_v39 = vmul.f32 %v2042_v13, %v5576_v18  ;;  %v6580_v48 = vld [vmem:[#allocation27_spill] sm:$0xff]  ;;  %v6581_v19 = vld [vmem:[#allocation30_spill] sm:$0xff]  ;;  %v6583_v18 = vld [vmem:[#allocation36_spill] sm:$0xff] }
 0x93f   : > { %v2062_v8 = vpack.c.bf16 %v2049_v6, %v2048_v46  ;;  %v2045_v25 = vmul.f32 %v2042_v13, %v5579_v63  ;;  %v6587_v16 = vld [vmem:[#allocation43_spill] sm:$0xff]  ;;  %v6589_v24 = vld [vmem:[#allocation49_spill] sm:$0xff] }
 0x940   : > { %v2061_v42 = vpack.c.bf16 %v2047_v9, %v2046_v23 }
 0x941   : > { %v2060_v0 = vpack.c.bf16 %v2045_v25, %v2044_v39  ;;  %v6591_v25 = vld [vmem:[#allocation55_spill] sm:$0xff] }
 0x942   : > { %2069 = vmatpush.bf16.msra.mxu1 %v2066_v2 }
 0x946   : > { %2070 = vmatpush.bf16.msra.mxu1 %v2065_v41 }
 0x94a   : > { %2071 = vmatpush.bf16.msra.mxu1 %v2064_v35 }
 0x94e   : > { %2072 = vmatpush.bf16.msra.mxu1 %v2063_v12 }
 0x952   : > { %2073 = vmatpush.bf16.msra.mxu1 %v2062_v8  ;;  %v6590_v8 = vld [vmem:[#allocation52_spill] sm:$0xff] }
 0x956   : > { %2074 = vmatpush.bf16.msra.mxu1 %v2061_v42 }
 0x95a   : > { %2075 = vmatpush.bf16.msra.mxu1 %v2060_v0 }
 0x95d   : > { %2076 = vmatmul.bf16.vlgmr.msra.gmra.mxu1 %v6576_v21 }
 0x96d   : > { %2081 = vmatmul.bf16.gmra.mxu1 %v6577_v53 }
 0x97d   : > { %2086 = vmatmul.bf16.gmra.mxu1 %v6578_v28 }
 0x98d   : > { %2091 = vmatmul.bf16.gmra.mxu1 %v6579_v1 }
 0x99d   : > { %2096 = vmatmul.bf16.gmra.mxu1 %v6580_v48 }
 0x9ad   : > { %2101 = vmatmul.bf16.gmra.mxu1 %v6581_v19 }
 0x9bd   : > { %2106 = vmatmul.bf16.gmra.mxu1 %v6582_v61 }
 0x9cd   : > { %2111 = vmatmul.bf16.gmra.mxu1 %v6583_v18 }
 0x9da   : > { %v2077_v63 = vpop.f32.mrf.mxu1 }
 0x9db   : > { %v5665_v10 = vadd.f32 %v5662_v17, %v2077_v63 }
 0x9dd   : > { %2116 = vmatmul.bf16.gmra.mxu1 %v6584_v34  ;;  %2157 = vmax.xlane.f32.xlu2 %v5665_v10 }
 0x9e2   : > { %v2079_v7 = vpop.f32.mrf.mxu1 }
 0x9e3   : > { %v5670_v32 = vadd.f32 %v5662_v17, %v2079_v7 }
 0x9e5   : > { %2159 = vmax.xlane.f32.xlu1 %v5670_v32 }
 0x9ea   : > { %v2082_v20 = vpop.f32.mrf.mxu1 }
 0x9eb   : > { %v5674_v11 = vadd.f32 %v5662_v17, %v2082_v20 }
 0x9ed   : > { %2121 = vmatmul.bf16.gmra.mxu1 %v6585_v14  ;;  %2161 = vmax.xlane.f32.xlu0 %v5674_v11 }
 0x9f2   : > { %v2084_v44 = vpop.f32.mrf.mxu1 }
 0x9f3   : > { %v5679_v54 = vadd.f32 %v5662_v17, %v2084_v44 }
 0x9f5   : > { %2163 = vmax.xlane.f32.xlu2 %v5679_v54 }
 0x9fa   : > { %v2087_v31 = vpop.f32.mrf.mxu1 }
 0x9fb   : > { %v5683_v36 = vadd.f32 %v5662_v17, %v2087_v31 }
 0x9fd   : > { %2126 = vmatmul.bf16.gmra.mxu1 %v6586_v51  ;;  %2165 = vmax.xlane.f32.xlu1 %v5683_v36 }
 0xa02   : > { %v2089_v56 = vpop.f32.mrf.mxu1 }
 0xa03   : > { %v5688_v13 = vadd.f32 %v5662_v17, %v2089_v56 }
 0xa05   : > { %2167 = vmax.xlane.f32.xlu0 %v5688_v13 }
 0xa0a   : > { %v2092_v37 = vpop.f32.mrf.mxu1 }
 0xa0b   : > { %v5692_v30 = vadd.f32 %v5662_v17, %v2092_v37 }
 0xa0d   : > { %2131 = vmatmul.bf16.gmra.mxu1 %v6587_v16  ;;  %2169 = vmax.xlane.f32.xlu2 %v5692_v30 }
 0xa12   : > { %v2094_v15 = vpop.f32.mrf.mxu1 }
 0xa13   : > { %v5697_v43 = vadd.f32 %v5662_v17, %v2094_v15 }
 0xa15   : > { %2171 = vmax.xlane.f32.xlu1 %v5697_v43 }
 0xa1a   : > { %v2097_v2 = vpop.f32.mrf.mxu1 }
 0xa1b   : > { %v5701_v50 = vadd.f32 %v5662_v17, %v2097_v2 }
 0xa1d   : > { %2136 = vmatmul.bf16.gmra.mxu1 %v6588_v57  ;;  %2173 = vmax.xlane.f32.xlu0 %v5701_v50 }
 0xa22   : > { %v2099_v41 = vpop.f32.mrf.mxu1 }
 0xa23   : > { %v5706_v27 = vadd.f32 %v5662_v17, %v2099_v41 }
 0xa25   : > { %2175 = vmax.xlane.f32.xlu2 %v5706_v27 }
 0xa2a   : > { %v2102_v52 = vpop.f32.mrf.mxu1 }
 0xa2b   : > { %v5710_v35 = vadd.f32 %v5662_v17, %v2102_v52 }
 0xa2d   : > { %2141 = vmatmul.bf16.gmra.mxu1 %v6589_v24  ;;  %2177 = vmax.xlane.f32.xlu1 %v5710_v35 }
 0xa32   : > { %v2104_v45 = vpop.f32.mrf.mxu1 }
 0xa33   : > { %v5715_v12 = vadd.f32 %v5662_v17, %v2104_v45 }
 0xa35   : > { %2179 = vmax.xlane.f32.xlu0 %v5715_v12 }
 0xa3a   : > { %v2107_v46 = vpop.f32.mrf.mxu1 }
 0xa3b   : > { %v5719_v6 = vadd.f32 %v5662_v17, %v2107_v46 }
 0xa3d   : > { %2146 = vmatmul.bf16.gmra.mxu1 %v6590_v8  ;;  %2181 = vmax.xlane.f32.xlu0 %v5719_v6 }
 0xa42   : > { %v2109_v23 = vpop.f32.mrf.mxu1 }
 0xa43   : > { %v5724_v9 = vadd.f32 %v5662_v17, %v2109_v23 }
 0xa45   : > { %2183 = vmax.xlane.f32.xlu2 %v5724_v9 }
 0xa4a   : > { %v2112_v42 = vpop.f32.mrf.mxu1 }
 0xa4b   : > { %v2113_v39 = vadd.f32 %v5662_v17, %v2112_v42 }
 0xa4d   : > { %2151 = vmatmul.bf16.gmra.mxu1 %v6591_v25  ;;  %2185 = vmax.xlane.f32.xlu0 %v2113_v39 }
 0xa50   : > { %v5773_v57 = vpop.xlane.xlu2 %2157 }
 0xa52   : > { %v2114_v0 = vpop.f32.mrf.mxu1 }
 0xa53   : > { %v5730_v21 = vadd.f32 %v5662_v17, %v2114_v0 }
 0xa55   : > { %2187 = vmax.xlane.f32.xlu2 %v5730_v21 }
 0xa5a   : > { %v2117_v53 = vpop.f32.mrf.mxu1 }
 0xa5b   : > { %v5734_v28 = vadd.f32 %v5662_v17, %v2117_v53 }
 0xa5d   : > { %2189 = vmax.xlane.f32.xlu1 %v5734_v28 }
 0xa60   : > { %v5765_v37 = vpop.xlane.xlu0 %2161 }
 0xa62   : > { %v2119_v1 = vpop.f32.mrf.mxu1 }
 0xa63   : > { %v5738_v48 = vadd.f32 %v5662_v17, %v2119_v1 }
 0xa65   : > { %2191 = vmax.xlane.f32.xlu0 %v5738_v48 }
 0xa68   : > { %v5779_v45 = vpop.xlane.xlu2 %2163 }
 0xa6a   : > { %v2122_v19 = vpop.f32.mrf.mxu1 }
 0xa6b   : > { %v5742_v61 = vadd.f32 %v5662_v17, %v2122_v19 }
 0xa6d   : > { %2193 = vmax.xlane.f32.xlu0 %v5742_v61 }
 0xa72   : > { %v2124_v18 = vpop.f32.mrf.mxu1 }
 0xa73   : > { %v5746_v63 = vadd.f32 %v5662_v17, %v2124_v18  ;;  %v5789_v18 = vpop.xlane.xlu1 %2159 }
 0xa75   : > { %2195 = vmax.xlane.f32.xlu2 %v5746_v63 }
 0xa78   : > { %v5771_v2 = vpop.xlane.xlu0 %2167 }
 0xa7a   : > { %v2127_v34 = vpop.f32.mrf.mxu1 }
 0xa7b   : > { %v5750_v7 = vadd.f32 %v5662_v17, %v2127_v34 }
 0xa7d   : > { %2197 = vmax.xlane.f32.xlu1 %v5750_v7 }
 0xa80   : > { %v2170_v42 = vpop.xlane.xlu2 %2169 }
 0xa82   : > { %v2129_v20 = vpop.f32.mrf.mxu1 }
 0xa83   : > { %v5754_v14 = vadd.f32 %v5662_v17, %v2129_v20 }
 0xa85   : > { %2199 = vmax.xlane.f32.xlu0 %v5754_v14 }
 0xa8a   : > { %v2132_v44 = vpop.f32.mrf.mxu1 }
 0xa8b   : > { %v5758_v31 = vadd.f32 %v5662_v17, %v2132_v44 }
 0xa8d   : > { %2201 = vmax.xlane.f32.xlu2 %v5758_v31 }
 0xa90   : > { %v2174_v24 = vpop.xlane.xlu0 %2173 }
 0xa92   : > { %v2134_v51 = vpop.f32.mrf.mxu1 }
 0xa93   : > { %v5762_v56 = vadd.f32 %v5662_v17, %v2134_v51 }
 0xa95   : > { %2203 = vmax.xlane.f32.xlu1 %v5762_v56 }
 0xa98   : > { %v2176_v53 = vpop.xlane.xlu2 %2175 }
 0xa9a   : > { %v2137_v16 = vpop.f32.mrf.mxu1 }
 0xa9b   : > { %v5768_v15 = vadd.f32 %v5662_v17, %v2137_v16 }
 0xa9d   : > { %2205 = vmax.xlane.f32.xlu0 %v5768_v15 }
 0xaa2   : > { %v2139_v41 = vpop.f32.mrf.mxu1 }
 0xaa3   : > { %v5776_v52 = vadd.f32 %v5662_v17, %v2139_v41  ;;  %v5795_v41 = vpop.xlane.xlu1 %2165 }
 0xaa5   : > { %2207 = vmax.xlane.f32.xlu2 %v5776_v52 }
 0xaa8   : > { %v2180_v23 = vpop.xlane.xlu0 %2179 }
 0xaaa   : > { %v2142_v46 = vpop.f32.mrf.mxu1 }
 0xaab   : > { %v5782_v8 = vadd.f32 %v5662_v17, %v2142_v46 }
 0xaad   : > { %2209 = vmax.xlane.f32.xlu1 %v5782_v8 }
 0xab0   : > { %v2182_v1 = vpop.xlane.xlu0 %2181 }
 0xab1   : > { %v2233_v26 = vsub.f32 %v5719_v6, %v2182_v1 }
 0xab2   : > { %v2144_v25 = vpop.f32.mrf.mxu1 }
 0xab3   : > { %v5786_v0 = vadd.f32 %v5662_v17, %v2144_v25  ;;  %v2277_v3 = vmul.f32 1.442695, %v2233_v26 }
 0xab5   : > { %2211 = vmax.xlane.f32.xlu0 %v5786_v0 }
 0xab8   : > { %v2184_v20 = vpop.xlane.xlu2 %2183 }
 0xaba   : > { %v2147_v19 = vpop.f32.mrf.mxu1 }
 0xabb   : > { %v5792_v34 = vadd.f32 %v5662_v17, %v2147_v19 }
 0xabd   : > { %2213 = vmax.xlane.f32.xlu2 %v5792_v34 }
 0xac0   : > { %v2186_v44 = vpop.xlane.xlu0 %2185 }
 0xac1   : > { %v2235_v51 = vsub.f32 %v2113_v39, %v2186_v44  ;;  %v2172_v39 = vpop.xlane.xlu1 %2171 }
 0xac2   : > { %v2149_v16 = vpop.f32.mrf.mxu1 }
 0xac3   : > { %v2281_v46 = vmul.f32 1.442695, %v2235_v51  ;;  %v5798_v25 = vadd.f32 %v5662_v17, %v2149_v16  ;;  %v2230_v51 = vsub.f32 %v5706_v27, %v2176_v53  ;;  %v2232_v16 = vsub.f32 %v5715_v12, %v2180_v23 }
 0xac4   : > { %v2227_v12 = vsub.f32 %v5692_v30, %v2170_v42 }
 0xac5   : > { %3911 = vpow2.f32 %v2281_v46  ;;  %2215 = vmax.xlane.f32.xlu1 %v5798_v25  ;;  %v2271_v26 = vmul.f32 1.442695, %v2230_v51  ;;  %v2275_v6 = vmul.f32 1.442695, %v2232_v16 }
 0xac6   : > { %v2265_v23 = vmul.f32 1.442695, %v2227_v12 }
 0xac8   : > { %v2188_v60 = vpop.xlane.xlu2 %2187 }
 0xac9   : > { %v2236_v19 = vsub.f32 %v5730_v21, %v2188_v60  ;;  %v2234_v60 = vsub.f32 %v5724_v9, %v2184_v20 }
 0xaca   : > { %v2152_v58 = vpop.f32.mrf.mxu1 }
 0xacb   : > { %v5803_v29 = vpop.eup %3911  ;;  %v2283_v44 = vmul.f32 1.442695, %v2236_v19  ;;  %v5806_v59 = vadd.f32 %v5662_v17, %v2152_v58  ;;  %v2279_v21 = vmul.f32 1.442695, %v2234_v60  ;;  %v2178_v58 = vpop.xlane.xlu1 %2177 }
 0xacc   : > { %2345 = vadd.xlane.f32.xlu2 %v5803_v29  ;;  %v2231_v9 = vsub.f32 %v5710_v35, %v2178_v58  ;;  %v2228_v35 = vsub.f32 %v5697_v43, %v2172_v39 }
 0xacd   : > { %3913 = vpow2.f32 %v2283_v44  ;;  %2217 = vmax.xlane.f32.xlu0 %v5806_v59 }
 0xace   : > { %3915 = vpow2.f32 %v2277_v3  ;;  %v2229_v3 = vsub.f32 %v5701_v50, %v2174_v24  ;;  %v2273_v20 = vmul.f32 1.442695, %v2231_v9  ;;  %v2226_v50 = vsub.f32 %v5688_v13, %v5771_v2 }
 0xacf   : > { %3917 = vpow2.f32 %v2271_v26  ;;  %v2267_v51 = vmul.f32 1.442695, %v2228_v35  ;;  %v2225_v13 = vsub.f32 %v5683_v36, %v5795_v41 }
 0xad0   : > { %3919 = vpow2.f32 %v2275_v6  ;;  %v2263_v24 = vmul.f32 1.442695, %v2226_v50 }
 0xad1   : > { %3921 = vpow2.f32 %v2279_v21  ;;  %v2261_v43 = vmul.f32 1.442695, %v2225_v13 }
 0xad2   : > { %v2154_v1 = vpop.f32.mrf.mxu1  ;;  %3923 = vpow2.f32 %v2265_v23 }
 0xad3   : > { %v5813_v46 = vpop.eup %3913  ;;  %v5816_v19 = vadd.f32 %v5662_v17, %v2154_v1  ;;  %v2269_v17 = vmul.f32 1.442695, %v2229_v3  ;;  %v5860_v21 = vpop.xlane.xlu1 %2189 }
 0xad4   : > { %v5818_v27 = vpop.eup %3915  ;;  %2347 = vadd.xlane.f32.xlu1 %v5813_v46 }
 0xad5   : > { %2341 = vadd.xlane.f32.xlu0 %v5818_v27  ;;  %2219 = vmax.xlane.f32.xlu2 %v5816_v19  ;;  %v5826_v53 = vpop.eup %3917  ;;  %3925 = vpow2.f32 %v2269_v17 }
 0xad6   : > { %v5828_v44 = vpop.eup %3919  ;;  %3927 = vpow2.f32 %v2273_v20 }
 0xad7   : > { %v5830_v30 = vpop.eup %3921  ;;  %3929 = vpow2.f32 %v2263_v24 }
 0xad8   : > { %v5838_v42 = vpop.eup %3923  ;;  %3931 = vpow2.f32 %v2267_v51  ;;  %v5857_v6 = vpop.xlane.xlu0 %2191 }
 0xad9   : > { %3933 = vpow2.f32 %v2261_v43 }
 0xadb   : > { %v5840_v16 = vpop.eup %3925 }
 0xadc   : > { %2339 = vadd.xlane.f32.xlu1 %v5828_v44  ;;  %v5842_v60 = vpop.eup %3927 }
 0xadd   : > { %2335 = vadd.xlane.f32.xlu0 %v5826_v53  ;;  %2343 = vadd.xlane.f32.xlu2 %v5830_v30  ;;  %v5849_v2 = vpop.eup %3929 }
 0xade   : > { %v5851_v39 = vpop.eup %3931 }
 0xadf   : > { %v5855_v26 = vpop.eup %3933 }
 0xae0   : > { %v5864_v41 = vpop.xlane.xlu0 %2193 }
 0xae4   : > { %2333 = vadd.xlane.f32.xlu1 %v5840_v16 }
 0xae5   : > { %2329 = vadd.xlane.f32.xlu0 %v5838_v42  ;;  %2337 = vadd.xlane.f32.xlu2 %v5842_v60 }
 0xae8   : > { %v5862_v36 = vpop.xlane.xlu2 %2195 }
 0xaec   : > { %2327 = vadd.xlane.f32.xlu1 %v5849_v2 }
 0xaed   : > { %2331 = vadd.xlane.f32.xlu2 %v5851_v39 }
 0xaf0   : > { %v2198_v1 = vpop.xlane.xlu1 %2197 }
 0xaf5   : > { %2325 = vadd.xlane.f32.xlu2 %v5855_v26 }
 0xaf8   : > { %v5867_v9 = vpop.xlane.xlu0 %2199 }
 0xb00   : > { %v2202_v58 = vpop.xlane.xlu2 %2201 }
 0xb01   : > { %v2243_v12 = vsub.f32 %v5758_v31, %v2202_v58 }
 0xb03   : > { %v2297_v3 = vmul.f32 1.442695, %v2243_v12 }
 0xb05   : > { %3935 = vpow2.f32 %v2297_v3 }
 0xb08   : > { %v2204_v23 = vpop.xlane.xlu1 %2203 }
 0xb09   : > { %v2244_v17 = vsub.f32 %v5762_v56, %v2204_v23 }
 0xb0b   : > { %v5870_v20 = vpop.eup %3935  ;;  %v2299_v50 = vmul.f32 1.442695, %v2244_v17 }
 0xb0c   : > { %2361 = vadd.xlane.f32.xlu0 %v5870_v20 }
 0xb0d   : > { %3937 = vpow2.f32 %v2299_v50 }
 0xb10   : > { %v2206_v35 = vpop.xlane.xlu0 %2205 }
 0xb11   : > { %v2245_v24 = vsub.f32 %v5768_v15, %v2206_v35 }
 0xb13   : > { %v5874_v51 = vpop.eup %3937  ;;  %v2301_v13 = vmul.f32 1.442695, %v2245_v24 }
 0xb14   : > { %2363 = vadd.xlane.f32.xlu2 %v5874_v51 }
 0xb15   : > { %3939 = vpow2.f32 %v2301_v13 }
 0xb18   : > { %v2208_v31 = vpop.xlane.xlu2 %2207 }
 0xb19   : > { %v2246_v43 = vsub.f32 %v5776_v52, %v2208_v31 }
 0xb1b   : > { %v5878_v58 = vpop.eup %3939  ;;  %v2303_v56 = vmul.f32 1.442695, %v2246_v43 }
 0xb1c   : > { %2365 = vadd.xlane.f32.xlu1 %v5878_v58 }
 0xb1d   : > { %3941 = vpow2.f32 %v2303_v56 }
 0xb20   : > { %v2210_v12 = vpop.xlane.xlu1 %2209 }
 0xb21   : > { %v2247_v3 = vsub.f32 %v5782_v8, %v2210_v12 }
 0xb23   : > { %v5882_v23 = vpop.eup %3941  ;;  %v2305_v15 = vmul.f32 1.442695, %v2247_v3  ;;  %v2241_v3 = vsub.f32 %v5750_v7, %v2198_v1 }
 0xb24   : > { %2367 = vadd.xlane.f32.xlu0 %v5882_v23 }
 0xb25   : > { %3943 = vpow2.f32 %v2305_v15 }
 0xb28   : > { %v2212_v17 = vpop.xlane.xlu0 %2211 }
 0xb29   : > { %v2248_v50 = vsub.f32 %v5786_v0, %v2212_v17  ;;  %v2293_v17 = vmul.f32 1.442695, %v2241_v3  ;;  %v2242_v3 = vsub.f32 %v5754_v14, %v5867_v9 }
 0xb2b   : > { %v5886_v35 = vpop.eup %3943  ;;  %v2307_v52 = vmul.f32 1.442695, %v2248_v50 }
 0xb2c   : > { %2369 = vadd.xlane.f32.xlu2 %v5886_v35 }
 0xb2d   : > { %3945 = vpow2.f32 %v2307_v52 }
 0xb30   : > { %v2214_v24 = vpop.xlane.xlu2 %2213 }
 0xb31   : > { %v2249_v13 = vsub.f32 %v5792_v34, %v2214_v24  ;;  %v2222_v24 = vsub.f32 %v5670_v32, %v5789_v18 }
 0xb33   : > { %v5890_v31 = vpop.eup %3945  ;;  %v2309_v8 = vmul.f32 1.442695, %v2249_v13  ;;  %v2255_v7 = vmul.f32 1.442695, %v2222_v24 }
 0xb34   : > { %2371 = vadd.xlane.f32.xlu1 %v5890_v31 }
 0xb35   : > { %3947 = vpow2.f32 %v2309_v8 }
 0xb38   : > { %v2216_v43 = vpop.xlane.xlu1 %2215 }
 0xb39   : > { %v2250_v56 = vsub.f32 %v5798_v25, %v2216_v43  ;;  %v2223_v25 = vsub.f32 %v5674_v11, %v5765_v37  ;;  %v2237_v37 = vsub.f32 %v5734_v28, %v5860_v21 }
 0xb3b   : > { %v5894_v12 = vpop.eup %3947  ;;  %v2311_v0 = vmul.f32 1.442695, %v2250_v56  ;;  %v2257_v8 = vmul.f32 1.442695, %v2223_v25  ;;  %v2285_v24 = vmul.f32 1.442695, %v2237_v37 }
 0xb3c   : > { %2373 = vadd.xlane.f32.xlu0 %v5894_v12 }
 0xb3d   : > { %3949 = vpow2.f32 %v2311_v0 }
 0xb3e   : > { %3951 = vpow2.f32 %v2293_v17 }
 0xb3f   : > { %v2346_v15 = vpop.xlane.xlu2 %2345 }
 0xb40   : > { %v2218_v34 = vpop.xlane.xlu0 %2217 }
 0xb41   : > { %v2251_v50 = vsub.f32 %v5806_v59, %v2218_v34 }
 0xb43   : > { %v5899_v52 = vpop.eup %3949  ;;  %v2313_v13 = vmul.f32 1.442695, %v2251_v50 }
 0xb44   : > { %2375 = vadd.xlane.f32.xlu2 %v5899_v52  ;;  %v5907_v0 = vpop.eup %3951 }
 0xb45   : > { %3953 = vpow2.f32 %v2313_v13  ;;  %v2295_v13 = vmul.f32 1.442695, %v2242_v3  ;;  %v2240_v3 = vsub.f32 %v5746_v63, %v5862_v36 }
 0xb46   : > { %3955 = vrcp.f32 %v2346_v15  ;;  %v2224_v15 = vsub.f32 %v5679_v54, %v5779_v45  ;;  %v2221_v45 = vsub.f32 %v5665_v10, %v5773_v57 }
 0xb47   : > { %v2348_v1 = vpop.xlane.xlu1 %2347 }
 0xb48   : > { %3957 = vrcp.f32 %v2348_v1  ;;  %v2342_v43 = vpop.xlane.xlu0 %2341  ;;  %v2220_v59 = vpop.xlane.xlu2 %2219  ;;  %v2259_v14 = vmul.f32 1.442695, %v2224_v15 }
 0xb49   : > { %v2252_v56 = vsub.f32 %v5816_v19, %v2220_v59  ;;  %3959 = vpow2.f32 %v2255_v7 }
 0xb4a   : > { %3961 = vpow2.f32 %v2257_v8 }
 0xb4b   : > { %v5909_v32 = vpop.eup %3953  ;;  %v2315_v18 = vmul.f32 1.442695, %v2252_v56 }
 0xb4c   : > { %v3956_v11 = vpop.eup %3955  ;;  %2357 = vadd.xlane.f32.xlu2 %v5907_v0  ;;  %2377 = vadd.xlane.f32.xlu1 %v5909_v32 }
 0xb4d   : > { %3963 = vpow2.f32 %v2315_v18  ;;  %v2427_v17 = vmul.f32 %v3956_v11, %v5803_v29  ;;  %v2239_v29 = vsub.f32 %v5742_v61, %v5864_v41  ;;  %v2253_v61 = vmul.f32 1.442695, %v2221_v45 }
 0xb4e   : > { %v3958_v19 = vpop.eup %3957  ;;  %3965 = vrcp.f32 %v2342_v43 }
 0xb4f   : > { %v2428_v34 = vmul.f32 %v3958_v19, %v5813_v46  ;;  %v2340_v50 = vpop.xlane.xlu1 %2339  ;;  %v5921_v21 = vpop.eup %3959  ;;  %v2289_v59 = vmul.f32 1.442695, %v2239_v29 }
 0xb50   : > { %v2344_v28 = vpop.xlane.xlu2 %2343  ;;  %v5925_v7 = vpop.eup %3961 }
 0xb51   : > { %v5923_v25 = vpack.c.bf16 %v2428_v34, %v2427_v17  ;;  %v2336_v9 = vpop.xlane.xlu0 %2335  ;;  %3967 = vrcp.f32 %v2344_v28 }
 0xb52   : > { %3969 = vpow2.f32 %v2285_v24  ;;  %v2291_v24 = vmul.f32 1.442695, %v2240_v3 }
 0xb53   : > { %v5927_v1 = vpop.eup %3963  ;;  %2461 = vmatpush.bf16.msra.mxu3 %v5923_v25  ;;  %3971 = vpow2.f32 %v2295_v13 }
 0xb54   : > { %2319 = vadd.xlane.f32.xlu2 %v5921_v21  ;;  %2321 = vadd.xlane.f32.xlu1 %v5925_v7  ;;  %v3966_v54 = vpop.eup %3965  ;;  %3973 = vpow2.f32 %v2259_v14 }
 0xb55   : > { %2379 = vadd.xlane.f32.xlu0 %v5927_v1  ;;  %3975 = vrcp.f32 %v2340_v50  ;;  %v2425_v56 = vmul.f32 %v3966_v54, %v5818_v27  ;;  %v2238_v27 = vsub.f32 %v5738_v48, %v5857_v6 }
 0xb57   : > { %v2334_v46 = vpop.xlane.xlu1 %2333  ;;  %v3968_v8 = vpop.eup %3967  ;;  %v2287_v34 = vmul.f32 1.442695, %v2238_v27 }
 0xb58   : > { %v2338_v43 = vpop.xlane.xlu2 %2337  ;;  %3977 = vrcp.f32 %v2334_v46  ;;  %v2426_v18 = vmul.f32 %v3968_v8, %v5830_v30  ;;  %v5939_v11 = vpop.eup %3969 }
 0xb59   : > { %3979 = vrcp.f32 %v2338_v43  ;;  %v5941_v41 = vpop.eup %3971  ;;  %v2330_v57 = vpop.xlane.xlu0 %2329 }
 0xb5a   : > { %v5943_v37 = vpack.c.bf16 %v2426_v18, %v2425_v56  ;;  %v5945_v10 = vpop.eup %3973  ;;  %3981 = vrcp.f32 %v2336_v9 }
 0xb5b   : > { %3983 = vpow2.f32 %v2289_v59  ;;  %v3976_v30 = vpop.eup %3975 }
 0xb5c   : > { %2349 = vadd.xlane.f32.xlu2 %v5939_v11  ;;  %2359 = vadd.xlane.f32.xlu1 %v5941_v41  ;;  %3985 = vpow2.f32 %v2253_v61  ;;  %v2424_v48 = vmul.f32 %v3976_v30, %v5828_v44 }
 0xb5d   : > { %2323 = vadd.xlane.f32.xlu0 %v5945_v10  ;;  %2462 = vmatpush.bf16.msra.mxu3 %v5943_v37  ;;  %3987 = vrcp.f32 %v2330_v57 }
 0xb5e   : > { %v3978_v19 = vpop.eup %3977 }
 0xb5f   : > { %v3980_v15 = vpop.eup %3979  ;;  %v2421_v14 = vmul.f32 %v3978_v19, %v5840_v16  ;;  %v2328_v63 = vpop.xlane.xlu1 %2327 }
 0xb60   : > { %v2332_v17 = vpop.xlane.xlu2 %2331  ;;  %v2423_v50 = vmul.f32 %v3980_v15, %v5842_v60  ;;  %v3982_v6 = vpop.eup %3981 }
 0xb61   : > { %3989 = vrcp.f32 %v2332_v17  ;;  %v5957_v28 = vpop.eup %3983  ;;  %v2422_v44 = vmul.f32 %v3982_v6, %v5826_v53 }
 0xb62   : > { %v5959_v13 = vpack.c.bf16 %v2424_v48, %v2423_v50  ;;  %v5962_v9 = vpop.eup %3985  ;;  %3991 = vpow2.f32 %v2287_v34 }
 0xb63   : > { %v3988_v36 = vpop.eup %3987  ;;  %3993 = vpow2.f32 %v2291_v24  ;;  %v5968_v29 = vpack.c.bf16 %v2422_v44, %v2421_v14 }
 0xb64   : > { %2353 = vadd.xlane.f32.xlu1 %v5957_v28  ;;  %2463 = vmatpush.bf16.msra.mxu3 %v5959_v13  ;;  %3995 = vrcp.f32 %v2328_v63  ;;  %v2419_v16 = vmul.f32 %v3988_v36, %v5838_v42 }
 0xb65   : > { %2317 = vadd.xlane.f32.xlu0 %v5962_v9 }
 0xb67   : > { %v3990_v60 = vpop.eup %3989 }
 0xb68   : > { %v2326_v54 = vpop.xlane.xlu2 %2325  ;;  %v2420_v45 = vmul.f32 %v3990_v60, %v5851_v39  ;;  %2464 = vmatpush.bf16.msra.mxu3 %v5968_v29  ;;  %v5975_v8 = vpop.eup %3991 }
 0xb69   : > { %3997 = vrcp.f32 %v2326_v54  ;;  %v5977_v43 = vpop.eup %3993 }
 0xb6a   : > { %v5973_v46 = vpack.c.bf16 %v2420_v45, %v2419_v16  ;;  %v3996_v53 = vpop.eup %3995 }
 0xb6b   : > { %v2418_v39 = vmul.f32 %v3996_v53, %v5849_v2 }
 0xb6c   : > { %2351 = vadd.xlane.f32.xlu1 %v5975_v8  ;;  %2465 = vmatpush.bf16.msra.mxu3 %v5973_v46 }
 0xb6d   : > { %2355 = vadd.xlane.f32.xlu0 %v5977_v43 }
 0xb6f   : > { %v3998_v59 = vpop.eup %3997 }
 0xb70   : > { %v2417_v42 = vmul.f32 %v3998_v59, %v5855_v26 }
 0xb72   : > { %v5984_v56 = vpack.c.bf16 %v2418_v39, %v2417_v42 }
 0xb74   : > { %2466 = vmatpush.bf16.msra.mxu3 %v5984_v56 }
 0xb7f   : > { %v2362_v61 = vpop.xlane.xlu0 %2361 }
 0xb87   : > { %v2364_v57 = vpop.xlane.xlu2 %2363 }
 0xb8f   : > { %v2366_v18 = vpop.xlane.xlu1 %2365 }
 0xb97   : > { %v2368_v30 = vpop.xlane.xlu0 %2367 }
 0xb9f   : > { %v2370_v3 = vpop.xlane.xlu2 %2369 }
 0xba7   : > { %v2372_v27 = vpop.xlane.xlu1 %2371 }
 0xbaf   : > { %v2374_v15 = vpop.xlane.xlu0 %2373 }
 0xbb7   : > { %v2376_v17 = vpop.xlane.xlu2 %2375 }
 0xbbf   : > { %v2378_v19 = vpop.xlane.xlu1 %2377  ;;  %v2358_v26 = vpop.xlane.xlu2 %2357 }
 0xbc0   : > { %3999 = vrcp.f32 %v2378_v19 }
 0xbc1   : > { %4001 = vrcp.f32 %v2376_v17 }
 0xbc6   : > { %v4000_v2 = vpop.eup %3999 }
 0xbc7   : > { %v2322_v34 = vpop.xlane.xlu1 %2321  ;;  %v4002_v48 = vpop.eup %4001  ;;  %v2443_v14 = vmul.f32 %v4000_v2, %v5909_v32 }
 0xbc8   : > { %v2380_v50 = vpop.xlane.xlu0 %2379  ;;  %v2442_v54 = vmul.f32 %v4002_v48, %v5899_v52  ;;  %v2320_v53 = vpop.xlane.xlu2 %2319 }
 0xbc9   : > { %4003 = vrcp.f32 %v2380_v50 }
 0xbca   : > { %4005 = vrcp.f32 %v2374_v15 }
 0xbcb   : > { %4007 = vrcp.f32 %v2372_v27 }
 0xbcc   : > { %4009 = vrcp.f32 %v2370_v3 }
 0xbcd   : > { %4011 = vrcp.f32 %v2322_v34 }
 0xbce   : > { %4013 = vrcp.f32 %v2368_v30 }
 0xbcf   : > { %v4004_v6 = vpop.eup %4003  ;;  %v2360_v24 = vpop.xlane.xlu1 %2359 }
 0xbd0   : > { %v2444_v63 = vmul.f32 %v4004_v6, %v5927_v1  ;;  %v2324_v36 = vpop.xlane.xlu0 %2323  ;;  %v4006_v44 = vpop.eup %4005 }
 0xbd1   : > { %4015 = vrcp.f32 %v2324_v36  ;;  %v4008_v16 = vpop.eup %4007  ;;  %v2441_v59 = vmul.f32 %v4006_v44, %v5894_v12  ;;  %v2350_v6 = vpop.xlane.xlu2 %2349 }
 0xbd2   : > { %v5989_v60 = vpack.c.bf16 %v2444_v63, %v2443_v14  ;;  %4017 = vrcp.f32 %v2366_v18  ;;  %v4010_v45 = vpop.eup %4009  ;;  %v2440_v39 = vmul.f32 %v4008_v16, %v5890_v31 }
 0xbd3   : > { %v4012_v42 = vpop.eup %4011  ;;  %4019 = vrcp.f32 %v2364_v57  ;;  %v5994_v1 = vpack.c.bf16 %v2442_v54, %v2441_v59  ;;  %v2439_v12 = vmul.f32 %v4010_v45, %v5886_v35 }
 0xbd4   : > { %2510 = vmatpush.bf16.msrb.mxu0 %v5989_v60  ;;  %v4014_v32 = vpop.eup %4013  ;;  %4021 = vrcp.f32 %v2362_v61  ;;  %v2415_v18 = vmul.f32 %v4012_v42, %v5925_v7 }
 0xbd5   : > { %4023 = vrcp.f32 %v2320_v53  ;;  %v6003_v19 = vpack.c.bf16 %v2440_v39, %v2439_v12  ;;  %v2438_v31 = vmul.f32 %v4014_v32, %v5882_v23 }
 0xbd6   : > { %4025 = vrcp.f32 %v2360_v24 }
 0xbd7   : > { %v4016_v27 = vpop.eup %4015  ;;  %v2354_v30 = vpop.xlane.xlu1 %2353 }
 0xbd8   : > { %v2318_v52 = vpop.xlane.xlu0 %2317  ;;  %2511 = vmatpush.bf16.msrb.mxu0 %v5994_v1  ;;  %v2416_v3 = vmul.f32 %v4016_v27, %v5945_v10  ;;  %v4018_v57 = vpop.eup %4017 }
 0xbd9   : > { %4027 = vrcp.f32 %v2318_v52  ;;  %v4020_v15 = vpop.eup %4019  ;;  %v2437_v7 = vmul.f32 %v4018_v57, %v5878_v58 }
 0xbda   : > { %v6001_v61 = vpack.c.bf16 %v2416_v3, %v2415_v18  ;;  %4029 = vrcp.f32 %v2358_v26  ;;  %v4022_v17 = vpop.eup %4021  ;;  %v2436_v50 = vmul.f32 %v4020_v15, %v5874_v51 }
 0xbdb   : > { %v4024_v10 = vpop.eup %4023  ;;  %v6009_v35 = vpack.c.bf16 %v2438_v31, %v2437_v7  ;;  %4031 = vrcp.f32 %v2354_v30  ;;  %v2435_v58 = vmul.f32 %v4022_v17, %v5870_v20 }
 0xbdc   : > { %2467 = vmatpush.bf16.msra.mxu3 %v6001_v61  ;;  %2512 = vmatpush.bf16.msrb.mxu0 %v6003_v19  ;;  %v4026_v34 = vpop.eup %4025  ;;  %v2414_v24 = vmul.f32 %v4024_v10, %v5921_v21 }
 0xbdd   : > { %v6018_v36 = vpack.c.bf16 %v2436_v50, %v2435_v58  ;;  %v2434_v51 = vmul.f32 %v4026_v34, %v5941_v41 }
 0xbdf   : > { %v4028_v2 = vpop.eup %4027  ;;  %v2352_v48 = vpop.xlane.xlu1 %2351 }
 0xbe0   : > { %4033 = vrcp.f32 %v2352_v48  ;;  %v2356_v23 = vpop.xlane.xlu0 %2355  ;;  %2513 = vmatpush.bf16.msrb.mxu0 %v6009_v35  ;;  %v2413_v26 = vmul.f32 %v4028_v2, %v5962_v9  ;;  %v4030_v14 = vpop.eup %4029 }
 0xbe1   : > { %4035 = vrcp.f32 %v2356_v23  ;;  %v2433_v44 = vmul.f32 %v4030_v14, %v5907_v0  ;;  %v4032_v9 = vpop.eup %4031 }
 0xbe2   : > { %v6016_v63 = vpack.c.bf16 %v2414_v24, %v2413_v26  ;;  %4037 = vrcp.f32 %v2350_v6  ;;  %v2431_v16 = vmul.f32 %v4032_v9, %v5957_v28 }
 0xbe3   : > { %v6024_v21 = vpack.c.bf16 %v2434_v51, %v2433_v44 }
 0xbe4   : > { %2468 = vmatpush.bf16.msra.mxu3 %v6016_v63  ;;  %2514 = vmatpush.bf16.msrb.mxu0 %v6018_v36 }
 0xbe6   : > { %v4034_v54 = vpop.eup %4033 }
 0xbe7   : > { %v4036_v20 = vpop.eup %4035  ;;  %2469 = vmatmul.bf16.vlgmr.msra.gmra.mxu3 %v5069_v47  ;;  %v2430_v59 = vmul.f32 %v4034_v54, %v5975_v8  ;;  %v6592_v47 = vld [vmem:[#allocation64_spill] sm:$0xff] }
 0xbe8   : > { %2515 = vmatpush.bf16.msrb.mxu0 %v6024_v21  ;;  %v2432_v41 = vmul.f32 %v4036_v20, %v5977_v43  ;;  %v4038_v45 = vpop.eup %4037 }
 0xbe9   : > { %v2429_v0 = vmul.f32 %v4038_v45, %v5939_v11  ;;  %v6593_v11 = vld [vmem:[#allocation63_spill] sm:$0xff] }
 0xbea   : > { %v6030_v53 = vpack.c.bf16 %v2432_v41, %v2431_v16 }
 0xbeb   : > { %v6035_v42 = vpack.c.bf16 %v2430_v59, %v2429_v0 }
 0xbec   : > { %2516 = vmatpush.bf16.msrb.mxu0 %v6030_v53 }
 0xbf0   : > { %2517 = vmatpush.bf16.msrb.mxu0 %v6035_v42 }
 0xbf3   : > { %2518 = vmatmul.bf16.vlgmr.msrb.gmra.mxu0 %v5071_v49  ;;  %v6594_v49 = vld [vmem:[#allocation56_spill] sm:$0xff] }
 0xbf7   : > { %2474 = vmatmul.bf16.gmra.mxu3 %v5075_v55  ;;  %v6595_v55 = vld [vmem:[#allocation61_spill] sm:$0xff] }
 0xc03   : > { %2523 = vmatmul.bf16.gmra.mxu0 %v6564_v33  ;;  %v6596_v33 = vld [vmem:[#allocation59_spill] sm:$0xff] }
 0xc07   : > { %2479 = vmatmul.bf16.gmra.mxu3 %v6563_v40  ;;  %v6597_v40 = vld [vmem:[#allocation60_spill] sm:$0xff] }
 0xc13   : > { %2528 = vmatmul.bf16.gmra.mxu0 %v6566_v62 }
 0xc17   : > { %2484 = vmatmul.bf16.gmra.mxu3 %v6565_v22 }
 0xc23   : > { %2533 = vmatmul.bf16.gmra.mxu0 %v6568_v5 }
 0xc27   : > { %2489 = vmatmul.bf16.gmra.mxu3 %v6567_v38 }
 0xc33   : > { %2538 = vmatmul.bf16.gmra.mxu0 %v6570_v4 }
 0xc37   : > { %2494 = vmatmul.bf16.gmra.mxu3 %v6592_v47 }
 0xc43   : > { %2543 = vmatmul.bf16.gmra.mxu0 %v6593_v11 }
 0xc47   : > { %2499 = vmatmul.bf16.gmra.mxu3 %v6594_v49 }
 0xc53   : > { %2548 = vmatmul.bf16.gmra.mxu0 %v6595_v55 }
 0xc57   : > { %2504 = vmatmul.bf16.gmra.mxu3 %v6596_v33 }
 0xc63   : > { %2553 = vmatmul.bf16.gmra.mxu0 %v6597_v40 }
 0xc6a   : > { %v2470_v62 = vpop.f32.mrf.mxu3 }
 0xc70   : > { %v2519_v22 = vpop.f32.mrf.mxu0 }
 0xc71   : > { %v2520_v28 = vadd.f32 %v2519_v22, %v2470_v62 }
 0xc72   : > { %v2472_v5 = vpop.f32.mrf.mxu3 }
 0xc78   : > { %v2521_v8 = vpop.f32.mrf.mxu0 }
 0xc79   : > { %v2522_v23 = vadd.f32 %v2521_v8, %v2472_v5 }
 0xc7a   : > { %v2475_v38 = vpop.f32.mrf.mxu3 }
 0xc80   : > { %v2524_v43 = vpop.f32.mrf.mxu0 }
 0xc81   : > { %v2525_v4 = vadd.f32 %v2524_v43, %v2475_v38 }
 0xc82   : > { %v2477_v32 = vpop.f32.mrf.mxu3 }
 0xc88   : > { %v2526_v39 = vpop.f32.mrf.mxu0 }
 0xc89   : > { %v2527_v20 = vadd.f32 %v2526_v39, %v2477_v32 }
 0xc8a   : > { %v2480_v27 = vpop.f32.mrf.mxu3 }
 0xc90   : > { %v2529_v30 = vpop.f32.mrf.mxu0 }
 0xc91   : > { %v2530_v17 = vadd.f32 %v2529_v30, %v2480_v27 }
 0xc92   : > { %v2482_v52 = vpop.f32.mrf.mxu3 }
 0xc93   : > { %v2559_v10 = vadd.f32 1e-06, %v2530_v17 }
 0xc95   : > { %4039 = vrcp.f32 %v2559_v10 }
 0xc98   : > { %v2531_v18 = vpop.f32.mrf.mxu0 }
 0xc99   : > { %v2532_v47 = vadd.f32 %v2531_v18, %v2482_v52 }
 0xc9a   : > { %v2485_v3 = vpop.f32.mrf.mxu3 }
 0xc9b   : > { %v4040_v48 = vpop.eup %4039 }
 0xc9c   : > { %v6053_v6 = vperm.slane %v4040_v48, 0 }
 0xc9e   : > { %v6056_v58 = vmul.f32 %v6053_v6, %v2520_v28  ;;  %v6059_v14 = vmul.f32 %v6053_v6, %v2522_v23  ;;  %v6066_v54 = vmul.f32 %v6053_v6, %v2525_v4  ;;  %v2566_v45 = vmul.f32 %v6053_v6, %v2530_v17 }
 0xc9f   : > { %v6070_v59 = vmul.f32 %v6053_v6, %v2527_v20  ;;  %v2567_v49 = vmul.f32 %v6053_v6, %v2532_v47 }
 0xca0   : > { %v2534_v12 = vpop.f32.mrf.mxu0  ;;  %v2594_v51 = vmul.f32 %v6056_v58, %v6056_v58  ;;  %v2595_v44 = vmul.f32 %v6059_v14, %v6059_v14  ;;  %v2596_v0 = vmul.f32 %v6066_v54, %v6066_v54  ;;  %v6075_v55 = vmul.f32 0.0, %v2566_v45 }
 0xca1   : > { %v2535_v33 = vadd.f32 %v2534_v12, %v2485_v3  ;;  %v2597_v22 = vmul.f32 %v6070_v59, %v6070_v59  ;;  %v6081_v38 = vmul.f32 0.0, %v2567_v49 }
 0xca2   : > { %v2487_v57 = vpop.f32.mrf.mxu3  ;;  %v2610_v41 = vadd.f32 %v2595_v44, %v2594_v51  ;;  %v2598_v8 = vmul.f32 %v6075_v55, %v6075_v55 }
 0xca3   : > { %v2568_v43 = vmul.f32 %v6053_v6, %v2535_v33  ;;  %v2599_v18 = vmul.f32 %v6081_v38, %v6081_v38 }
 0xca4   : > { %v2611_v11 = vadd.f32 %v2610_v41, %v2596_v0 }
 0xca5   : > { %v6088_v3 = vmul.f32 0.0, %v2568_v43 }
 0xca6   : > { %v2612_v28 = vadd.f32 %v2611_v11, %v2597_v22 }
 0xca8   : > { %v2536_v31 = vpop.f32.mrf.mxu0  ;;  %v2613_v27 = vadd.f32 %v2612_v28, %v2598_v8 }
 0xca9   : > { %v2537_v40 = vadd.f32 %v2536_v31, %v2487_v57 }
 0xcaa   : > { %v2490_v15 = vpop.f32.mrf.mxu3  ;;  %v2614_v17 = vadd.f32 %v2613_v27, %v2599_v18 }
 0xcab   : > { %v2569_v4 = vmul.f32 %v6053_v6, %v2537_v40 }
 0xcad   : > { %v6090_v12 = vmul.f32 0.0, %v2569_v4 }
 0xcb0   : > { %v2539_v7 = vpop.f32.mrf.mxu0 }
 0xcb1   : > { %v2540_v5 = vadd.f32 %v2539_v7, %v2490_v15 }
 0xcb2   : > { %v2492_v34 = vpop.f32.mrf.mxu3 }
 0xcb3   : > { %v2570_v30 = vmul.f32 %v6053_v6, %v2540_v5 }
 0xcb5   : > { %v6093_v7 = vmul.f32 0.0, %v2570_v30 }
 0xcb8   : > { %v2541_v50 = vpop.f32.mrf.mxu0 }
 0xcb9   : > { %v2542_v39 = vadd.f32 %v2541_v50, %v2492_v34  ;;  %v2600_v50 = vmul.f32 %v6088_v3, %v6088_v3 }
 0xcba   : > { %v2495_v2 = vpop.f32.mrf.mxu3 }
 0xcbb   : > { %v2571_v31 = vmul.f32 %v6053_v6, %v2542_v39  ;;  %v2615_v44 = vadd.f32 %v2614_v17, %v2600_v50 }
 0xcbd   : > { %v6100_v48 = vmul.f32 0.0, %v2571_v31 }
 0xcbf   : > { %v2603_v45 = vmul.f32 %v6100_v48, %v6100_v48 }
 0xcc0   : > { %v2544_v26 = vpop.f32.mrf.mxu0 }
 0xcc1   : > { %v2545_v52 = vadd.f32 %v2544_v26, %v2495_v2  ;;  %v2601_v2 = vmul.f32 %v6090_v12, %v6090_v12 }
 0xcc2   : > { %v2497_v24 = vpop.f32.mrf.mxu3 }
 0xcc3   : > { %v2572_v10 = vmul.f32 %v6053_v6, %v2545_v52  ;;  %v2616_v41 = vadd.f32 %v2615_v44, %v2601_v2 }
 0xcc8   : > { %v2546_v9 = vpop.f32.mrf.mxu0 }
 0xcc9   : > { %v2547_v15 = vadd.f32 %v2546_v9, %v2497_v24  ;;  %v2602_v24 = vmul.f32 %v6093_v7, %v6093_v7  ;;  %v6105_v9 = vmul.f32 0.0, %v2572_v10 }
 0xcca   : > { %v2500_v16 = vpop.f32.mrf.mxu3 }
 0xccb   : > { %v2573_v23 = vmul.f32 %v6053_v6, %v2547_v15  ;;  %v2604_v49 = vmul.f32 %v6105_v9, %v6105_v9 }
 0xccd   : > { %v6110_v0 = vmul.f32 0.0, %v2573_v23 }
 0xccf   : > { %v2605_v22 = vmul.f32 %v6110_v0, %v6110_v0 }
 0xcd0   : > { %v2549_v62 = vpop.f32.mrf.mxu0 }
 0xcd1   : > { %v2550_v34 = vadd.f32 %v2549_v62, %v2500_v16  ;;  %v2617_v62 = vadd.f32 %v2616_v41, %v2602_v24 }
 0xcd2   : > { %v2502_v32 = vpop.f32.mrf.mxu3 }
 0xcd3   : > { %v2574_v20 = vmul.f32 %v6053_v6, %v2550_v34  ;;  %v2618_v5 = vadd.f32 %v2617_v62, %v2603_v45 }
 0xcd5   : > { %v6115_v33 = vmul.f32 0.0, %v2574_v20  ;;  %v2619_v4 = vadd.f32 %v2618_v5, %v2604_v49 }
 0xcd7   : > { %v2606_v8 = vmul.f32 %v6115_v33, %v6115_v33  ;;  %v2620_v52 = vadd.f32 %v2619_v4, %v2605_v22 }
 0xcd8   : > { %v2551_v57 = vpop.f32.mrf.mxu0 }
 0xcd9   : > { %v2552_v26 = vadd.f32 %v2551_v57, %v2502_v32  ;;  %v2621_v31 = vadd.f32 %v2620_v52, %v2606_v8 }
 0xcda   : > { %v2505_v51 = vpop.f32.mrf.mxu3 }
 0xcdb   : > { %v2575_v47 = vmul.f32 %v6053_v6, %v2552_v26 }
 0xcdd   : > { %v6120_v28 = vmul.f32 0.0, %v2575_v47 }
 0xcdf   : > { %v2607_v27 = vmul.f32 %v6120_v28, %v6120_v28 }
 0xce0   : > { %v2554_v16 = vpop.f32.mrf.mxu0 }
 0xce1   : > { %v2555_v11 = vadd.f32 %v2554_v16, %v2505_v51  ;;  %v2622_v17 = vadd.f32 %v2621_v31, %v2607_v27 }
 0xce2   : > { %v2507_v32 = vpop.f32.mrf.mxu3 }
 0xce3   : > { %v2576_v40 = vmul.f32 %v6053_v6, %v2555_v11 }
 0xce5   : > { %v6124_v43 = vmul.f32 0.0, %v2576_v40 }
 0xce7   : > { %v2608_v18 = vmul.f32 %v6124_v43, %v6124_v43 }
 0xce8   : > { %v2556_v39 = vpop.f32.mrf.mxu0 }
 0xce9   : > { %v2557_v30 = vadd.f32 %v2556_v39, %v2507_v32  ;;  %v2623_v34 = vadd.f32 %v2622_v17, %v2608_v18 }
 0xceb   : > { %v2577_v57 = vmul.f32 %v6053_v6, %v2557_v30 }
 0xced   : > { %v6131_v15 = vmul.f32 0.0, %v2577_v57 }
 0xcef   : > { %v2609_v10 = vmul.f32 %v6131_v15, %v6131_v15 }
 0xcf1   : > { %v2624_v50 = vadd.f32 %v2623_v34, %v2609_v10 }
 0xcf3   : > { %v2625_v2 = vrot.slane %v2624_v50, 4 }
 0xcf5   : > { %v2626_v23 = vadd.f32 %v2625_v2, %v2624_v50 }
 0xcf7   : > { %v2627_v26 = vrot.slane %v2626_v23, 2 }
 0xcf9   : > { %v2628_v51 = vadd.f32 %v2627_v26, %v2626_v23 }
 0xcfb   : > { %v2629_v44 = vrot.slane %v2628_v51, 1 }
 0xcfd   : > { %v2630_v24 = vadd.f32 %v2629_v44, %v2628_v51 }
 0xcff   : > { %4041 = vrsqrt.f32 %v2630_v24  ;;  %vm2638_vm12 = vcmp.eq.f32.partialorder %v2630_v24, inf  ;;  %v2641_v49 = vand.u32 2147483648, %v2630_v24  ;;  %vm2640_vm13 = vcmp.eq.f32.partialorder %v2630_v24, 0.0 }
 0xd05   : > { %v4042_v20 = vpop.eup %4041 }
 0xd06   : > { %v2632_v16 = vmul.f32 %v4042_v20, %v2630_v24 }
 0xd08   : > { %v2633_v41 = vmul.f32 %v4042_v20, %v2632_v16 }
 0xd0a   : > { %v2634_v6 = vmul.f32 0.5, %v2633_v41 }
 0xd0c   : > { %v2635_v45 = vsub.f32 1.5, %v2634_v6 }
 0xd0e   : > { %v2636_v47 = vmul.f32 %v4042_v20, %v2635_v45 }
 0xd10   : > { %v2637_v11 = vmul.f32 %v2636_v47, %v2630_v24 }
 0xd12   : > { %v2639_v40 = vsel %vm2638_vm12, %v2630_v24, %v2637_v11 }
 0xd13   : > { %v2642_v62 = vsel %vm2640_vm13, %v2641_v49, %v2639_v40 }
 0xd14   : > { %v2643_v22 = vadd.f32 1e-06, %v2642_v62 }
 0xd16   : > { %4043 = vrcp.f32 %v2643_v22  ;;  %v2655_v32 = vand.u32 2147483648, %v2643_v22  ;;  %v2653_v27 = vand.u32 2147483647, %v2643_v22  ;;  %vm2649_vm15 = vweird.f32 %v2643_v22 }
 0xd18   : > { %v2656_v52 = vor.u32 1.1754944e-38, %v2655_v32  ;;  %vm2654_vm1 = vcmp.eq.f32.partialorder %v2653_v27, 8.507059e+37  ;;  %v3412_v32 = vld [vmem:[#allocation8 + $0x30] sm:$0xff]  ;;  %v3410_v27 = vld [vmem:[#allocation8 + $0x20] sm:$0xff] }
 0xd1c   : > { %v4044_v5 = vpop.eup %4043 }
 0xd1d   : > { %v2645_v8 = vmul.f32 %v4044_v5, %v2643_v22  ;;  %vm2650_vm14 = vweird.f32 %v4044_v5 }
 0xd1e   : > { %vm2651_vm0 = vmor %vm2649_vm15, %vm2650_vm14 }
 0xd1f   : > { %v2646_v4 = vsub.f32 1.0, %v2645_v8 }
 0xd21   : > { %v2647_v39 = vmul.f32 %v4044_v5, %v2646_v4  ;;  %v3413_v4 = vld [vmem:[#allocation8 + $0x38] sm:$0xff] }
 0xd22   : > { %2903 = vmatpush.bf16.msrb.mxu3 %v3413_v4 }
 0xd23   : > { %v2648_v30 = vadd.f32 %v4044_v5, %v2647_v39  ;;  %v3411_v39 = vld [vmem:[#allocation8 + $0x28] sm:$0xff] }
 0xd25   : > { %v2652_v18 = vsel %vm2651_vm0, %v4044_v5, %v2648_v30 }
 0xd26   : > { %v2657_v57 = vsel %vm2654_vm1, %v2656_v52, %v2652_v18  ;;  %2904 = vmatpush.bf16.msrb.mxu3 %v3412_v32 }
 0xd27   : > { %v2659_v31 = vmul.f32 %v2657_v57, %v6056_v58  ;;  %v2660_v17 = vmul.f32 %v2657_v57, %v6059_v14  ;;  %v2661_v10 = vmul.f32 %v2657_v57, %v6066_v54  ;;  %v2662_v34 = vmul.f32 %v2657_v57, %v6070_v59 }
 0xd28   : > { %v2663_v58 = vmul.f32 %v2657_v57, %v6075_v55  ;;  %v2664_v14 = vmul.f32 %v2657_v57, %v6081_v38  ;;  %v2665_v54 = vmul.f32 %v2657_v57, %v6088_v3  ;;  %v2666_v59 = vmul.f32 %v2657_v57, %v6090_v12 }
 0xd29   : > { %2675 = vxpose.xlu0.b32.start [1/16] %v2659_v31, 128  ;;  %3088 = vst [vmem:[%s6140_s26] sm:$0xff] %v2659_v31  ;;  %v2667_v50 = vmul.f32 %v2657_v57, %v6093_v7  ;;  %v2668_v55 = vmul.f32 %v2657_v57, %v6100_v48  ;;  %v2669_v38 = vmul.f32 %v2657_v57, %v6105_v9 }
 0xd2a   : > { %3089 = vst [vmem:[%s6140_s26 + $0x8] sm:$0xff] %v2660_v17  ;;  %v2670_v3 = vmul.f32 %v2657_v57, %v6110_v0  ;;  %v2671_v12 = vmul.f32 %v2657_v57, %v6115_v33  ;;  %v2672_v7 = vmul.f32 %v2657_v57, %v6120_v28  ;;  %v2673_v2 = vmul.f32 %v2657_v57, %v6124_v43 }
 0xd2b   : > { %3090 = vst [vmem:[%s6140_s26 + $0x10] sm:$0xff] %v2661_v10  ;;  %v2674_v48 = vmul.f32 %v2657_v57, %v6131_v15  ;;  %2905 = vmatpush.bf16.msrb.mxu3 %v3411_v39  ;;  %v4048_v39 = vld [vmem:[%s4478_s19 + $0x8] sm:$0xff] }
 0xd2c   : > { %3091 = vst [vmem:[%s6140_s26 + $0x18] sm:$0xff] %v2662_v34 }
 0xd2d   : > { %3092 = vst [vmem:[%s6140_s26 + $0x20] sm:$0xff] %v2663_v58 }
 0xd2e   : > { %3093 = vst [vmem:[%s6140_s26 + $0x28] sm:$0xff] %v2664_v14 }
 0xd2f   : > { %3094 = vst [vmem:[%s6140_s26 + $0x30] sm:$0xff] %v2665_v54  ;;  %2906 = vmatpush.bf16.msrb.mxu3 %v3410_v27 }
 0xd30   : > { %3095 = vst [vmem:[%s6140_s26 + $0x38] sm:$0xff] %v2666_v59 }
 0xd31   : > { %2676 = vxpose.xlu0.b32.cont [2/16] %v2660_v17, 128  ;;  %3096 = vst [vmem:[%s6140_s26 + $0x40] sm:$0xff] %v2667_v50 }
 0xd32   : > { %3097 = vst [vmem:[%s6140_s26 + $0x48] sm:$0xff] %v2668_v55 }
 0xd33   : > { %3098 = vst [vmem:[%s6140_s26 + $0x50] sm:$0xff] %v2669_v38 }
 0xd34   : > { %3099 = vst [vmem:[%s6140_s26 + $0x58] sm:$0xff] %v2670_v3 }
 0xd35   : > { %3100 = vst [vmem:[%s6140_s26 + $0x60] sm:$0xff] %v2671_v12 }
 0xd36   : > { %3101 = vst [vmem:[%s6140_s26 + $0x68] sm:$0xff] %v2672_v7 }
 0xd37   : > { %3102 = vst [vmem:[%s6140_s26 + $0x70] sm:$0xff] %v2673_v2 }
 0xd38   : > { %3103 = vst [vmem:[%s6140_s26 + $0x78] sm:$0xff] %v2674_v48 }
 0xd39   : > { %2677 = vxpose.xlu0.b32.cont [3/16] %v2661_v10, 128 }
 0xd41   : > { %2678 = vxpose.xlu0.b32.cont [4/16] %v2662_v34, 128 }
 0xd49   : > { %2679 = vxpose.xlu0.b32.cont [5/16] %v2663_v58, 128 }
 0xd51   : > { %2680 = vxpose.xlu0.b32.cont [6/16] %v2664_v14, 128 }
 0xd59   : > { %2681 = vxpose.xlu0.b32.cont [7/16] %v2665_v54, 128 }
 0xd61   : > { %2682 = vxpose.xlu0.b32.cont [8/16] %v2666_v59, 128 }
 0xd69   : > { %2683 = vxpose.xlu0.b32.cont [9/16] %v2667_v50, 128 }
 0xd71   : > { %2684 = vxpose.xlu0.b32.cont [10/16] %v2668_v55, 128 }
 0xd79   : > { %2685 = vxpose.xlu0.b32.cont [11/16] %v2669_v38, 128 }
 0xd81   : > { %2686 = vxpose.xlu0.b32.cont [12/16] %v2670_v3, 128 }
 0xd89   : > { %2687 = vxpose.xlu0.b32.cont [13/16] %v2671_v12, 128 }
 0xd91   : > { %2688 = vxpose.xlu0.b32.cont [14/16] %v2672_v7, 128 }
 0xd99   : > { %2689 = vxpose.xlu0.b32.cont [15/16] %v2673_v2, 128 }
 0xda1   : > { %2690 = vxpose.xlu0.b32.end [16/16] %v2674_v48, 128 }
 0xdcd   : > { %v2691_v9 = vpop.trf.xlu0 }
 0xdd5   : > { %v2692_v0 = vpop.trf.xlu0 }
 0xdd6   : > { %v2707_v33 = vpack.c.bf16 %v2692_v0, %v2691_v9 }
 0xddd   : > { %v2693_v28 = vpop.trf.xlu0 }
 0xde5   : > { %v2694_v43 = vpop.trf.xlu0 }
 0xde6   : > { %v2708_v15 = vpack.c.bf16 %v2694_v43, %v2693_v28 }
 0xded   : > { %v2695_v23 = vpop.trf.xlu0 }
 0xdf5   : > { %v2696_v26 = vpop.trf.xlu0 }
 0xdf6   : > { %v2709_v51 = vpack.c.bf16 %v2696_v26, %v2695_v23 }
 0xdfd   : > { %v2697_v44 = vpop.trf.xlu0 }
 0xe05   : > { %v2698_v24 = vpop.trf.xlu0 }
 0xe06   : > { %v2710_v20 = vpack.c.bf16 %v2698_v24, %v2697_v44 }
 0xe0d   : > { %v2699_v16 = vpop.trf.xlu0 }
 0xe15   : > { %v2700_v41 = vpop.trf.xlu0 }
 0xe16   : > { %v2711_v8 = vpack.c.bf16 %v2700_v41, %v2699_v16 }
 0xe1d   : > { %v2701_v6 = vpop.trf.xlu0 }
 0xe25   : > { %v2702_v45 = vpop.trf.xlu0 }
 0xe26   : > { %v2712_v5 = vpack.c.bf16 %v2702_v45, %v2701_v6 }
 0xe2d   : > { %v2703_v47 = vpop.trf.xlu0 }
 0xe35   : > { %v2704_v11 = vpop.trf.xlu0 }
 0xe36   : > { %v2713_v22 = vpack.c.bf16 %v2704_v11, %v2703_v47  ;;  %v4047_v11 = vld [vmem:[%s4478_s19] sm:$0xff] }
 0xe3d   : > { %v2705_v49 = vpop.trf.xlu0 }
 0xe45   : > { %v2706_v40 = vpop.trf.xlu0 }
 0xe46   : > { %v2714_v62 = vpack.c.bf16 %v2706_v40, %v2705_v49 }
 0xe48   : > { %2715 = vmatpush.bf16.msra.mxu2 %v2714_v62 }
 0xe4c   : > { %2716 = vmatpush.bf16.msra.mxu2 %v2713_v22 }
 0xe50   : > { %2717 = vmatpush.bf16.msra.mxu2 %v2712_v5 }
 0xe54   : > { %2718 = vmatpush.bf16.msra.mxu2 %v2711_v8 }
 0xe58   : > { %2719 = vmatpush.bf16.msra.mxu2 %v2710_v20 }
 0xe5c   : > { %2720 = vmatpush.bf16.msra.mxu2 %v2709_v51 }
 0xe60   : > { %2721 = vmatpush.bf16.msra.mxu2 %v2708_v15 }
 0xe64   : > { %2722 = vmatpush.bf16.msra.mxu2 %v2707_v33 }
 0xe67   : > { %2723 = vmatmul.bf16.vlgmr.msra.gmra.mxu2 %v6016_v63  ;;  %v3409_v63 = vld [vmem:[#allocation8 + $0x18] sm:$0xff] }
 0xe68   : > { %2907 = vmatpush.bf16.msrb.mxu3 %v3409_v63 }
 0xe77   : > { %2728 = vmatmul.bf16.gmra.mxu2 %v6001_v61  ;;  %v3408_v61 = vld [vmem:[#allocation8 + $0x10] sm:$0xff] }
 0xe78   : > { %2908 = vmatpush.bf16.msrb.mxu3 %v3408_v61 }
 0xe87   : > { %2733 = vmatmul.bf16.gmra.mxu2 %v5984_v56  ;;  %v3407_v56 = vld [vmem:[#allocation8 + $0x8] sm:$0xff] }
 0xe88   : > { %2909 = vmatpush.bf16.msrb.mxu3 %v3407_v56 }
 0xe97   : > { %2738 = vmatmul.bf16.gmra.mxu2 %v5973_v46  ;;  %v3406_v46 = vld [vmem:[#allocation8] sm:$0xff] }
 0xe98   : > { %2910 = vmatpush.bf16.msrb.mxu3 %v3406_v46 }
 0xea7   : > { %2743 = vmatmul.bf16.gmra.mxu2 %v5968_v29 }
 0xeb7   : > { %2748 = vmatmul.bf16.gmra.mxu2 %v5959_v13 }
 0xec7   : > { %2753 = vmatmul.bf16.gmra.mxu2 %v5943_v37 }
 0xed7   : > { %2758 = vmatmul.bf16.gmra.mxu2 %v5923_v25 }
 0xee7   : > { %2763 = vmatmul.bf16.gmra.mxu2 %v6035_v42 }
 0xeea   : > { %v2724_v13 = vpop.f32.mrf.mxu2 }
 0xeeb   : > { %v2804_v30 = vmax.f32 %v2724_v13, 0.0  ;;  %v4049_v13 = vld [vmem:[%s4478_s19 + $0x10] sm:$0xff] }
 0xef2   : > { %v2726_v29 = vpop.f32.mrf.mxu2 }
 0xef3   : > { %v2805_v52 = vmax.f32 %v2726_v29, 0.0 }
 0xef5   : > { %v2836_v18 = vpack.c.bf16 %v2805_v52, %v2804_v30 }
 0xef7   : > { %2768 = vmatmul.bf16.gmra.mxu2 %v6030_v53  ;;  %2911 = vmatmul.bf16.vlgmr.msrb.gmra.mxu3 %v2836_v18 }
 0xefa   : > { %v2729_v37 = vpop.f32.mrf.mxu2 }
 0xefb   : > { %v2806_v31 = vmax.f32 %v2729_v37, 0.0 }
 0xf02   : > { %v2731_v57 = vpop.f32.mrf.mxu2 }
 0xf03   : > { %v2807_v17 = vmax.f32 %v2731_v57, 0.0 }
 0xf05   : > { %v2837_v10 = vpack.c.bf16 %v2807_v17, %v2806_v31 }
 0xf07   : > { %2773 = vmatmul.bf16.gmra.mxu2 %v6024_v21  ;;  %2916 = vmatmul.bf16.gmra.mxu3 %v2837_v10  ;;  %v4050_v10 = vld [vmem:[%s4478_s19 + $0x18] sm:$0xff] }
 0xf0a   : > { %v2734_v25 = vpop.f32.mrf.mxu2 }
 0xf0b   : > { %v2808_v58 = vmax.f32 %v2734_v25, 0.0 }
 0xf12   : > { %v2736_v34 = vpop.f32.mrf.mxu2 }
 0xf13   : > { %v2809_v42 = vmax.f32 %v2736_v34, 0.0 }
 0xf15   : > { %v2838_v14 = vpack.c.bf16 %v2809_v42, %v2808_v58 }
 0xf17   : > { %2778 = vmatmul.bf16.gmra.mxu2 %v6018_v36  ;;  %2921 = vmatmul.bf16.gmra.mxu3 %v2838_v14 }
 0xf1a   : > { %v2739_v54 = vpop.f32.mrf.mxu2 }
 0xf1b   : > { %v2810_v53 = vmax.f32 %v2739_v54, 0.0  ;;  %v4051_v54 = vld [vmem:[%s4478_s19 + $0x20] sm:$0xff] }
 0xf22   : > { %v2741_v59 = vpop.f32.mrf.mxu2 }
 0xf23   : > { %v2811_v50 = vmax.f32 %v2741_v59, 0.0 }
 0xf25   : > { %v2839_v55 = vpack.c.bf16 %v2811_v50, %v2810_v53 }
 0xf27   : > { %2783 = vmatmul.bf16.gmra.mxu2 %v6009_v35  ;;  %2926 = vmatmul.bf16.gmra.mxu3 %v2839_v55 }
 0xf2a   : > { %v2744_v38 = vpop.f32.mrf.mxu2 }
 0xf2b   : > { %v2812_v21 = vmax.f32 %v2744_v38, 0.0 }
 0xf32   : > { %v2746_v3 = vpop.f32.mrf.mxu2 }
 0xf33   : > { %v2813_v12 = vmax.f32 %v2746_v3, 0.0 }
 0xf35   : > { %v2840_v7 = vpack.c.bf16 %v2813_v12, %v2812_v21 }
 0xf37   : > { %2788 = vmatmul.bf16.gmra.mxu2 %v6003_v19  ;;  %2931 = vmatmul.bf16.gmra.mxu3 %v2840_v7  ;;  %v4052_v7 = vld [vmem:[%s4478_s19 + $0x28] sm:$0xff] }
 0xf3a   : > { %v2749_v2 = vpop.f32.mrf.mxu2 }
 0xf3b   : > { %v2814_v36 = vmax.f32 %v2749_v2, 0.0 }
 0xf42   : > { %v2751_v48 = vpop.f32.mrf.mxu2 }
 0xf43   : > { %v2815_v9 = vmax.f32 %v2751_v48, 0.0 }
 0xf45   : > { %v2841_v0 = vpack.c.bf16 %v2815_v9, %v2814_v36 }
 0xf47   : > { %2793 = vmatmul.bf16.gmra.mxu2 %v5994_v1  ;;  %2936 = vmatmul.bf16.gmra.mxu3 %v2841_v0 }
 0xf4a   : > { %v2754_v33 = vpop.f32.mrf.mxu2 }
 0xf4b   : > { %v2816_v35 = vmax.f32 %v2754_v33, 0.0  ;;  %v4053_v33 = vld [vmem:[%s4478_s19 + $0x30] sm:$0xff] }
 0xf52   : > { %v2756_v28 = vpop.f32.mrf.mxu2 }
 0xf53   : > { %v2817_v43 = vmax.f32 %v2756_v28, 0.0 }
 0xf55   : > { %v2842_v15 = vpack.c.bf16 %v2817_v43, %v2816_v35 }
 0xf57   : > { %2798 = vmatmul.bf16.gmra.mxu2 %v5989_v60  ;;  %2941 = vmatmul.bf16.gmra.mxu3 %v2842_v15  ;;  %v6189_v60 = vld [vmem:[%s6352_s5] ss:$0 sm:$0xff] }
 0xf5a   : > { %v2759_v23 = vpop.f32.mrf.mxu2 }
 0xf5b   : > { %v2818_v26 = vmax.f32 %v2759_v23, 0.0 }
 0xf62   : > { %v2761_v19 = vpop.f32.mrf.mxu2 }
 0xf63   : > { %v2819_v51 = vmax.f32 %v2761_v19, 0.0 }
 0xf65   : > { %v2843_v44 = vpack.c.bf16 %v2819_v51, %v2818_v26 }
 0xf67   : > { %2946 = vmatmul.bf16.gmra.mxu3 %v2843_v44  ;;  %v4054_v44 = vld [vmem:[%s4478_s19 + $0x38] sm:$0xff] }
 0xf6a   : > { %v2764_v24 = vpop.f32.mrf.mxu2 }
 0xf6b   : > { %v2820_v1 = vmax.f32 %v2764_v24, 0.0 }
 0xf72   : > { %v2766_v20 = vpop.f32.mrf.mxu2 }
 0xf73   : > { %v2821_v16 = vmax.f32 %v2766_v20, 0.0 }
 0xf75   : > { %v2844_v41 = vpack.c.bf16 %v2821_v16, %v2820_v1 }
 0xf77   : > { %2951 = vmatmul.bf16.gmra.mxu3 %v2844_v41 }
 0xf7a   : > { %v2769_v6 = vpop.f32.mrf.mxu2  ;;  %v2912_v45 = vpop.f32.mrf.mxu3 }
 0xf7b   : > { %v2913_v47 = vadd.f32 %v6189_v60, %v2912_v45  ;;  %v2822_v5 = vmax.f32 %v2769_v6, 0.0  ;;  %v4055_v6 = vld [vmem:[%s4478_s19 + $0x40] sm:$0xff] }
 0xf7d   : > { %v2992_v49 = vadd.f32 %v4047_v11, %v2913_v47 }
 0xf7f   : > { %v3024_v40 = vmax.f32 %v2992_v49, 0.0 }
 0xf81   : > { %3056 = vst [vmem:[%s6195_s11] sm:$0xff] %v3024_v40 }
 0xf82   : > { %v2771_v62 = vpop.f32.mrf.mxu2  ;;  %v2914_v22 = vpop.f32.mrf.mxu3 }
 0xf83   : > { %v2823_v8 = vmax.f32 %v2771_v62, 0.0  ;;  %v2915_v4 = vadd.f32 %v6189_v60, %v2914_v22 }
 0xf85   : > { %v2845_v32 = vpack.c.bf16 %v2823_v8, %v2822_v5  ;;  %v2993_v27 = vadd.f32 %v4048_v39, %v2915_v4  ;;  %v4056_v8 = vld [vmem:[%s4478_s19 + $0x48] sm:$0xff] }
 0xf87   : > { %v3025_v63 = vmax.f32 %v2993_v27, 0.0  ;;  %2956 = vmatmul.bf16.gmra.mxu3 %v2845_v32 }
 0xf89   : > { %3057 = vst [vmem:[%s6195_s11 + $0x8] sm:$0xff] %v3025_v63 }
 0xf8a   : > { %v2774_v61 = vpop.f32.mrf.mxu2  ;;  %v2917_v56 = vpop.f32.mrf.mxu3 }
 0xf8b   : > { %v2918_v46 = vadd.f32 %v6189_v60, %v2917_v56  ;;  %v2824_v37 = vmax.f32 %v2774_v61, 0.0  ;;  %v4057_v61 = vld [vmem:[%s4478_s19 + $0x50] sm:$0xff] }
 0xf8d   : > { %v2994_v29 = vadd.f32 %v4049_v13, %v2918_v46 }
 0xf8f   : > { %v3026_v30 = vmax.f32 %v2994_v29, 0.0 }
 0xf91   : > { %3058 = vst [vmem:[%s6195_s11 + $0x10] sm:$0xff] %v3026_v30 }
 0xf92   : > { %v2776_v52 = vpop.f32.mrf.mxu2  ;;  %v2919_v18 = vpop.f32.mrf.mxu3 }
 0xf93   : > { %v2825_v57 = vmax.f32 %v2776_v52, 0.0  ;;  %v2920_v31 = vadd.f32 %v6189_v60, %v2919_v18 }
 0xf95   : > { %v2846_v17 = vpack.c.bf16 %v2825_v57, %v2824_v37  ;;  %v2995_v25 = vadd.f32 %v4050_v10, %v2920_v31  ;;  %v4058_v57 = vld [vmem:[%s4478_s19 + $0x58] sm:$0xff] }
 0xf97   : > { %v3027_v34 = vmax.f32 %v2995_v25, 0.0  ;;  %2961 = vmatmul.bf16.gmra.mxu3 %v2846_v17 }
 0xf99   : > { %3059 = vst [vmem:[%s6195_s11 + $0x18] sm:$0xff] %v3027_v34 }
 0xf9a   : > { %v2779_v58 = vpop.f32.mrf.mxu2  ;;  %v2922_v42 = vpop.f32.mrf.mxu3 }
 0xf9b   : > { %v2923_v14 = vadd.f32 %v6189_v60, %v2922_v42  ;;  %v2826_v38 = vmax.f32 %v2779_v58, 0.0  ;;  %v4059_v58 = vld [vmem:[%s4478_s19 + $0x60] sm:$0xff] }
 0xf9d   : > { %v2996_v59 = vadd.f32 %v4051_v54, %v2923_v14 }
 0xf9f   : > { %v3028_v53 = vmax.f32 %v2996_v59, 0.0 }
 0xfa1   : > { %3060 = vst [vmem:[%s6195_s11 + $0x20] sm:$0xff] %v3028_v53 }
 0xfa2   : > { %v2781_v50 = vpop.f32.mrf.mxu2  ;;  %v2924_v55 = vpop.f32.mrf.mxu3 }
 0xfa3   : > { %v2827_v3 = vmax.f32 %v2781_v50, 0.0  ;;  %v2925_v21 = vadd.f32 %v6189_v60, %v2924_v55 }
 0xfa5   : > { %v2847_v12 = vpack.c.bf16 %v2827_v3, %v2826_v38  ;;  %v2997_v2 = vadd.f32 %v4052_v7, %v2925_v21  ;;  %v4060_v3 = vld [vmem:[%s4478_s19 + $0x68] sm:$0xff] }
 0xfa7   : > { %v3029_v48 = vmax.f32 %v2997_v2, 0.0  ;;  %2966 = vmatmul.bf16.gmra.mxu3 %v2847_v12 }
 0xfa9   : > { %3061 = vst [vmem:[%s6195_s11 + $0x28] sm:$0xff] %v3029_v48  ;;  %v4061_v48 = vld [vmem:[%s4478_s19 + $0x70] sm:$0xff] }
 0xfaa   : > { %v2784_v36 = vpop.f32.mrf.mxu2  ;;  %v2927_v9 = vpop.f32.mrf.mxu3 }
 0xfab   : > { %v2928_v0 = vadd.f32 %v6189_v60, %v2927_v9  ;;  %v2828_v23 = vmax.f32 %v2784_v36, 0.0 }
 0xfad   : > { %v2998_v28 = vadd.f32 %v4053_v33, %v2928_v0 }
 0xfaf   : > { %v3030_v35 = vmax.f32 %v2998_v28, 0.0  ;;  %v4062_v28 = vld [vmem:[%s4478_s19 + $0x78] sm:$0xff] }
 0xfb1   : > { %3062 = vst [vmem:[%s6195_s11 + $0x30] sm:$0xff] %v3030_v35 }
 0xfb2   : > { %v2786_v43 = vpop.f32.mrf.mxu2  ;;  %v2929_v15 = vpop.f32.mrf.mxu3 }
 0xfb3   : > { %v2829_v19 = vmax.f32 %v2786_v43, 0.0  ;;  %v2930_v26 = vadd.f32 %v6189_v60, %v2929_v15 }
 0xfb5   : > { %v2848_v51 = vpack.c.bf16 %v2829_v19, %v2828_v23  ;;  %v2999_v24 = vadd.f32 %v4054_v44, %v2930_v26  ;;  %v4063_v19 = vld [vmem:[%s4478_s19 + $0x80] sm:$0xff] }
 0xfb7   : > { %v3031_v20 = vmax.f32 %v2999_v24, 0.0  ;;  %2971 = vmatmul.bf16.gmra.mxu3 %v2848_v51 }
 0xfb9   : > { %3063 = vst [vmem:[%s6195_s11 + $0x38] sm:$0xff] %v3031_v20 }
 0xfba   : > { %v2789_v1 = vpop.f32.mrf.mxu2  ;;  %v2932_v16 = vpop.f32.mrf.mxu3 }
 0xfbb   : > { %v2933_v41 = vadd.f32 %v6189_v60, %v2932_v16  ;;  %v2830_v40 = vmax.f32 %v2789_v1, 0.0 }
 0xfbd   : > { %v3000_v45 = vadd.f32 %v4055_v6, %v2933_v41 }
 0xfbf   : > { %v3032_v47 = vmax.f32 %v3000_v45, 0.0 }
 0xfc1   : > { %3064 = vst [vmem:[%s6195_s11 + $0x40] sm:$0xff] %v3032_v47 }
 0xfc2   : > { %v2791_v11 = vpop.f32.mrf.mxu2  ;;  %v2934_v49 = vpop.f32.mrf.mxu3 }
 0xfc3   : > { %v2831_v62 = vmax.f32 %v2791_v11, 0.0  ;;  %v2935_v22 = vadd.f32 %v6189_v60, %v2934_v49 }
 0xfc5   : > { %v2849_v5 = vpack.c.bf16 %v2831_v62, %v2830_v40  ;;  %v3001_v4 = vadd.f32 %v4056_v8, %v2935_v22 }
 0xfc7   : > { %v3033_v32 = vmax.f32 %v3001_v4, 0.0  ;;  %2976 = vmatmul.bf16.gmra.mxu3 %v2849_v5 }
 0xfc9   : > { %3065 = vst [vmem:[%s6195_s11 + $0x48] sm:$0xff] %v3033_v32 }
 0xfca   : > { %v2794_v39 = vpop.f32.mrf.mxu2  ;;  %v2937_v27 = vpop.f32.mrf.mxu3 }
 0xfcb   : > { %v2938_v63 = vadd.f32 %v6189_v60, %v2937_v27  ;;  %v2832_v30 = vmax.f32 %v2794_v39, 0.0 }
 0xfcd   : > { %v3002_v56 = vadd.f32 %v4057_v61, %v2938_v63 }
 0xfcf   : > { %v3034_v46 = vmax.f32 %v3002_v56, 0.0 }
 0xfd1   : > { %3066 = vst [vmem:[%s6195_s11 + $0x50] sm:$0xff] %v3034_v46 }
 0xfd2   : > { %v2796_v13 = vpop.f32.mrf.mxu2  ;;  %v2939_v29 = vpop.f32.mrf.mxu3 }
 0xfd3   : > { %v2833_v52 = vmax.f32 %v2796_v13, 0.0  ;;  %v2940_v18 = vadd.f32 %v6189_v60, %v2939_v29 }
 0xfd5   : > { %v2850_v37 = vpack.c.bf16 %v2833_v52, %v2832_v30  ;;  %v3003_v31 = vadd.f32 %v4058_v57, %v2940_v18 }
 0xfd7   : > { %v3035_v17 = vmax.f32 %v3003_v31, 0.0  ;;  %2981 = vmatmul.bf16.gmra.mxu3 %v2850_v37 }
 0xfd9   : > { %3067 = vst [vmem:[%s6195_s11 + $0x58] sm:$0xff] %v3035_v17 }
 0xfda   : > { %v2799_v10 = vpop.f32.mrf.mxu2  ;;  %v2942_v25 = vpop.f32.mrf.mxu3 }
 0xfdb   : > { %v2943_v34 = vadd.f32 %v6189_v60, %v2942_v25  ;;  %v2834_v53 = vmax.f32 %v2799_v10, 0.0 }
 0xfdd   : > { %v3004_v42 = vadd.f32 %v4059_v58, %v2943_v34 }
 0xfdf   : > { %v3036_v14 = vmax.f32 %v3004_v42, 0.0 }
 0xfe1   : > { %3068 = vst [vmem:[%s6195_s11 + $0x60] sm:$0xff] %v3036_v14 }
 0xfe2   : > { %v2801_v54 = vpop.f32.mrf.mxu2  ;;  %v2944_v59 = vpop.f32.mrf.mxu3 }
 0xfe3   : > { %v2835_v50 = vmax.f32 %v2801_v54, 0.0  ;;  %v2945_v55 = vadd.f32 %v6189_v60, %v2944_v59 }
 0xfe5   : > { %v2851_v38 = vpack.c.bf16 %v2835_v50, %v2834_v53  ;;  %v3005_v21 = vadd.f32 %v4060_v3, %v2945_v55 }
 0xfe7   : > { %v3037_v12 = vmax.f32 %v3005_v21, 0.0  ;;  %2986 = vmatmul.bf16.gmra.mxu3 %v2851_v38 }
 0xfe9   : > { %3069 = vst [vmem:[%s6195_s11 + $0x68] sm:$0xff] %v3037_v12 }
 0xfea   : > { %v2947_v7 = vpop.f32.mrf.mxu3 }
 0xfeb   : > { %v2948_v2 = vadd.f32 %v6189_v60, %v2947_v7 }
 0xfed   : > { %v3006_v36 = vadd.f32 %v4061_v48, %v2948_v2 }
 0xfef   : > { %v3038_v9 = vmax.f32 %v3006_v36, 0.0 }
 0xff1   : > { %3070 = vst [vmem:[%s6195_s11 + $0x70] sm:$0xff] %v3038_v9 }
 0xff2   : > { %v2949_v0 = vpop.f32.mrf.mxu3 }
 0xff3   : > { %v2950_v33 = vadd.f32 %v6189_v60, %v2949_v0 }
 0xff5   : > { %v3007_v35 = vadd.f32 %v4062_v28, %v2950_v33 }
 0xff7   : > { %v3039_v43 = vmax.f32 %v3007_v35, 0.0 }
 0xff9   : > { %3071 = vst [vmem:[%s6195_s11 + $0x78] sm:$0xff] %v3039_v43 }
 0xffa   : > { %v2952_v15 = vpop.f32.mrf.mxu3 }
 0xffb   : > { %v2953_v23 = vadd.f32 %v6189_v60, %v2952_v15 }
 0xffd   : > { %v3008_v26 = vadd.f32 %v4063_v19, %v2953_v23 }
 0xfff   : > { %v3040_v51 = vmax.f32 %v3008_v26, 0.0 }
0x1001   : > { %3072 = vst [vmem:[%s6195_s11 + $0x80] sm:$0xff] %v3040_v51 }
0x1002   : > { %v2954_v44 = vpop.f32.mrf.mxu3 }
0x1003   : > { %4226 = shalt.err (!%p4223_p10)
}
0x1004   : > { %s4314_s1 = smov 128   ;;  %s4315_s20 = smov 8   ;;  %v2955_v24 = vadd.f32 %v6189_v60, %v2954_v44  ;;  %v4064_v20 = vld [vmem:[%s4478_s19 + $0x88] sm:$0xff]  ;;  %v4065_v45 = vld [vmem:[%s4478_s19 + $0x90] sm:$0xff]  ;;  %v4066_v62 = vld [vmem:[%s4478_s19 + $0x98] sm:$0xff] }
0x1005   : > { %3455 = dma.vmem_to_hbm [thread:$0]  (%p4444_p7), %s3140_s16, 2048, %s3142_s21, %s3110_s13, %s4314_s1, %s4314_s1, %s4315_s20  }
0x1006   : > { %v3009_v1 = vadd.f32 %v4064_v20, %v2955_v24  ;;  %v4067_v32 = vld [vmem:[%s4478_s19 + $0xa0] sm:$0xff]  ;;  %v4068_v56 = vld [vmem:[%s4478_s19 + $0xa8] sm:$0xff]  ;;  %v4069_v52 = vld [vmem:[%s4478_s19 + $0xb0] sm:$0xff]  ;;  %s3422_s0 = sshll.u32 %s4382_s9, 8  ;;  %s3122_s13 = sshll.u32 %s6195_s11, 4  ;;  %s3123_s13 = int_to_ptr.vmem [resolvable:$true] %s3122_s13 }
0x1007   : > { %v4070_v17 = vld [vmem:[%s4478_s19 + $0xb8] sm:$0xff]  ;;  %v4071_v42 = vld [vmem:[%s4478_s19 + $0xc0] sm:$0xff]  ;;  %v4072_v50 = vld [vmem:[%s4478_s19 + $0xc8] sm:$0xff]  ;;  %s3121_s21 = scalar_lea.hbm %s6354_s7, %s3422_s0  ;;  %s3105_s24 = scalar_lea.sflag [#allocation4], %s4472_s10 }
0x1008   : > { %v3041_v16 = vmax.f32 %v3009_v1, 0.0  ;;  %v4073_v12 = vld [vmem:[%s4478_s19 + $0xd0] sm:$0xff]  ;;  %v4074_v9 = vld [vmem:[%s4478_s19 + $0xd8] sm:$0xff]  ;;  %v4075_v43 = vld [vmem:[%s4478_s19 + $0xe0] sm:$0xff]  ;;  %s3124_s23 = sshll.u32 %s3121_s21, 4  ;;  %s4247_s14 = scalar_lea.hbm %s6354_s7, 512  ;;  %s3125_s23 = int_to_ptr.hbm [resolvable:$true] %s3124_s23 }
0x1009   : > { %v4076_v51 = vld [vmem:[%s4478_s19 + $0xe8] sm:$0xff]  ;;  %s4241_s9 = sshra.s32 %s3125_s23, 4  ;;  %s4242_s9 = int_to_ptr.hbm [resolvable:$true] %s4241_s9 }
0x100a   : > { %3073 = vst [vmem:[%s6195_s11 + $0x88] sm:$0xff] %v3041_v16  ;;  %v2957_v41 = vpop.f32.mrf.mxu3  ;;  %v4077_v16 = vld [vmem:[%s4478_s19 + $0xf0] sm:$0xff]  ;;  %s4243_s17 = scalar_lea.hbm %s4242_s9, 256  ;;  %p4248_p3 = scmp.lt.s32.totalorder %s4242_s9, %s6354_s7 }
0x100b   : > { %v2958_v6 = vadd.f32 %v6189_v60, %v2957_v41  ;;  %p4244_p12 = scmp.ne.s32.totalorder %s4242_s9, %s4243_s17  ;;  %p4249_p5 = scmp.lt.s32.totalorder %s4247_s14, %s4243_s17 }
0x100d   : > { %v3010_v47 = vadd.f32 %v4065_v45, %v2958_v6  ;;  %p4245_p13 = pnand %p4244_p12, %p4444_p7  ;;  %p4250_p1 = por %p4249_p5, %p4248_p3 }
0x100f   : > { %v3042_v11 = vmax.f32 %v3010_v47, 0.0  ;;  %p4246_p0 = pneg %p4245_p13 }
0x1011   : > { %3074 = vst [vmem:[%s6195_s11 + $0x90] sm:$0xff] %v3042_v11  ;;  %v4078_v11 = vld [vmem:[%s4478_s19 + $0xf8] sm:$0xff]  ;;  %p4251_p4 = pnand %p4250_p1, %p4246_p0 }
0x1012   : > { %v2959_v49 = vpop.f32.mrf.mxu3 }
0x1013   : > { %v2960_v40 = vadd.f32 %v6189_v60, %v2959_v49 }
0x1015   : > { %v3011_v22 = vadd.f32 %v4066_v62, %v2960_v40 }
0x1017   : > { %v3043_v5 = vmax.f32 %v3011_v22, 0.0 }
0x1019   : > { %3075 = vst [vmem:[%s6195_s11 + $0x98] sm:$0xff] %v3043_v5 }
0x101a   : > { %v2962_v8 = vpop.f32.mrf.mxu3 }
0x101b   : > { %v2963_v4 = vadd.f32 %v6189_v60, %v2962_v8 }
0x101d   : > { %v3012_v39 = vadd.f32 %v4067_v32, %v2963_v4 }
0x101f   : > { %v3044_v27 = vmax.f32 %v3012_v39, 0.0 }
0x1021   : > { %3076 = vst [vmem:[%s6195_s11 + $0xa0] sm:$0xff] %v3044_v27 }
0x1022   : > { %v2964_v63 = vpop.f32.mrf.mxu3 }
0x1023   : > { %v2965_v61 = vadd.f32 %v6189_v60, %v2964_v63 }
0x1025   : > { %v3013_v46 = vadd.f32 %v4068_v56, %v2965_v61 }
0x1027   : > { %v3045_v13 = vmax.f32 %v3013_v46, 0.0 }
0x1029   : > { %3077 = vst [vmem:[%s6195_s11 + $0xa8] sm:$0xff] %v3045_v13 }
0x102a   : > { %v2967_v29 = vpop.f32.mrf.mxu3 }
0x102b   : > { %v2968_v30 = vadd.f32 %v6189_v60, %v2967_v29 }
0x102d   : > { %v3014_v18 = vadd.f32 %v4069_v52, %v2968_v30 }
0x102f   : > { %v3046_v37 = vmax.f32 %v3014_v18, 0.0 }
0x1031   : > { %3078 = vst [vmem:[%s6195_s11 + $0xb0] sm:$0xff] %v3046_v37 }
0x1032   : > { %v2969_v57 = vpop.f32.mrf.mxu3 }
0x1033   : > { %v2970_v31 = vadd.f32 %v6189_v60, %v2969_v57 }
0x1035   : > { %v3015_v10 = vadd.f32 %v4070_v17, %v2970_v31 }
0x1037   : > { %v3047_v25 = vmax.f32 %v3015_v10, 0.0 }
0x1039   : > { %3079 = vst [vmem:[%s6195_s11 + $0xb8] sm:$0xff] %v3047_v25 }
0x103a   : > { %v2972_v34 = vpop.f32.mrf.mxu3 }
0x103b   : > { %v2973_v58 = vadd.f32 %v6189_v60, %v2972_v34 }
0x103d   : > { %v3016_v14 = vadd.f32 %v4071_v42, %v2973_v58 }
0x103f   : > { %v3048_v54 = vmax.f32 %v3016_v14, 0.0 }
0x1041   : > { %3080 = vst [vmem:[%s6195_s11 + $0xc0] sm:$0xff] %v3048_v54 }
0x1042   : > { %v2974_v59 = vpop.f32.mrf.mxu3 }
0x1043   : > { %v2975_v53 = vadd.f32 %v6189_v60, %v2974_v59 }
0x1045   : > { %v3017_v55 = vadd.f32 %v4072_v50, %v2975_v53 }
0x1047   : > { %v3049_v38 = vmax.f32 %v3017_v55, 0.0 }
0x1049   : > { %3081 = vst [vmem:[%s6195_s11 + $0xc8] sm:$0xff] %v3049_v38 }
0x104a   : > { %v2977_v3 = vpop.f32.mrf.mxu3 }
0x104b   : > { %v2978_v21 = vadd.f32 %v6189_v60, %v2977_v3 }
0x104d   : > { %v3018_v7 = vadd.f32 %v4073_v12, %v2978_v21 }
0x104f   : > { %v3050_v2 = vmax.f32 %v3018_v7, 0.0 }
0x1051   : > { %3082 = vst [vmem:[%s6195_s11 + $0xd0] sm:$0xff] %v3050_v2 }
0x1052   : > { %v2979_v48 = vpop.f32.mrf.mxu3 }
0x1053   : > { %v2980_v36 = vadd.f32 %v6189_v60, %v2979_v48 }
0x1055   : > { %v3019_v0 = vadd.f32 %v4074_v9, %v2980_v36 }
0x1057   : > { %v3051_v33 = vmax.f32 %v3019_v0, 0.0 }
0x1059   : > { %3083 = vst [vmem:[%s6195_s11 + $0xd8] sm:$0xff] %v3051_v33 }
0x105a   : > { %v2982_v28 = vpop.f32.mrf.mxu3 }
0x105b   : > { %v2983_v35 = vadd.f32 %v6189_v60, %v2982_v28 }
0x105d   : > { %v3020_v15 = vadd.f32 %v4075_v43, %v2983_v35 }
0x105f   : > { %v3052_v23 = vmax.f32 %v3020_v15, 0.0 }
0x1061   : > { %3084 = vst [vmem:[%s6195_s11 + $0xe0] sm:$0xff] %v3052_v23 }
0x1062   : > { %v2984_v19 = vpop.f32.mrf.mxu3 }
0x1063   : > { %v2985_v26 = vadd.f32 %v6189_v60, %v2984_v19 }
0x1065   : > { %v3021_v44 = vadd.f32 %v4076_v51, %v2985_v26 }
0x1067   : > { %v3053_v24 = vmax.f32 %v3021_v44, 0.0 }
0x1069   : > { %3085 = vst [vmem:[%s6195_s11 + $0xe8] sm:$0xff] %v3053_v24 }
0x106a   : > { %v2987_v20 = vpop.f32.mrf.mxu3 }
0x106b   : > { %v2988_v1 = vadd.f32 %v6189_v60, %v2987_v20 }
0x106d   : > { %v3022_v41 = vadd.f32 %v4077_v16, %v2988_v1 }
0x106f   : > { %v3054_v6 = vmax.f32 %v3022_v41, 0.0 }
0x1071   : > { %3086 = vst [vmem:[%s6195_s11 + $0xf0] sm:$0xff] %v3054_v6 }
0x1072   : > { %v2989_v45 = vpop.f32.mrf.mxu3 }
0x1073   : > { %v2990_v47 = vadd.f32 %v6189_v60, %v2989_v45 }
0x1075   : > { %v3023_v49 = vadd.f32 %v4078_v11, %v2990_v47 }
0x1077   : > { %v3055_v40 = vmax.f32 %v3023_v49, 0.0 }
0x1079   : > { %3087 = vst [vmem:[%s6195_s11 + $0xf8] sm:$0xff] %v3055_v40 }
0x107a   : > { %4254 = shalt.err (!%p4251_p4)
}
0x107b   : > { %3454 = dma.vmem_to_hbm [thread:$0]  (%p4444_p7), %s3123_s13, 4096, %s3125_s23, %s3105_s24, %s4314_s1, %s4314_s1, %s4315_s20  }
0x107c PF: > { %s3156_s10 = sand.u32 1, %s4293_s27   ;;  %p6598_p8 = scmp.ge.s32.totalorder %s4305_s30, 2 }
0x107d   : > { %s3157_s19 = scalar_lea.sflag [#allocation4], %s3156_s10 }
0x107e   : > { %p3473_p11 = pnand %p6598_p8, %p4396_p6 }
0x1080   : > { %p3474_p9 = pneg %p3473_p11 }
0x1082   : > { %4284 = dma.done.wait (%p3474_p9), %s3157_s19, 4096  }
0x1083   : > { %4286 = vsyncadd (%p3474_p9), %s3157_s19, 4294963200  ;;  %s3167_s11 = scalar_lea.sflag [#allocation12], %s3156_s10 }
0x1084   : > { %4288 = dma.done.wait (%p3474_p9), %s3167_s11, 2048  }
0x1085   : > { %4290 = vsyncadd (%p3474_p9), %s3167_s11, 4294965248  ;;  %p27_p7 = scmp.ge.s32.totalorder %s4428_s15, 4   ;;  %s6599_s27 = smov %s4297_s28 }
0x1086   : > { %s6600_s28 = smov %s4301_s29  ;;  %s6601_s29 = smov %s4440_s25 }
0x1087   : > { %s6602_s30 = smov %s4428_s15  ;;  %29 = sbr.rel (!%p27_p7) target bundleno = 13 (0xd), region = 122 }
0x108c   :  { %3173 = vsyncpa [#allocation3], 1 }
0x108d   :  { %3175 = vsyncpa [#allocation3 + $0x1], 1 }
0x108e   :  { %3176 = vsyncpa [#allocation6], 1 }
0x108f   :  { %3177 = vsyncpa [#allocation9], 1 }
0x1090   :  { %3178 = vsyncpa [#allocation4], 1 }
0x1091   :  { %3180 = vsyncpa [#allocation4 + $0x1], 1 }
0x1092   :  { %3181 = vsyncpa [#allocation12], 1 }
0x1093   :  { %3183 = vsyncpa [#allocation12 + $0x1], 1 }

</bundles_post_ra>
